<compile_context>
chip_gen: v7x
topology: tpu7x:2x2x1
jax: 0.10.0
libtpu: 0.0.40
codegen_flags: <defaults>
</compile_context>

<pallas_src>
import jax
import jax.numpy as jnp
from jax.experimental import pallas as pl
from jax.experimental.pallas import tpu as pltpu

# ----------------------------- configuration -------------------------------
DIM        = 16                      # CoWindowAttention `dim` (input channels)
DOWNSAMPLE = 2                       # `dowmsample`
HEADS      = 2                       # num_heads
WIN        = 8                       # win_size = (8, 8)
N_WIN      = WIN * WIN               # 64 tokens per window
INNER      = DIM // DOWNSAMPLE       # 8  (ConvProjection inner_dim / proj width)
HEAD_DIM   = INNER // HEADS          # 4
SCALE      = (DIM // HEADS) ** -0.5  # module convention: head_dim = dim//heads
NWB        = 8                       # B_ = batch * num_windows (e.g. 2 x 4)
TOK        = NWB * N_WIN             # 512 tokens across all windows
KTAPS      = 9                       # 3x3 depthwise taps (tap t = kh*3 + kw)
WINDOWS_PER_BLOCK = 4                # windows per grid step (parallel axis)


# ------------------------------ Pallas kernel -------------------------------
def co_window_attention_kernel(xcol_ref, dww_ref, dwb_ref, pww_ref, pwb_ref,
                               pos_ref, pjw_ref, pjb_ref, o_ref):
    """Fused ConvProjection(q,k,v) + windowed MHSA + output projection.

    One grid step handles `wb` windows.  xcol_ref is the im2col operand
    (wb*64, 9*DIM); every weight lives fully in VMEM (constant index maps).
    """
    tok_blk = xcol_ref.shape[0]
    wb = tok_blk // N_WIN                               # windows in this block

    # --- depthwise 3x3 (zero pad 1) for q|k|v as ONE MXU matmul + bias + ReLU
    h = jnp.dot(xcol_ref[...], dww_ref[...],
                preferred_element_type=jnp.float32)      # (tok_blk, 48)
    h = jnp.maximum(h + dwb_ref[...], 0.0)

    # --- pointwise 1x1 per (projection, head): six tiny MXU matmuls; each
    #     per-head output lands at lane offset 0 (no unaligned lane slices).
    def pw(g):
        return jnp.dot(h, pww_ref[g],
                       preferred_element_type=jnp.float32) + pwb_ref[g]

    def head_batched(g0):  # stack the two heads on the batch (leading) axis
        return jnp.concatenate([pw(g0), pw(g0 + 1)], axis=0).reshape(
            HEADS * wb, N_WIN, HEAD_DIM)

    q = head_batched(0)          # q scale already folded into packed weights
    k = head_batched(2)
    v = head_batched(4)

    # --- windowed attention, both heads in one batched einsum, pos added once
    s = jnp.einsum('bnd,bmd->bnm', q, k,
                   preferred_element_type=jnp.float32) + pos_ref[...]
    p = jnp.exp(s - jnp.max(s, axis=-1, keepdims=True))
    p = p * pl.reciprocal(jnp.sum(p, axis=-1, keepdims=True), approx=True)
    o = jnp.einsum('bnm,bmd->bnd', p, v,
                   preferred_element_type=jnp.float32)   # (HEADS*wb, 64, 4)

    # --- output projection: head concat folded into two matmuls (MXU is idle)
    o0 = o[:wb].reshape(tok_blk, HEAD_DIM)               # head 0
    o1 = o[wb:].reshape(tok_blk, HEAD_DIM)               # head 1
    o_ref[...] = (jnp.dot(o0, pjw_ref[0], preferred_element_type=jnp.float32)
                  + jnp.dot(o1, pjw_ref[1], preferred_element_type=jnp.float32)
                  + pjb_ref[...])                        # (tok_blk, 8)


# ------------------------------ wrapper --------------------------------------
def _im2col_windows(x):
    """(NWB, 64, C) tokens -> (NWB*64, 9*C) halo-padded 3x3 im2col operand.

    Pure layout plumbing (pad + static slices) done once in XLA; the kernel
    then sees a lane-dense operand and runs the conv stage entirely on the MXU.
    Column index = tap*C + channel with tap t = kh*3 + kw.
    """
    nwb, n, c = x.shape
    xs = x.reshape(nwb, WIN, WIN, c)
    xp = jnp.pad(xs, ((0, 0), (1, 1), (1, 1), (0, 0)))
    taps = [xp[:, kh:kh + WIN, kw:kw + WIN, :]
            for kh in range(3) for kw in range(3)]
    return jnp.stack(taps, axis=3).reshape(nwb * n, KTAPS * c)


@jax.jit
def co_window_attention(x, params):
    """x: (B_, N, C) windowed tokens, N = win*win, C = dim."""
    nwb, n, c = x.shape
    assert n == N_WIN and c == DIM, (n, c)               # WIN/DIM baked in
    wb = WINDOWS_PER_BLOCK if nwb % WINDOWS_PER_BLOCK == 0 else nwb
    n_blk = nwb // wb
    tok_blk = wb * N_WIN

    xcol = _im2col_windows(x)                            # (TOK, 144)

    out = pl.pallas_call(
        co_window_attention_kernel,
        out_shape=jax.ShapeDtypeStruct((nwb * n, INNER), jnp.float32),
        grid=(n_blk,),
        in_specs=[
            pl.BlockSpec((tok_blk, KTAPS * DIM), lambda i: (i, 0)),      # xcol
            pl.BlockSpec((KTAPS * DIM, 3 * DIM), lambda i: (0, 0)),      # dw_w
            pl.BlockSpec((1, 3 * DIM), lambda i: (0, 0)),                # dw_b
            pl.BlockSpec((3 * HEADS, 3 * DIM, HEAD_DIM),
                         lambda i: (0, 0, 0)),                           # pw_w
            pl.BlockSpec((3 * HEADS, 1, HEAD_DIM), lambda i: (0, 0, 0)), # pw_b
            pl.BlockSpec((N_WIN, N_WIN), lambda i: (0, 0)),              # pos
            pl.BlockSpec((HEADS, HEAD_DIM, INNER), lambda i: (0, 0, 0)), # proj_w
            pl.BlockSpec((1, INNER), lambda i: (0, 0)),                  # proj_b
        ],
        out_specs=pl.BlockSpec((tok_blk, INNER), lambda i: (i, 0)),
        compiler_params=pltpu.CompilerParams(
            dimension_semantics=("parallel",)),
    )(xcol, params['dw_w'], params['dw_b'], params['pw_w'], params['pw_b'],
      params['pos'], params['proj_w'], params['proj_b'])
    return out.reshape(nwb, n, INNER)


# ----------------------- parameters (deterministic) --------------------------
def init_params(key):
    keys = iter(jax.random.split(key, 16))

    def nrm(shape, s=0.1):
        return jax.random.normal(next(keys), shape, jnp.float32) * s

    raw = {
        'pos': nrm((1, 1, N_WIN, N_WIN), 0.02),           # pos_emb
        'proj_w': nrm((INNER, INNER)), 'proj_b': nrm((INNER,)),
    }
    for name in ('q', 'k', 'v'):                          # SepConv2d params
        raw[f'{name}_dw_w'] = nrm((DIM, 1, 3, 3))         # torch depthwise
        raw[f'{name}_dw_b'] = nrm((DIM,))
        raw[f'{name}_pw_w'] = nrm((INNER, DIM, 1, 1))     # torch pointwise
        raw[f'{name}_pw_b'] = nrm((INNER,))
    return raw


def pack_params(raw):
    # depthwise as im2col weight: (144, 48), row = tap*DIM + c_in; for each
    # projection the 16-column block is 9 vertically-stacked diagonal blocks.
    def dw_block(w):                                      # torch (C,1,3,3)
        wt = w.reshape(DIM, KTAPS)                        # (c, t), t = kh*3+kw
        return jnp.concatenate([jnp.diag(wt[:, t]) for t in range(KTAPS)],
                               axis=0)                    # (144, 16)

    dw_w = jnp.concatenate([dw_block(raw[f'{n}_dw_w']) for n in 'qkv'], axis=1)
    dw_b = jnp.concatenate([raw[f'{n}_dw_b'] for n in 'qkv']).reshape(1, 3 * DIM)

    # pointwise packed per (projection, head): group g = proj*HEADS + head,
    # order [q_h0, q_h1, k_h0, k_h1, v_h0, v_h1]; q scale folded exactly.
    scales = {'q': SCALE, 'k': 1.0, 'v': 1.0}
    pw_w = jnp.zeros((3 * HEADS, 3 * DIM, HEAD_DIM), jnp.float32)
    pw_b = jnp.zeros((3 * HEADS, 1, HEAD_DIM), jnp.float32)
    for pi, n in enumerate('qkv'):
        w = raw[f'{n}_pw_w'][:, :, 0, 0] * scales[n]      # (INNER, DIM)
        b = raw[f'{n}_pw_b'] * scales[n]                  # (INNER,)
        for hd in range(HEADS):
            g = pi * HEADS + hd
            blk = w[hd * HEAD_DIM:(hd + 1) * HEAD_DIM, :].T   # (DIM, HEAD_DIM)
            pw_w = pw_w.at[g, pi * DIM:(pi + 1) * DIM, :].set(blk)
            pw_b = pw_b.at[g, 0, :].set(b[hd * HEAD_DIM:(hd + 1) * HEAD_DIM])

    # final Linear(8,8): out = [o_h0|o_h1] @ W.T + b, split per head row block
    pjw = jnp.stack([raw['proj_w'].T[hd * HEAD_DIM:(hd + 1) * HEAD_DIM, :]
                     for hd in range(HEADS)])             # (HEADS, 4, 8)
    return {
        'dw_w': dw_w, 'dw_b': dw_b, 'pw_w': pw_w, 'pw_b': pw_b,
        'pos': raw['pos'].reshape(N_WIN, N_WIN),
        'proj_w': pjw, 'proj_b': raw['proj_b'].reshape(1, INNER),
    }


# ------------------------- pure-JAX reference (check) ------------------------
def _depthwise3x3_nhwc(x, w, b):  # w: torch (C,1,3,3), b: (C,)
    c_ = x.shape[-1]
    y = jax.lax.conv_general_dilated(
        x, jnp.transpose(w, (2, 3, 1, 0)), window_strides=(1, 1),
        padding=((1, 1), (1, 1)), dimension_numbers=('NHWC', 'HWIO', 'NHWC'),
        feature_group_count=c_, precision=jax.lax.Precision.HIGHEST)
    return y + b


def reference_forward(x, raw):
    b_, n, c = x.shape
    xs = x.reshape(b_, WIN, WIN, c)                       # token = h*WIN + w

    def sep(name):
        y = _depthwise3x3_nhwc(xs, raw[f'{name}_dw_w'], raw[f'{name}_dw_b'])
        y = jnp.maximum(y, 0.0)
        y = jnp.einsum('bhwi,oi->bhwo', y, raw[f'{name}_pw_w'][:, :, 0, 0],
                       precision=jax.lax.Precision.HIGHEST) + raw[f'{name}_pw_b']
        return y.reshape(b_, N_WIN, HEADS, HEAD_DIM).transpose(0, 2, 1, 3)

    q = sep('q') * SCALE
    k = sep('k')
    v = sep('v')
    attn = jnp.einsum('bhnd,bhmd->bhnm', q, k,
                      precision=jax.lax.Precision.HIGHEST)
    attn = attn + raw['pos']                              # (1,1,64,64) broadcast
    attn = jax.nn.softmax(attn, axis=-1)
    o = jnp.einsum('bhnm,bhmd->bhnd', attn, v,
                   precision=jax.lax.Precision.HIGHEST)
    o = o.transpose(0, 2, 1, 3).reshape(b_, n, INNER)
    return jnp.einsum('bnc,dc->bnd', o, raw['proj_w'],
                      precision=jax.lax.Precision.HIGHEST) + raw['proj_b']


# ----------------------------------- main ------------------------------------
if __name__ == "__main__":
    key = jax.random.PRNGKey(0)
    k_x, k_p = jax.random.split(key)
    x = jax.random.normal(k_x, (NWB, N_WIN, DIM), jnp.float32)    # (8, 64, 16)

    raw = init_params(k_p)
    params = pack_params(raw)

    out = jax.block_until_ready(co_window_attention(x, params))
    assert out.shape == (NWB, N_WIN, INNER), out.shape

    ref = reference_forward(x, raw)
    err = float(jnp.max(jnp.abs(out - ref)))
    # default-precision (bf16-pass) MXU matmuls + approx reciprocal vs. a
    # float32 'highest' reference -> allow a few e-3 of absolute slack.
    assert err < 5e-3, err
    print("KERNEL_OK")
</pallas_src>

<mosaic_0001>
module attributes {stable_mosaic.version = 11 : i64} {
  func.func @co_window_attention_kernel(%arg0: i32, %arg1: memref<256x144xf32, #tpu.memory_space<vmem>>, %arg2: memref<144x48xf32, #tpu.memory_space<vmem>>, %arg3: memref<1x48xf32, #tpu.memory_space<vmem>>, %arg4: memref<6x48x4xf32, #tpu.memory_space<vmem>>, %arg5: memref<6x1x4xf32, #tpu.memory_space<vmem>>, %arg6: memref<64x64xf32, #tpu.memory_space<vmem>>, %arg7: memref<2x4x8xf32, #tpu.memory_space<vmem>>, %arg8: memref<1x8xf32, #tpu.memory_space<vmem>>, %arg9: memref<256x8xf32, #tpu.memory_space<vmem>>) attributes {dimension_semantics = [#tpu.dimension_semantics<parallel>], iteration_bounds = array<i64: 2>, scalar_prefetch = 0 : i64, scratch_operands = 0 : i64, tpu.core_type = #tpu.core_type<tc>, window_params = [{transform_indices = @transform_0, window_bounds = array<i64: 256, 144>}, {pipeline_mode = #tpu.pipeline_mode<synchronous>, transform_indices = @transform_1, window_bounds = array<i64: 144, 48>}, {pipeline_mode = #tpu.pipeline_mode<synchronous>, transform_indices = @transform_2, window_bounds = array<i64: 1, 48>}, {pipeline_mode = #tpu.pipeline_mode<synchronous>, transform_indices = @transform_3, window_bounds = array<i64: 6, 48, 4>}, {pipeline_mode = #tpu.pipeline_mode<synchronous>, transform_indices = @transform_4, window_bounds = array<i64: 6, 1, 4>}, {pipeline_mode = #tpu.pipeline_mode<synchronous>, transform_indices = @transform_5, window_bounds = array<i64: 64, 64>}, {pipeline_mode = #tpu.pipeline_mode<synchronous>, transform_indices = @transform_6, window_bounds = array<i64: 2, 4, 8>}, {pipeline_mode = #tpu.pipeline_mode<synchronous>, transform_indices = @transform_7, window_bounds = array<i64: 1, 8>}, {transform_indices = @transform_8, window_bounds = array<i64: 256, 8>}]} {
    %c0 = arith.constant 0 : index
    %c0_0 = arith.constant 0 : index
    %0 = vector.load %arg1[%c0, %c0_0] : memref<256x144xf32, #tpu.memory_space<vmem>>, vector<256x144xf32>
    %c0_1 = arith.constant 0 : index
    %c0_2 = arith.constant 0 : index
    %1 = vector.load %arg2[%c0_1, %c0_2] : memref<144x48xf32, #tpu.memory_space<vmem>>, vector<144x48xf32>
    %cst = arith.constant dense<0.000000e+00> : vector<256x48xf32>
    %2 = tpu.matmul %0, %1, %cst {dimension_numbers = #tpu.dot_dimension_numbers<[1], [0], [0], [1], [0, 0, 1, 1], [], []>} : vector<256x144xf32>, vector<144x48xf32>, vector<256x48xf32> -> vector<256x48xf32>
    %c0_3 = arith.constant 0 : index
    %c0_4 = arith.constant 0 : index
    %3 = vector.load %arg3[%c0_3, %c0_4] : memref<1x48xf32, #tpu.memory_space<vmem>>, vector<1x48xf32>
    %4 = vector.broadcast %3 : vector<1x48xf32> to vector<256x48xf32>
    %5 = arith.addf %2, %4 : vector<256x48xf32>
    %cst_5 = arith.constant 0.000000e+00 : f32
    %6 = vector.broadcast %cst_5 : f32 to vector<256x48xf32>
    %7 = arith.maximumf %5, %6 : vector<256x48xf32>
    %c0_6 = arith.constant 0 : index
    %c0_7 = arith.constant 0 : index
    %c0_8 = arith.constant 0 : index
    %8 = vector.load %arg4[%c0_6, %c0_7, %c0_8] : memref<6x48x4xf32, #tpu.memory_space<vmem>>, vector<1x48x4xf32>
    %9 = vector.shape_cast %8 : vector<1x48x4xf32> to vector<48x4xf32>
    %cst_9 = arith.constant dense<0.000000e+00> : vector<256x4xf32>
    %10 = tpu.matmul %7, %9, %cst_9 {dimension_numbers = #tpu.dot_dimension_numbers<[1], [0], [0], [1], [0, 0, 1, 1], [], []>} : vector<256x48xf32>, vector<48x4xf32>, vector<256x4xf32> -> vector<256x4xf32>
    %c0_10 = arith.constant 0 : index
    %c0_11 = arith.constant 0 : index
    %c0_12 = arith.constant 0 : index
    %11 = vector.load %arg5[%c0_10, %c0_11, %c0_12] : memref<6x1x4xf32, #tpu.memory_space<vmem>>, vector<1x1x4xf32>
    %12 = vector.shape_cast %11 : vector<1x1x4xf32> to vector<1x4xf32>
    %13 = vector.broadcast %12 : vector<1x4xf32> to vector<256x4xf32>
    %14 = arith.addf %10, %13 : vector<256x4xf32>
    %c1 = arith.constant 1 : index
    %c0_13 = arith.constant 0 : index
    %c0_14 = arith.constant 0 : index
    %15 = vector.load %arg4[%c1, %c0_13, %c0_14] : memref<6x48x4xf32, #tpu.memory_space<vmem>>, vector<1x48x4xf32>
    %16 = vector.shape_cast %15 : vector<1x48x4xf32> to vector<48x4xf32>
    %cst_15 = arith.constant dense<0.000000e+00> : vector<256x4xf32>
    %17 = tpu.matmul %7, %16, %cst_15 {dimension_numbers = #tpu.dot_dimension_numbers<[1], [0], [0], [1], [0, 0, 1, 1], [], []>} : vector<256x48xf32>, vector<48x4xf32>, vector<256x4xf32> -> vector<256x4xf32>
    %c1_16 = arith.constant 1 : index
    %c0_17 = arith.constant 0 : index
    %c0_18 = arith.constant 0 : index
    %18 = vector.load %arg5[%c1_16, %c0_17, %c0_18] : memref<6x1x4xf32, #tpu.memory_space<vmem>>, vector<1x1x4xf32>
    %19 = vector.shape_cast %18 : vector<1x1x4xf32> to vector<1x4xf32>
    %20 = vector.broadcast %19 : vector<1x4xf32> to vector<256x4xf32>
    %21 = arith.addf %17, %20 : vector<256x4xf32>
    %22 = tpu.concatenate %14, %21 in 0 : vector<256x4xf32>, vector<256x4xf32> -> vector<512x4xf32>
    %23 = vector.shape_cast %22 : vector<512x4xf32> to vector<8x64x4xf32>
    %c2 = arith.constant 2 : index
    %c0_19 = arith.constant 0 : index
    %c0_20 = arith.constant 0 : index
    %24 = vector.load %arg4[%c2, %c0_19, %c0_20] : memref<6x48x4xf32, #tpu.memory_space<vmem>>, vector<1x48x4xf32>
    %25 = vector.shape_cast %24 : vector<1x48x4xf32> to vector<48x4xf32>
    %cst_21 = arith.constant dense<0.000000e+00> : vector<256x4xf32>
    %26 = tpu.matmul %7, %25, %cst_21 {dimension_numbers = #tpu.dot_dimension_numbers<[1], [0], [0], [1], [0, 0, 1, 1], [], []>} : vector<256x48xf32>, vector<48x4xf32>, vector<256x4xf32> -> vector<256x4xf32>
    %c2_22 = arith.constant 2 : index
    %c0_23 = arith.constant 0 : index
    %c0_24 = arith.constant 0 : index
    %27 = vector.load %arg5[%c2_22, %c0_23, %c0_24] : memref<6x1x4xf32, #tpu.memory_space<vmem>>, vector<1x1x4xf32>
    %28 = vector.shape_cast %27 : vector<1x1x4xf32> to vector<1x4xf32>
    %29 = vector.broadcast %28 : vector<1x4xf32> to vector<256x4xf32>
    %30 = arith.addf %26, %29 : vector<256x4xf32>
    %c3 = arith.constant 3 : index
    %c0_25 = arith.constant 0 : index
    %c0_26 = arith.constant 0 : index
    %31 = vector.load %arg4[%c3, %c0_25, %c0_26] : memref<6x48x4xf32, #tpu.memory_space<vmem>>, vector<1x48x4xf32>
    %32 = vector.shape_cast %31 : vector<1x48x4xf32> to vector<48x4xf32>
    %cst_27 = arith.constant dense<0.000000e+00> : vector<256x4xf32>
    %33 = tpu.matmul %7, %32, %cst_27 {dimension_numbers = #tpu.dot_dimension_numbers<[1], [0], [0], [1], [0, 0, 1, 1], [], []>} : vector<256x48xf32>, vector<48x4xf32>, vector<256x4xf32> -> vector<256x4xf32>
    %c3_28 = arith.constant 3 : index
    %c0_29 = arith.constant 0 : index
    %c0_30 = arith.constant 0 : index
    %34 = vector.load %arg5[%c3_28, %c0_29, %c0_30] : memref<6x1x4xf32, #tpu.memory_space<vmem>>, vector<1x1x4xf32>
    %35 = vector.shape_cast %34 : vector<1x1x4xf32> to vector<1x4xf32>
    %36 = vector.broadcast %35 : vector<1x4xf32> to vector<256x4xf32>
    %37 = arith.addf %33, %36 : vector<256x4xf32>
    %38 = tpu.concatenate %30, %37 in 0 : vector<256x4xf32>, vector<256x4xf32> -> vector<512x4xf32>
    %39 = vector.shape_cast %38 : vector<512x4xf32> to vector<8x64x4xf32>
    %c4 = arith.constant 4 : index
    %c0_31 = arith.constant 0 : index
    %c0_32 = arith.constant 0 : index
    %40 = vector.load %arg4[%c4, %c0_31, %c0_32] : memref<6x48x4xf32, #tpu.memory_space<vmem>>, vector<1x48x4xf32>
    %41 = vector.shape_cast %40 : vector<1x48x4xf32> to vector<48x4xf32>
    %cst_33 = arith.constant dense<0.000000e+00> : vector<256x4xf32>
    %42 = tpu.matmul %7, %41, %cst_33 {dimension_numbers = #tpu.dot_dimension_numbers<[1], [0], [0], [1], [0, 0, 1, 1], [], []>} : vector<256x48xf32>, vector<48x4xf32>, vector<256x4xf32> -> vector<256x4xf32>
    %c4_34 = arith.constant 4 : index
    %c0_35 = arith.constant 0 : index
    %c0_36 = arith.constant 0 : index
    %43 = vector.load %arg5[%c4_34, %c0_35, %c0_36] : memref<6x1x4xf32, #tpu.memory_space<vmem>>, vector<1x1x4xf32>
    %44 = vector.shape_cast %43 : vector<1x1x4xf32> to vector<1x4xf32>
    %45 = vector.broadcast %44 : vector<1x4xf32> to vector<256x4xf32>
    %46 = arith.addf %42, %45 : vector<256x4xf32>
    %c5 = arith.constant 5 : index
    %c0_37 = arith.constant 0 : index
    %c0_38 = arith.constant 0 : index
    %47 = vector.load %arg4[%c5, %c0_37, %c0_38] : memref<6x48x4xf32, #tpu.memory_space<vmem>>, vector<1x48x4xf32>
    %48 = vector.shape_cast %47 : vector<1x48x4xf32> to vector<48x4xf32>
    %cst_39 = arith.constant dense<0.000000e+00> : vector<256x4xf32>
    %49 = tpu.matmul %7, %48, %cst_39 {dimension_numbers = #tpu.dot_dimension_numbers<[1], [0], [0], [1], [0, 0, 1, 1], [], []>} : vector<256x48xf32>, vector<48x4xf32>, vector<256x4xf32> -> vector<256x4xf32>
    %c5_40 = arith.constant 5 : index
    %c0_41 = arith.constant 0 : index
    %c0_42 = arith.constant 0 : index
    %50 = vector.load %arg5[%c5_40, %c0_41, %c0_42] : memref<6x1x4xf32, #tpu.memory_space<vmem>>, vector<1x1x4xf32>
    %51 = vector.shape_cast %50 : vector<1x1x4xf32> to vector<1x4xf32>
    %52 = vector.broadcast %51 : vector<1x4xf32> to vector<256x4xf32>
    %53 = arith.addf %49, %52 : vector<256x4xf32>
    %54 = tpu.concatenate %46, %53 in 0 : vector<256x4xf32>, vector<256x4xf32> -> vector<512x4xf32>
    %55 = vector.shape_cast %54 : vector<512x4xf32> to vector<8x64x4xf32>
    "tpu.trace_start"() <{level = 10 : i32, message = "bnd,bmd->bnm"}> : () -> ()
    %cst_43 = arith.constant dense<0.000000e+00> : vector<8x64x64xf32>
    %56 = tpu.matmul %23, %39, %cst_43 {dimension_numbers = #tpu.dot_dimension_numbers<[2], [2], [1], [1], [0, 0, 0, 1, 1, 1], [0], [0]>} : vector<8x64x4xf32>, vector<8x64x4xf32>, vector<8x64x64xf32> -> vector<8x64x64xf32>
    "tpu.trace_stop"() : () -> ()
    %c0_44 = arith.constant 0 : index
    %c0_45 = arith.constant 0 : index
    %57 = vector.load %arg6[%c0_44, %c0_45] : memref<64x64xf32, #tpu.memory_space<vmem>>, vector<64x64xf32>
    %58 = vector.shape_cast %57 : vector<64x64xf32> to vector<1x64x64xf32>
    %59 = vector.broadcast %58 : vector<1x64x64xf32> to vector<8x64x64xf32>
    %60 = arith.addf %56, %59 : vector<8x64x64xf32>
    %cst_46 = arith.constant dense<0xFF800000> : vector<8x64xf32>
    %61 = vector.multi_reduction <maximumf>, %60, %cst_46 [2] : vector<8x64x64xf32> to vector<8x64xf32>
    %62 = vector.shape_cast %61 : vector<8x64xf32> to vector<8x64x1xf32>
    %63 = vector.broadcast %62 : vector<8x64x1xf32> to vector<8x64x64xf32>
    %64 = arith.subf %60, %63 : vector<8x64x64xf32>
    %65 = math.exp %64 : vector<8x64x64xf32>
    %cst_47 = arith.constant dense<0.000000e+00> : vector<8x64xf32>
    %66 = vector.multi_reduction <add>, %65, %cst_47 [2] : vector<8x64x64xf32> to vector<8x64xf32>
    %67 = vector.shape_cast %66 : vector<8x64xf32> to vector<8x64x1xf32>
    %68 = tpu.reciprocal %67 {approx = true} : vector<8x64x1xf32> -> vector<8x64x1xf32>
    %69 = vector.broadcast %68 : vector<8x64x1xf32> to vector<8x64x64xf32>
    %70 = arith.mulf %65, %69 : vector<8x64x64xf32>
    "tpu.trace_start"() <{level = 10 : i32, message = "bnm,bmd->bnd"}> : () -> ()
    %cst_48 = arith.constant dense<0.000000e+00> : vector<8x64x4xf32>
    %71 = tpu.matmul %70, %55, %cst_48 {dimension_numbers = #tpu.dot_dimension_numbers<[2], [1], [1], [2], [0, 0, 0, 1, 1, 2], [0], [0]>} : vector<8x64x64xf32>, vector<8x64x4xf32>, vector<8x64x4xf32> -> vector<8x64x4xf32>
    "tpu.trace_stop"() : () -> ()
    %72 = vector.extract_strided_slice %71 {offsets = [0, 0, 0], sizes = [4, 64, 4], strides = [1, 1, 1]} : vector<8x64x4xf32> to vector<4x64x4xf32>
    %73 = vector.shape_cast %72 : vector<4x64x4xf32> to vector<256x4xf32>
    %74 = vector.extract_strided_slice %71 {offsets = [4, 0, 0], sizes = [4, 64, 4], strides = [1, 1, 1]} : vector<8x64x4xf32> to vector<4x64x4xf32>
    %75 = vector.shape_cast %74 : vector<4x64x4xf32> to vector<256x4xf32>
    %c0_49 = arith.constant 0 : index
    %c0_50 = arith.constant 0 : index
    %c0_51 = arith.constant 0 : index
    %76 = vector.load %arg7[%c0_49, %c0_50, %c0_51] : memref<2x4x8xf32, #tpu.memory_space<vmem>>, vector<1x4x8xf32>
    %77 = vector.shape_cast %76 : vector<1x4x8xf32> to vector<4x8xf32>
    %cst_52 = arith.constant dense<0.000000e+00> : vector<256x8xf32>
    %78 = tpu.matmul %73, %77, %cst_52 {dimension_numbers = #tpu.dot_dimension_numbers<[1], [0], [0], [1], [0, 0, 1, 1], [], []>} : vector<256x4xf32>, vector<4x8xf32>, vector<256x8xf32> -> vector<256x8xf32>
    %c1_53 = arith.constant 1 : index
    %c0_54 = arith.constant 0 : index
    %c0_55 = arith.constant 0 : index
    %79 = vector.load %arg7[%c1_53, %c0_54, %c0_55] : memref<2x4x8xf32, #tpu.memory_space<vmem>>, vector<1x4x8xf32>
    %80 = vector.shape_cast %79 : vector<1x4x8xf32> to vector<4x8xf32>
    %cst_56 = arith.constant dense<0.000000e+00> : vector<256x8xf32>
    %81 = tpu.matmul %75, %80, %cst_56 {dimension_numbers = #tpu.dot_dimension_numbers<[1], [0], [0], [1], [0, 0, 1, 1], [], []>} : vector<256x4xf32>, vector<4x8xf32>, vector<256x8xf32> -> vector<256x8xf32>
    %82 = arith.addf %78, %81 : vector<256x8xf32>
    %c0_57 = arith.constant 0 : index
    %c0_58 = arith.constant 0 : index
    %83 = vector.load %arg8[%c0_57, %c0_58] : memref<1x8xf32, #tpu.memory_space<vmem>>, vector<1x8xf32>
    %84 = vector.broadcast %83 : vector<1x8xf32> to vector<256x8xf32>
    %85 = arith.addf %82, %84 : vector<256x8xf32>
    %c0_59 = arith.constant 0 : index
    %c0_60 = arith.constant 0 : index
    %86 = vector.load %arg9[%c0_59, %c0_60] : memref<256x8xf32, #tpu.memory_space<vmem>>, vector<256x8xf32>
    tpu.vector_store %arg9[%c0_59, %c0_60], %85 {strides = array<i32>} : memref<256x8xf32, #tpu.memory_space<vmem>>, vector<256x8xf32>,
    return
  }
  func.func @transform_0(%arg0: i32) -> (i32, i32) {
    %c0_i32 = arith.constant 0 : i32
    %c0_i32_0 = arith.constant 0 : i32
    return %arg0, %c0_i32 : i32, i32
  }
  func.func @transform_1(%arg0: i32) -> (i32, i32) {
    %c0_i32 = arith.constant 0 : i32
    %c0_i32_0 = arith.constant 0 : i32
    %c0_i32_1 = arith.constant 0 : i32
    return %c0_i32, %c0_i32_0 : i32, i32
  }
  func.func @transform_2(%arg0: i32) -> (i32, i32) {
    %c0_i32 = arith.constant 0 : i32
    %c0_i32_0 = arith.constant 0 : i32
    %c0_i32_1 = arith.constant 0 : i32
    return %c0_i32, %c0_i32_0 : i32, i32
  }
  func.func @transform_3(%arg0: i32) -> (i32, i32, i32) {
    %c0_i32 = arith.constant 0 : i32
    %c0_i32_0 = arith.constant 0 : i32
    %c0_i32_1 = arith.constant 0 : i32
    %c0_i32_2 = arith.constant 0 : i32
    return %c0_i32, %c0_i32_0, %c0_i32_1 : i32, i32, i32
  }
  func.func @transform_4(%arg0: i32) -> (i32, i32, i32) {
    %c0_i32 = arith.constant 0 : i32
    %c0_i32_0 = arith.constant 0 : i32
    %c0_i32_1 = arith.constant 0 : i32
    %c0_i32_2 = arith.constant 0 : i32
    return %c0_i32, %c0_i32_0, %c0_i32_1 : i32, i32, i32
  }
  func.func @transform_5(%arg0: i32) -> (i32, i32) {
    %c0_i32 = arith.constant 0 : i32
    %c0_i32_0 = arith.constant 0 : i32
    %c0_i32_1 = arith.constant 0 : i32
    return %c0_i32, %c0_i32_0 : i32, i32
  }
  func.func @transform_6(%arg0: i32) -> (i32, i32, i32) {
    %c0_i32 = arith.constant 0 : i32
    %c0_i32_0 = arith.constant 0 : i32
    %c0_i32_1 = arith.constant 0 : i32
    %c0_i32_2 = arith.constant 0 : i32
    return %c0_i32, %c0_i32_0, %c0_i32_1 : i32, i32, i32
  }
  func.func @transform_7(%arg0: i32) -> (i32, i32) {
    %c0_i32 = arith.constant 0 : i32
    %c0_i32_0 = arith.constant 0 : i32
    %c0_i32_1 = arith.constant 0 : i32
    return %c0_i32, %c0_i32_0 : i32, i32
  }
  func.func @transform_8(%arg0: i32) -> (i32, i32) {
    %c0_i32 = arith.constant 0 : i32
    %c0_i32_0 = arith.constant 0 : i32
    return %arg0, %c0_i32 : i32, i32
  }
}

</mosaic_0001>

<bundles_post_ra>
// kernel: co_window_attention.1
= control target key start
LH: loop header
LB: loop body
LE: loop exit
PB: predicated region body
PF: predicated region fallthrough
CT: control target
= control target key end

     0   :  { %s8809_s27 = smov 0   ;;  %s11419_s0 = inlined_call_operand.vmem [shape: f32[512,144], index: 0, kind: input, shape index: {}]   ;;  %s11420_s1 = inlined_call_operand.vmem [shape: f32[144,48], index: 1, kind: input, shape index: {}]   ;;  %s11421_s2 = inlined_call_operand.vmem [shape: f32[1,48], index: 2, kind: input, shape index: {}]   ;;  %s11422_s3 = inlined_call_operand.vmem [shape: f32[6,48,4], index: 3, kind: input, shape index: {}]   ;;  %s11423_s4 = inlined_call_operand.vmem [shape: f32[6,1,4], index: 4, kind: input, shape index: {}]   ;;  %s11424_s5 = inlined_call_operand.vmem [shape: f32[64,64], index: 5, kind: input, shape index: {}]   ;;  %s11425_s6 = inlined_call_operand.vmem [shape: f32[2,4,8], index: 6, kind: input, shape index: {}]   ;;  %s11426_s7 = inlined_call_operand.vmem [shape: f32[1,8], index: 7, kind: input, shape index: {}]   ;;  %s11427_s8 = inlined_call_operand.vmem [shape: f32[512,8], index: 8, kind: output, shape index: {}]  }
   0x1 LB: > { %s6040_s28 = sadd.s32 4294967295, %s8761_s27   ;;  %p6044_p0 = scmp.ge.s32.totalorder %s8761_s27, 1  ;;  %s8761_s27 = sphi %s8809_s27, %s18_s27  }
   0x2   : > { %p264_p1 = scmp.lt.s32.totalorder %s8761_s27, 3 }
   0x4   : > { %p265_p2 = pnand %p6044_p0, %p264_p1 }
   0x6   : > { %268 = sbr.rel (%p265_p2) target bundleno = 1817 (0x719), region = 52 }
   0xd   : > { %v376_v0 = vld [vmem:[%s11420_s1] sm:$0xff]  ;;  %v377_v1 = vld [vmem:[%s11420_s1 + $0x8] sm:$0xff]  ;;  %v378_v2 = vld [vmem:[%s11420_s1 + $0x10] sm:$0xff]  ;;  %s6045_s13 = sshll.u32 %s6040_s28, 5  ;;  %v8763_v3 = vmov 0.0|0.0   ;;  %vm401_vm0 = vcmask 130048  }
   0xe   : > { %8037 = vmatprep.subr.bf16.mxu0 %v8763_v3  ;;  %v8038_v4 = vpack.c.bf16 %v377_v1, %v376_v0  ;;  %v379_v5 = vld [vmem:[%s11420_s1 + $0x18] sm:$0xff]  ;;  %p300_p3 = scmp.lt.s32.totalorder %s6045_s13, 63  ;;  %v380_v7 = vld [vmem:[%s11420_s1 + $0x20] sm:$0xff]  ;;  %v381_v8 = vld [vmem:[%s11420_s1 + $0x28] sm:$0xff]  ;;  %vm768_vm1 = vcmask 392192   ;;  %vm2298_vm2 = vcmask 31744  }
   0xf   : > { %v8041_v6 = vpack.c.bf16 %v379_v5, %v378_v2  ;;  %v8044_v9 = vpack.c.bf16 %v381_v8, %v380_v7  ;;  %v382_v11 = vld [vmem:[%s11420_s1 + $0x30] sm:$0xff]  ;;  %v383_v12 = vld [vmem:[%s11420_s1 + $0x38] sm:$0xff]  ;;  %v384_v14 = vld [vmem:[%s11420_s1 + $0x40] sm:$0xff]  ;;  %vm3523_vm4 = vcmask 523264   ;;  %vm5359_vm5 = vcmask 1043456  }
  0x10   : > { %8039 = vmatpush1.bf16.msra.mxu0 %v8038_v4  ;;  %s11652_s13 = smov (!%p300_p3, %s6045_s13), 63  ;;  %v8047_v13 = vpack.c.bf16 %v383_v12, %v382_v11  ;;  %v385_v15 = vld [vmem:[%s11420_s1 + $0x48] sm:$0xff]  ;;  %v386_v17 = vld [vmem:[%s11420_s1 + $0x50] sm:$0xff]  ;;  %v387_v18 = vld [vmem:[%s11420_s1 + $0x58] sm:$0xff]  ;;  %vm5951_vm6 = vcmask 64512  }
  0x11   : > { %8040 = vmatprep.subr.bf16.mxu0 %v8763_v3  ;;  %s6578_s20 = sshll.u32 %s11652_s13, 4  ;;  %v8050_v16 = vpack.c.bf16 %v385_v15, %v384_v14  ;;  %v8053_v19 = vpack.c.bf16 %v387_v18, %v386_v17  ;;  %v388_v20 = vld [vmem:[%s11420_s1 + $0x60] sm:$0xff]  ;;  %v389_v21 = vld [vmem:[%s11420_s1 + $0x68] sm:$0xff]  ;;  %v390_v23 = vld [vmem:[%s11420_s1 + $0x70] sm:$0xff]  ;;  %s6049_s16 = sshll.u32 %s11652_s13, 3 }
  0x12   : > { %s8841_s23 = scalar_lea.vmem %s11419_s0, %s6578_s20  ;;  %v8056_v22 = vpack.c.bf16 %v389_v21, %v388_v20  ;;  %v391_v24 = vld [vmem:[%s11420_s1 + $0x78] sm:$0xff]  ;;  %v392_v26 = vld [vmem:[%s11420_s1 + $0x80] sm:$0xff]  ;;  %v393_v27 = vld [vmem:[%s11420_s1 + $0x88] sm:$0xff]  ;;  %s11318_s21 = scalar_lea.vmem %s11427_s8, %s6049_s16 }
  0x13   : > { %v313_v10 = vld [vmem:[%s8841_s23 + $0x8] sm:$0xff]  ;;  %v8059_v25 = vpack.c.bf16 %v391_v24, %v390_v23  ;;  %v8062_v28 = vpack.c.bf16 %v393_v27, %v392_v26  ;;  %v755_v29 = vld [vmem:[%s11422_s3] sm:$0xff]  ;;  %v6196_v31 = vld [vmem:[%s11422_s3 + $0x90] sm:$0xff] }
  0x14   : > { %8042 = vmatpush1.bf16.msra.mxu0 %v8041_v6  ;;  %6051 = vmatprep.mubr.msk.f32.mxu0 %vm401_vm0, %v313_v10  ;;  %v756_v30 = vld [vmem:[%s11422_s3 + $0x8] sm:$0xff]  ;;  %v312_v32 = vld [vmem:[%s8841_s23] sm:$0xff]  ;;  %v6197_v34 = vld [vmem:[%s11422_s3 + $0x98] sm:$0xff] }
  0x15   : > { %8043 = vmatprep.subr.bf16.mxu0 %v8763_v3  ;;  %v8064_v33 = vpack.c.bf16 %v756_v30, %v755_v29  ;;  %v315_v35 = vld [vmem:[%s8841_s23 + $0x18] sm:$0xff]  ;;  %v8100_v36 = vpack.c.bf16 %v6197_v34, %v6196_v31  ;;  %v314_v37 = vld [vmem:[%s8841_s23 + $0x10] sm:$0xff]  ;;  %v317_v38 = vld [vmem:[%s8841_s23 + $0x28] sm:$0xff] }
  0x16   : > { %v316_v39 = vld [vmem:[%s8841_s23 + $0x20] sm:$0xff]  ;;  %v319_v40 = vld [vmem:[%s8841_s23 + $0x38] sm:$0xff]  ;;  %v318_v41 = vld [vmem:[%s8841_s23 + $0x30] sm:$0xff] }
  0x17   : > { %8065 = vmatprep.subr.bf16.mxu1 %v8064_v33  ;;  %v321_v42 = vld [vmem:[%s8841_s23 + $0x48] sm:$0xff]  ;;  %v320_v43 = vld [vmem:[%s8841_s23 + $0x40] sm:$0xff]  ;;  %v323_v44 = vld [vmem:[%s8841_s23 + $0x58] sm:$0xff] }
  0x18   : > { %8045 = vmatpush1.bf16.msra.mxu0 %v8044_v9  ;;  %8067 = vmatpush3.bf16.msra.mxu1 %v8064_v33  ;;  %v322_v45 = vld [vmem:[%s8841_s23 + $0x50] sm:$0xff]  ;;  %v325_v46 = vld [vmem:[%s8841_s23 + $0x68] sm:$0xff]  ;;  %v324_v47 = vld [vmem:[%s8841_s23 + $0x60] sm:$0xff] }
  0x19   : > { %8046 = vmatprep.subr.bf16.mxu0 %v8763_v3  ;;  %v327_v48 = vld [vmem:[%s8841_s23 + $0x78] sm:$0xff]  ;;  %v326_v49 = vld [vmem:[%s8841_s23 + $0x70] sm:$0xff]  ;;  %v329_v50 = vld [vmem:[%s8841_s23 + $0x88] sm:$0xff] }
  0x1a   : > { %v328_v51 = vld [vmem:[%s8841_s23 + $0x80] sm:$0xff]  ;;  %v331_v52 = vld [vmem:[%s8841_s23 + $0x98] sm:$0xff]  ;;  %v330_v53 = vld [vmem:[%s8841_s23 + $0x90] sm:$0xff] }
  0x1b   : > { %v333_v54 = vld [vmem:[%s8841_s23 + $0xa8] sm:$0xff]  ;;  %v332_v55 = vld [vmem:[%s8841_s23 + $0xa0] sm:$0xff]  ;;  %v335_v56 = vld [vmem:[%s8841_s23 + $0xb8] sm:$0xff] }
  0x1c   : > { %8048 = vmatpush1.bf16.msra.mxu0 %v8047_v13  ;;  %v334_v57 = vld [vmem:[%s8841_s23 + $0xb0] sm:$0xff]  ;;  %v337_v58 = vld [vmem:[%s8841_s23 + $0xc8] sm:$0xff]  ;;  %v336_v59 = vld [vmem:[%s8841_s23 + $0xc0] sm:$0xff] }
  0x1d   : > { %8049 = vmatprep.subr.bf16.mxu0 %v8763_v3  ;;  %v339_v60 = vld [vmem:[%s8841_s23 + $0xd8] sm:$0xff]  ;;  %v338_v61 = vld [vmem:[%s8841_s23 + $0xd0] sm:$0xff]  ;;  %v341_v62 = vld [vmem:[%s8841_s23 + $0xe8] sm:$0xff] }
  0x1e   : > { %v340_v63 = vld [vmem:[%s8841_s23 + $0xe0] sm:$0xff]  ;;  %v343_v0 = vld [vmem:[%s8841_s23 + $0xf8] sm:$0xff]  ;;  %v342_v1 = vld [vmem:[%s8841_s23 + $0xf0] sm:$0xff] }
  0x1f   : > { %v345_v2 = vld [vmem:[%s8841_s23 + $0x108] sm:$0xff]  ;;  %v347_v4 = vld [vmem:[%s8841_s23 + $0x118] sm:$0xff]  ;;  %v346_v5 = vld [vmem:[%s8841_s23 + $0x110] sm:$0xff] }
  0x20   : > { %8051 = vmatpush1.bf16.msra.mxu0 %v8050_v16  ;;  %v349_v6 = vld [vmem:[%s8841_s23 + $0x128] sm:$0xff]  ;;  %v348_v7 = vld [vmem:[%s8841_s23 + $0x120] sm:$0xff]  ;;  %v351_v8 = vld [vmem:[%s8841_s23 + $0x138] sm:$0xff] }
  0x21   : > { %8052 = vmatprep.subr.bf16.mxu0 %v8763_v3  ;;  %v350_v9 = vld [vmem:[%s8841_s23 + $0x130] sm:$0xff]  ;;  %v353_v10 = vld [vmem:[%s8841_s23 + $0x148] sm:$0xff]  ;;  %v352_v11 = vld [vmem:[%s8841_s23 + $0x140] sm:$0xff] }
  0x22   : > { %v355_v12 = vld [vmem:[%s8841_s23 + $0x158] sm:$0xff]  ;;  %v354_v13 = vld [vmem:[%s8841_s23 + $0x150] sm:$0xff]  ;;  %v6198_v16 = vld [vmem:[%s11422_s3 + $0xa0] sm:$0xff] }
  0x23   : > { %v757_v14 = vld [vmem:[%s11422_s3 + $0x10] sm:$0xff]  ;;  %v758_v15 = vld [vmem:[%s11422_s3 + $0x18] sm:$0xff]  ;;  %v357_v17 = vld [vmem:[%s8841_s23 + $0x168] sm:$0xff] }
  0x24   : > { %8054 = vmatpush1.bf16.msra.mxu0 %v8053_v19  ;;  %v8068_v18 = vpack.c.bf16 %v758_v15, %v757_v14  ;;  %v6199_v19 = vld [vmem:[%s11422_s3 + $0xa8] sm:$0xff]  ;;  %v356_v21 = vld [vmem:[%s8841_s23 + $0x160] sm:$0xff]  ;;  %v6200_v24 = vld [vmem:[%s11422_s3 + $0xb0] sm:$0xff] }
  0x25   : > { %8055 = vmatprep.subr.bf16.mxu0 %v8763_v3  ;;  %v8104_v20 = vpack.c.bf16 %v6199_v19, %v6198_v16  ;;  %v760_v23 = vld [vmem:[%s11422_s3 + $0x28] sm:$0xff]  ;;  %v6201_v27 = vld [vmem:[%s11422_s3 + $0xb8] sm:$0xff]  ;;  %v358_v29 = vld [vmem:[%s8841_s23 + $0x170] sm:$0xff] }
  0x26   : > { %8069 = vmatprep.subr.bf16.mxu1 %v8068_v18  ;;  %v361_v30 = vld [vmem:[%s8841_s23 + $0x188] sm:$0xff]  ;;  %v360_v31 = vld [vmem:[%s8841_s23 + $0x180] sm:$0xff]  ;;  %v362_v33 = vld [vmem:[%s8841_s23 + $0x190] sm:$0xff] }
  0x27   : > { %8071 = vmatpush3.bf16.msra.mxu1 %v8068_v18  ;;  %v365_v34 = vld [vmem:[%s8841_s23 + $0x1a8] sm:$0xff]  ;;  %vm9871_vm3 = vmpackc.low %vm2298_vm2, %vm2298_vm2 }
  0x28   : > { %8057 = vmatpush1.bf16.msra.mxu0 %v8056_v22  ;;  %v759_v22 = vld [vmem:[%s11422_s3 + $0x20] sm:$0xff] }
  0x29   : > { %8058 = vmatprep.subr.bf16.mxu0 %v8763_v3  ;;  %v8072_v26 = vpack.c.bf16 %v760_v23, %v759_v22 }
  0x2b   : > { %8073 = vmatprep.subr.bf16.mxu1 %v8072_v26 }
  0x2c   : > { %8060 = vmatpush1.bf16.msra.mxu0 %v8059_v25  ;;  %v359_v25 = vld [vmem:[%s8841_s23 + $0x178] sm:$0xff]  ;;  %8075 = vmatpush3.bf16.msra.mxu1 %v8072_v26 }
  0x2d   : > { %8061 = vmatprep.subr.bf16.mxu0 %v8763_v3  ;;  %v344_v3 = vld [vmem:[%s8841_s23 + $0x100] sm:$0xff] }
  0x30   : > { %8063 = vmatpush1.bf16.msra.mxu0 %v8062_v28  ;;  %v8108_v28 = vpack.c.bf16 %v6201_v27, %v6200_v24 }
  0x31   : > { %8101 = vmatprep.subr.bf16.mxu0 %v8100_v36 }
  0x33   : > { %563 = vmatmul.mubr.f32.vlgmr.msra.gmra.mrb[0].mxu0 %v312_v32  ;;  %v363_v32 = vld [vmem:[%s8841_s23 + $0x198] sm:$0xff] }
  0x34   : > { %6052 = vmatprep.mubr.msk.f32.mxu0 %vm401_vm0, %v315_v35  ;;  %8103 = vmatpush3.bf16.msra.mxu0 %v8100_v36  ;;  %v364_v35 = vld [vmem:[%s8841_s23 + $0x1a0] sm:$0xff]  ;;  %v367_v36 = vld [vmem:[%s8841_s23 + $0x1b8] sm:$0xff] }
  0x35   : > { %8105 = vmatprep.subr.bf16.mxu0 %v8104_v20 }
  0x37   : > { %568 = vmatmul.mubr.f32.gmra.mrb[2].mxu0 %v314_v37  ;;  %v366_v37 = vld [vmem:[%s8841_s23 + $0x1b0] sm:$0xff] }
  0x38   : > { %6053 = vmatprep.mubr.msk.f32.mxu0 %vm401_vm0, %v317_v38  ;;  %8107 = vmatpush3.bf16.msra.mxu0 %v8104_v20  ;;  %v369_v38 = vld [vmem:[%s8841_s23 + $0x1c8] sm:$0xff] }
  0x39   : > { %8109 = vmatprep.subr.bf16.mxu0 %v8108_v28 }
  0x3b   : > { %573 = vmatmul.mubr.f32.gmra.mrb[4].mxu0 %v316_v39  ;;  %v368_v39 = vld [vmem:[%s8841_s23 + $0x1c0] sm:$0xff] }
  0x3c   : > { %6054 = vmatprep.mubr.msk.f32.mxu0 %vm401_vm0, %v319_v40  ;;  %8111 = vmatpush3.bf16.msra.mxu0 %v8108_v28  ;;  %v371_v40 = vld [vmem:[%s8841_s23 + $0x1d8] sm:$0xff] }
  0x3f   : > { %578 = vmatmul.mubr.f32.gmra.mrb[6].mxu0 %v318_v41  ;;  %v370_v41 = vld [vmem:[%s8841_s23 + $0x1d0] sm:$0xff] }
  0x40   : > { %6055 = vmatprep.mubr.msk.f32.mxu0 %vm401_vm0, %v321_v42  ;;  %v373_v42 = vld [vmem:[%s8841_s23 + $0x1e8] sm:$0xff] }
  0x43   : > { %583 = vmatmul.mubr.f32.gmra.mrb[8].mxu0 %v320_v43  ;;  %v372_v43 = vld [vmem:[%s8841_s23 + $0x1e0] sm:$0xff] }
  0x44   : > { %6056 = vmatprep.mubr.msk.f32.mxu0 %vm401_vm0, %v323_v44  ;;  %v375_v44 = vld [vmem:[%s8841_s23 + $0x1f8] sm:$0xff] }
  0x47   : > { %588 = vmatmul.mubr.f32.gmra.mrb[10].mxu0 %v322_v45  ;;  %v374_v45 = vld [vmem:[%s8841_s23 + $0x1f0] sm:$0xff] }
  0x48   : > { %6057 = vmatprep.mubr.msk.f32.mxu0 %vm401_vm0, %v325_v46  ;;  %v6116_v46 = vld [vmem:[%s11422_s3 + $0x30] sm:$0xff] }
  0x4b   : > { %593 = vmatmul.mubr.f32.gmra.mrb[12].mxu0 %v324_v47  ;;  %v6117_v47 = vld [vmem:[%s11422_s3 + $0x38] sm:$0xff] }
  0x4c   : > { %6058 = vmatprep.mubr.msk.f32.mxu0 %vm401_vm0, %v327_v48  ;;  %v8076_v48 = vpack.c.bf16 %v6117_v47, %v6116_v46 }
  0x4e   : > { %8077 = vmatprep.subr.bf16.mxu1 %v8076_v48 }
  0x4f   : > { %598 = vmatmul.mubr.f32.gmra.mrb[14].mxu0 %v326_v49  ;;  %v6276_v49 = vld [vmem:[%s11422_s3 + $0xf0] sm:$0xff] }
  0x50   : > { %6059 = vmatprep.mubr.msk.f32.mxu0 %vm401_vm0, %v329_v50  ;;  %v6277_v50 = vld [vmem:[%s11422_s3 + $0xf8] sm:$0xff] }
  0x53   : > { %603 = vmatmul.mubr.f32.gmra.mrb[16].mxu0 %v328_v51  ;;  %v8124_v51 = vpack.c.bf16 %v6277_v50, %v6276_v49 }
  0x54   : > { %6060 = vmatprep.mubr.msk.f32.mxu0 %vm401_vm0, %v331_v52  ;;  %v9026_v52 = vld [vmem:[%s11421_s2] ss:$0 sm:$0xff] }
  0x55   : > { %8125 = vmatprep.subr.bf16.mxu0 %v8124_v51 }
  0x57   : > { %608 = vmatmul.mubr.f32.gmra.mrb[18].mxu0 %v330_v53 }
  0x58   : > { %6061 = vmatprep.mubr.msk.f32.mxu0 %vm401_vm0, %v333_v54 }
  0x5b   : > { %613 = vmatmul.mubr.f32.gmra.mrb[20].mxu0 %v332_v55 }
  0x5c   : > { %6062 = vmatprep.mubr.msk.f32.mxu0 %vm401_vm0, %v335_v56 }
  0x5f   : > { %618 = vmatmul.mubr.f32.gmra.mrb[22].mxu0 %v334_v57  ;;  %v6118_v57 = vld [vmem:[%s11422_s3 + $0x40] sm:$0xff] }
  0x60   : > { %6063 = vmatprep.mubr.msk.f32.mxu0 %vm401_vm0, %v337_v58 }
  0x63   : > { %623 = vmatmul.mubr.f32.gmra.mrb[24].mxu0 %v336_v59  ;;  %v6119_v59 = vld [vmem:[%s11422_s3 + $0x48] sm:$0xff] }
  0x64   : > { %6064 = vmatprep.mubr.msk.f32.mxu0 %vm401_vm0, %v339_v60  ;;  %v6278_v60 = vld [vmem:[%s11422_s3 + $0x100] sm:$0xff] }
  0x67   : > { %628 = vmatmul.mubr.f32.gmra.mrb[26].mxu0 %v338_v61  ;;  %v6279_v61 = vld [vmem:[%s11422_s3 + $0x108] sm:$0xff] }
  0x68   : > { %6065 = vmatprep.mubr.msk.f32.mxu0 %vm401_vm0, %v341_v62 }
  0x6b   : > { %633 = vmatmul.mubr.f32.gmra.mrb[28].mxu0 %v340_v63 }
  0x6c   : > { %6066 = vmatprep.mubr.msk.f32.mxu0 %vm401_vm0, %v343_v0 }
  0x6f   : > { %638 = vmatmul.mubr.f32.gmra.mrb[30].mxu0 %v342_v1  ;;  %v8080_v1 = vpack.c.bf16 %v6119_v59, %v6118_v57 }
  0x70   : > { %6067 = vmatprep.mubr.msk.f32.mxu0 %vm401_vm0, %v345_v2  ;;  %v8128_v2 = vpack.c.bf16 %v6279_v61, %v6278_v60 }
  0x73   : > { %643 = vmatmul.mubr.f32.gmra.mrb[32].mxu0 %v344_v3  ;;  %v6120_v3 = vld [vmem:[%s11422_s3 + $0x50] sm:$0xff] }
  0x74   : > { %6068 = vmatprep.mubr.msk.f32.mxu0 %vm401_vm0, %v347_v4 }
  0x77   : > { %648 = vmatmul.mubr.f32.gmra.mrb[34].mxu0 %v346_v5  ;;  %v6121_v5 = vld [vmem:[%s11422_s3 + $0x58] sm:$0xff] }
  0x78   : > { %6069 = vmatprep.mubr.msk.f32.mxu0 %vm401_vm0, %v349_v6  ;;  %v6280_v6 = vld [vmem:[%s11422_s3 + $0x110] sm:$0xff] }
  0x7b   : > { %653 = vmatmul.mubr.f32.gmra.mrb[36].mxu0 %v348_v7  ;;  %v6281_v7 = vld [vmem:[%s11422_s3 + $0x118] sm:$0xff] }
  0x7c   : > { %6070 = vmatprep.mubr.msk.f32.mxu0 %vm401_vm0, %v351_v8 }
  0x7f   : > { %658 = vmatmul.mubr.f32.gmra.mrb[38].mxu0 %v350_v9 }
  0x80   : > { %6071 = vmatprep.mubr.msk.f32.mxu0 %vm401_vm0, %v353_v10 }
  0x83   : > { %663 = vmatmul.mubr.f32.gmra.mrb[40].mxu0 %v352_v11  ;;  %v8084_v11 = vpack.c.bf16 %v6121_v5, %v6120_v3 }
  0x84   : > { %6072 = vmatprep.mubr.msk.f32.mxu0 %vm401_vm0, %v355_v12  ;;  %v8132_v12 = vpack.c.bf16 %v6281_v7, %v6280_v6 }
  0x87   : > { %668 = vmatmul.mubr.f32.gmra.mrb[42].mxu0 %v354_v13 }
  0x88   : > { %6073 = vmatprep.mubr.msk.f32.mxu0 %vm401_vm0, %v357_v17 }
  0x8b   : > { %673 = vmatmul.mubr.f32.gmra.mrb[44].mxu0 %v356_v21 }
  0x8c   : > { %6074 = vmatprep.mubr.msk.f32.mxu0 %vm401_vm0, %v359_v25 }
  0x8f   : > { %678 = vmatmul.mubr.f32.gmra.mrb[46].mxu0 %v358_v29 }
  0x90   : > { %6075 = vmatprep.mubr.msk.f32.mxu0 %vm401_vm0, %v361_v30 }
  0x93   : > { %683 = vmatmul.mubr.f32.gmra.mrb[48].mxu0 %v360_v31 }
  0x94   : > { %6076 = vmatprep.mubr.msk.f32.mxu0 %vm401_vm0, %v363_v32 }
  0x97   : > { %688 = vmatmul.mubr.f32.gmra.mrb[50].mxu0 %v362_v33 }
  0x98   : > { %6077 = vmatprep.mubr.msk.f32.mxu0 %vm401_vm0, %v365_v34 }
  0x9b   : > { %693 = vmatmul.mubr.f32.gmra.mrb[52].mxu0 %v364_v35 }
  0x9c   : > { %6078 = vmatprep.mubr.msk.f32.mxu0 %vm401_vm0, %v367_v36 }
  0x9f   : > { %698 = vmatmul.mubr.f32.gmra.mrb[54].mxu0 %v366_v37 }
  0xa0   : > { %6079 = vmatprep.mubr.msk.f32.mxu0 %vm401_vm0, %v369_v38 }
  0xa3   : > { %703 = vmatmul.mubr.f32.gmra.mrb[56].mxu0 %v368_v39 }
  0xa4   : > { %6080 = vmatprep.mubr.msk.f32.mxu0 %vm401_vm0, %v371_v40  ;;  %v6156_v40 = vld [vmem:[%s11422_s3 + $0x60] sm:$0xff] }
  0xa7   : > { %708 = vmatmul.mubr.f32.gmra.mrb[58].mxu0 %v370_v41  ;;  %v6157_v41 = vld [vmem:[%s11422_s3 + $0x68] sm:$0xff] }
  0xa8   : > { %6081 = vmatprep.mubr.msk.f32.mxu0 %vm401_vm0, %v373_v42  ;;  %v9122_v42 = vpack.c.bf16 %v6157_v41, %v6156_v40 }
  0xab   : > { %713 = vmatmul.mubr.f32.gmra.mrb[60].mxu0 %v372_v43 }
  0xac   : > { %6082 = vmatprep.mubr.msk.f32.mxu0 %vm401_vm0, %v375_v44 }
  0xaf   : > { %718 = vmatmul.mubr.f32.gmra.mrb[62].mxu0 %v374_v45 }
 0x106   : > { %v564_v53 = vpop.f32.mrb[0].mxu0 }
 0x107   : > { %v565_v54 = vadd.f32 %v9026_v52, %v564_v53  ;;  %v566_v55 = vpop.f32.mrb[1].mxu0 }
 0x109   : > { %v9029_v56 = vmax.f32 %v565_v54, 0.0 }
 0x10a   : > { %v569_v58 = vpop.f32.mrb[2].mxu0 }
 0x10b   : > { %v570_v62 = vadd.f32 %v9026_v52, %v569_v58  ;;  %v571_v63 = vpop.f32.mrb[3].mxu0  ;;  %7141 = vmatprep.mubr.msk.f32.mxu1 %vm768_vm1, %v9029_v56  ;;  %7321 = vmatprep.mubr.msk.f32.mxu0 %vm768_vm1, %v9029_v56 }
 0x10d   : > { %v9048_v0 = vmax.f32 %v570_v62, 0.0 }
 0x10e   : > { %v574_v4 = vpop.f32.mrb[4].mxu0 }
 0x10f   : > { %v575_v8 = vadd.f32 %v9026_v52, %v574_v4  ;;  %v576_v9 = vpop.f32.mrb[5].mxu0  ;;  %7142 = vmatmul.mubr.msk.f32.vlgmr.msra.gmra.mrb[0].mxu1 %vm768_vm1, %v9048_v0  ;;  %7322 = vmatmul.mubr.msk.f32.vlgmr.msra.gmra.mrb[64].mxu0 %vm768_vm1, %v9048_v0 }
 0x110   : > { %8079 = vmatpush3.bf16.msra.mxu1 %v8076_v48  ;;  %8127 = vmatpush3.bf16.msra.mxu0 %v8124_v51 }
 0x111   : > { %v9067_v10 = vmax.f32 %v575_v8, 0.0  ;;  %8081 = vmatprep.subr.bf16.mxu1 %v8080_v1  ;;  %8129 = vmatprep.subr.bf16.mxu0 %v8128_v2 }
 0x112   : > { %v579_v13 = vpop.f32.mrb[6].mxu0 }
 0x113   : > { %v580_v14 = vadd.f32 %v9026_v52, %v579_v13  ;;  %v581_v15 = vpop.f32.mrb[7].mxu0  ;;  %7144 = vmatprep.mubr.msk.f32.mxu1 %vm768_vm1, %v9067_v10  ;;  %7324 = vmatprep.mubr.msk.f32.mxu0 %vm768_vm1, %v9067_v10 }
 0x114   : > { %8083 = vmatpush3.bf16.msra.mxu1 %v8080_v1  ;;  %8131 = vmatpush3.bf16.msra.mxu0 %v8128_v2 }
 0x115   : > { %v9074_v16 = vmax.f32 %v580_v14, 0.0  ;;  %8085 = vmatprep.subr.bf16.mxu1 %v8084_v11  ;;  %8133 = vmatprep.subr.bf16.mxu0 %v8132_v12 }
 0x116   : > { %v584_v17 = vpop.f32.mrb[8].mxu0 }
 0x117   : > { %v585_v18 = vadd.f32 %v9026_v52, %v584_v17  ;;  %v586_v19 = vpop.f32.mrb[9].mxu0  ;;  %7145 = vmatmul.mubr.msk.f32.gmra.mrb[2].mxu1 %vm768_vm1, %v9074_v16  ;;  %7325 = vmatmul.mubr.msk.f32.gmra.mrb[66].mxu0 %vm768_vm1, %v9074_v16 }
 0x118   : > { %8087 = vmatpush3.bf16.msra.mxu1 %v8084_v11  ;;  %8135 = vmatpush3.bf16.msra.mxu0 %v8132_v12 }
 0x119   : > { %v9081_v20 = vmax.f32 %v585_v18, 0.0  ;;  %8089 = vmatprep.subr.bf16.mxu1 %v9122_v42 }
 0x11a   : > { %v589_v21 = vpop.f32.mrb[10].mxu0 }
 0x11b   : > { %v590_v22 = vadd.f32 %v9026_v52, %v589_v21  ;;  %v591_v23 = vpop.f32.mrb[11].mxu0  ;;  %7147 = vmatprep.mubr.msk.f32.mxu1 %vm768_vm1, %v9081_v20  ;;  %7327 = vmatprep.mubr.msk.f32.mxu0 %vm768_vm1, %v9081_v20 }
 0x11d   : > { %v9088_v24 = vmax.f32 %v590_v22, 0.0 }
 0x11e   : > { %v594_v25 = vpop.f32.mrb[12].mxu0 }
 0x11f   : > { %v595_v26 = vadd.f32 %v9026_v52, %v594_v25  ;;  %v596_v27 = vpop.f32.mrb[13].mxu0  ;;  %7148 = vmatmul.mubr.msk.f32.gmra.mrb[4].mxu1 %vm768_vm1, %v9088_v24  ;;  %7328 = vmatmul.mubr.msk.f32.gmra.mrb[68].mxu0 %vm768_vm1, %v9088_v24 }
 0x121   : > { %v9095_v28 = vmax.f32 %v595_v26, 0.0 }
 0x122   : > { %v599_v29 = vpop.f32.mrb[14].mxu0 }
 0x123   : > { %v600_v30 = vadd.f32 %v9026_v52, %v599_v29  ;;  %v601_v31 = vpop.f32.mrb[15].mxu0  ;;  %7150 = vmatprep.mubr.msk.f32.mxu1 %vm768_vm1, %v9095_v28  ;;  %7330 = vmatprep.mubr.msk.f32.mxu0 %vm768_vm1, %v9095_v28 }
 0x125   : > { %v9102_v32 = vmax.f32 %v600_v30, 0.0 }
 0x126   : > { %v604_v33 = vpop.f32.mrb[16].mxu0 }
 0x127   : > { %v605_v34 = vadd.f32 %v9026_v52, %v604_v33  ;;  %v606_v35 = vpop.f32.mrb[17].mxu0  ;;  %7151 = vmatmul.mubr.msk.f32.gmra.mrb[6].mxu1 %vm768_vm1, %v9102_v32  ;;  %7331 = vmatmul.mubr.msk.f32.gmra.mrb[70].mxu0 %vm768_vm1, %v9102_v32 }
 0x129   : > { %v9109_v36 = vmax.f32 %v605_v34, 0.0 }
 0x12a   : > { %v609_v37 = vpop.f32.mrb[18].mxu0 }
 0x12b   : > { %v610_v38 = vadd.f32 %v9026_v52, %v609_v37  ;;  %v611_v39 = vpop.f32.mrb[19].mxu0  ;;  %7153 = vmatprep.mubr.msk.f32.mxu1 %vm768_vm1, %v9109_v36  ;;  %7333 = vmatprep.mubr.msk.f32.mxu0 %vm768_vm1, %v9109_v36 }
 0x12d   : > { %v9124_v43 = vmax.f32 %v610_v38, 0.0 }
 0x12e   : > { %v614_v44 = vpop.f32.mrb[20].mxu0 }
 0x12f   : > { %v615_v45 = vadd.f32 %v9026_v52, %v614_v44  ;;  %v616_v46 = vpop.f32.mrb[21].mxu0  ;;  %7154 = vmatmul.mubr.msk.f32.gmra.mrb[8].mxu1 %vm768_vm1, %v9124_v43  ;;  %7334 = vmatmul.mubr.msk.f32.gmra.mrb[72].mxu0 %vm768_vm1, %v9124_v43 }
 0x131   : > { %v9132_v47 = vmax.f32 %v615_v45, 0.0 }
 0x132   : > { %v619_v48 = vpop.f32.mrb[22].mxu0 }
 0x133   : > { %v620_v49 = vadd.f32 %v9026_v52, %v619_v48  ;;  %v621_v50 = vpop.f32.mrb[23].mxu0  ;;  %7156 = vmatprep.mubr.msk.f32.mxu1 %vm768_vm1, %v9132_v47  ;;  %7336 = vmatprep.mubr.msk.f32.mxu0 %vm768_vm1, %v9132_v47 }
 0x135   : > { %v9139_v51 = vmax.f32 %v620_v49, 0.0 }
 0x136   : > { %v624_v53 = vpop.f32.mrb[24].mxu0 }
 0x137   : > { %v625_v54 = vadd.f32 %v9026_v52, %v624_v53  ;;  %v626_v55 = vpop.f32.mrb[25].mxu0  ;;  %7157 = vmatmul.mubr.msk.f32.gmra.mrb[10].mxu1 %vm768_vm1, %v9139_v51  ;;  %7337 = vmatmul.mubr.msk.f32.gmra.mrb[74].mxu0 %vm768_vm1, %v9139_v51 }
 0x139   : > { %v9146_v57 = vmax.f32 %v625_v54, 0.0 }
 0x13a   : > { %v629_v58 = vpop.f32.mrb[26].mxu0 }
 0x13b   : > { %v630_v59 = vadd.f32 %v9026_v52, %v629_v58  ;;  %v631_v60 = vpop.f32.mrb[27].mxu0  ;;  %7159 = vmatprep.mubr.msk.f32.mxu1 %vm768_vm1, %v9146_v57  ;;  %7339 = vmatprep.mubr.msk.f32.mxu0 %vm768_vm1, %v9146_v57 }
 0x13d   : > { %v9153_v61 = vmax.f32 %v630_v59, 0.0 }
 0x13e   : > { %v634_v62 = vpop.f32.mrb[28].mxu0 }
 0x13f   : > { %v635_v63 = vadd.f32 %v9026_v52, %v634_v62  ;;  %v636_v1 = vpop.f32.mrb[29].mxu0  ;;  %7160 = vmatmul.mubr.msk.f32.gmra.mrb[12].mxu1 %vm768_vm1, %v9153_v61  ;;  %7340 = vmatmul.mubr.msk.f32.gmra.mrb[76].mxu0 %vm768_vm1, %v9153_v61 }
 0x141   : > { %v9160_v2 = vmax.f32 %v635_v63, 0.0 }
 0x142   : > { %v639_v3 = vpop.f32.mrb[30].mxu0 }
 0x143   : > { %v640_v4 = vadd.f32 %v9026_v52, %v639_v3  ;;  %v641_v5 = vpop.f32.mrb[31].mxu0  ;;  %7162 = vmatprep.mubr.msk.f32.mxu1 %vm768_vm1, %v9160_v2  ;;  %7342 = vmatprep.mubr.msk.f32.mxu0 %vm768_vm1, %v9160_v2 }
 0x145   : > { %v9167_v6 = vmax.f32 %v640_v4, 0.0 }
 0x146   : > { %v644_v7 = vpop.f32.mrb[32].mxu0 }
 0x147   : > { %v645_v8 = vadd.f32 %v9026_v52, %v644_v7  ;;  %v646_v9 = vpop.f32.mrb[33].mxu0  ;;  %7163 = vmatmul.mubr.msk.f32.gmra.mrb[14].mxu1 %vm768_vm1, %v9167_v6  ;;  %7343 = vmatmul.mubr.msk.f32.gmra.mrb[78].mxu0 %vm768_vm1, %v9167_v6 }
 0x149   : > { %v9174_v11 = vmax.f32 %v645_v8, 0.0 }
 0x14a   : > { %v649_v12 = vpop.f32.mrb[34].mxu0 }
 0x14b   : > { %v650_v13 = vadd.f32 %v9026_v52, %v649_v12  ;;  %v651_v14 = vpop.f32.mrb[35].mxu0  ;;  %7165 = vmatprep.mubr.msk.f32.mxu1 %vm768_vm1, %v9174_v11  ;;  %7345 = vmatprep.mubr.msk.f32.mxu0 %vm768_vm1, %v9174_v11 }
 0x14d   : > { %v9181_v15 = vmax.f32 %v650_v13, 0.0 }
 0x14e   : > { %v654_v17 = vpop.f32.mrb[36].mxu0 }
 0x14f   : > { %v655_v18 = vadd.f32 %v9026_v52, %v654_v17  ;;  %v656_v19 = vpop.f32.mrb[37].mxu0  ;;  %7166 = vmatmul.mubr.msk.f32.gmra.mrb[16].mxu1 %vm768_vm1, %v9181_v15  ;;  %7346 = vmatmul.mubr.msk.f32.gmra.mrb[80].mxu0 %vm768_vm1, %v9181_v15 }
 0x151   : > { %v9188_v21 = vmax.f32 %v655_v18, 0.0 }
 0x152   : > { %v659_v22 = vpop.f32.mrb[38].mxu0 }
 0x153   : > { %v660_v23 = vadd.f32 %v9026_v52, %v659_v22  ;;  %v661_v25 = vpop.f32.mrb[39].mxu0  ;;  %7168 = vmatprep.mubr.msk.f32.mxu1 %vm768_vm1, %v9188_v21  ;;  %7348 = vmatprep.mubr.msk.f32.mxu0 %vm768_vm1, %v9188_v21 }
 0x155   : > { %v9195_v26 = vmax.f32 %v660_v23, 0.0 }
 0x156   : > { %v664_v27 = vpop.f32.mrb[40].mxu0 }
 0x157   : > { %v665_v29 = vadd.f32 %v9026_v52, %v664_v27  ;;  %v666_v30 = vpop.f32.mrb[41].mxu0  ;;  %7169 = vmatmul.mubr.msk.f32.gmra.mrb[18].mxu1 %vm768_vm1, %v9195_v26  ;;  %7349 = vmatmul.mubr.msk.f32.gmra.mrb[82].mxu0 %vm768_vm1, %v9195_v26 }
 0x159   : > { %v9202_v31 = vmax.f32 %v665_v29, 0.0 }
 0x15a   : > { %v669_v33 = vpop.f32.mrb[42].mxu0 }
 0x15b   : > { %v670_v34 = vadd.f32 %v9026_v52, %v669_v33  ;;  %v671_v35 = vpop.f32.mrb[43].mxu0  ;;  %7171 = vmatprep.mubr.msk.f32.mxu1 %vm768_vm1, %v9202_v31  ;;  %7351 = vmatprep.mubr.msk.f32.mxu0 %vm768_vm1, %v9202_v31 }
 0x15d   : > { %v9209_v37 = vmax.f32 %v670_v34, 0.0 }
 0x15e   : > { %v674_v38 = vpop.f32.mrb[44].mxu0 }
 0x15f   : > { %v675_v39 = vadd.f32 %v9026_v52, %v674_v38  ;;  %v676_v40 = vpop.f32.mrb[45].mxu0  ;;  %7172 = vmatmul.mubr.msk.f32.gmra.mrb[20].mxu1 %vm768_vm1, %v9209_v37  ;;  %7352 = vmatmul.mubr.msk.f32.gmra.mrb[84].mxu0 %vm768_vm1, %v9209_v37  ;;  %v6158_v38 = vld [vmem:[%s11422_s3 + $0x70] sm:$0xff] }
 0x160   : > { %v6160_v40 = vld [vmem:[%s11422_s3 + $0x80] sm:$0xff] }
 0x161   : > { %v9216_v41 = vmax.f32 %v675_v39, 0.0 }
 0x162   : > { %v679_v44 = vpop.f32.mrb[46].mxu0 }
 0x163   : > { %v680_v45 = vadd.f32 %v9026_v52, %v679_v44  ;;  %v681_v46 = vpop.f32.mrb[47].mxu0  ;;  %7174 = vmatprep.mubr.msk.f32.mxu1 %vm768_vm1, %v9216_v41  ;;  %7354 = vmatprep.mubr.msk.f32.mxu0 %vm768_vm1, %v9216_v41  ;;  %v6161_v44 = vld [vmem:[%s11422_s3 + $0x88] sm:$0xff] }
 0x164   : > { %v6236_v46 = vld [vmem:[%s11422_s3 + $0xc0] sm:$0xff] }
 0x165   : > { %v9223_v48 = vmax.f32 %v680_v45, 0.0  ;;  %v8096_v45 = vpack.c.bf16 %v6161_v44, %v6160_v40 }
 0x166   : > { %v684_v49 = vpop.f32.mrb[48].mxu0 }
 0x167   : > { %v685_v50 = vadd.f32 %v9026_v52, %v684_v49  ;;  %v686_v53 = vpop.f32.mrb[49].mxu0  ;;  %7175 = vmatmul.mubr.msk.f32.gmra.mrb[22].mxu1 %vm768_vm1, %v9223_v48  ;;  %7355 = vmatmul.mubr.msk.f32.gmra.mrb[86].mxu0 %vm768_vm1, %v9223_v48  ;;  %v6237_v49 = vld [vmem:[%s11422_s3 + $0xc8] sm:$0xff] }
 0x168   : > { %v6239_v53 = vld [vmem:[%s11422_s3 + $0xd8] sm:$0xff] }
 0x169   : > { %v9230_v54 = vmax.f32 %v685_v50, 0.0  ;;  %v6238_v50 = vld [vmem:[%s11422_s3 + $0xd0] sm:$0xff] }
 0x16a   : > { %v689_v55 = vpop.f32.mrb[50].mxu0 }
 0x16b   : > { %v690_v58 = vadd.f32 %v9026_v52, %v689_v55  ;;  %v691_v59 = vpop.f32.mrb[51].mxu0  ;;  %7177 = vmatprep.mubr.msk.f32.mxu1 %vm768_vm1, %v9230_v54  ;;  %7357 = vmatprep.mubr.msk.f32.mxu0 %vm768_vm1, %v9230_v54  ;;  %v8116_v55 = vpack.c.bf16 %v6239_v53, %v6238_v50 }
 0x16c   : > { %v6241_v59 = vld [vmem:[%s11422_s3 + $0xe8] sm:$0xff] }
 0x16d   : > { %v9237_v60 = vmax.f32 %v690_v58, 0.0  ;;  %v6240_v58 = vld [vmem:[%s11422_s3 + $0xe0] sm:$0xff] }
 0x16e   : > { %v694_v62 = vpop.f32.mrb[52].mxu0 }
 0x16f   : > { %v695_v63 = vadd.f32 %v9026_v52, %v694_v62  ;;  %v696_v1 = vpop.f32.mrb[53].mxu0  ;;  %7178 = vmatmul.mubr.msk.f32.gmra.mrb[24].mxu1 %vm768_vm1, %v9237_v60  ;;  %7358 = vmatmul.mubr.msk.f32.gmra.mrb[88].mxu0 %vm768_vm1, %v9237_v60  ;;  %v8120_v62 = vpack.c.bf16 %v6241_v59, %v6240_v58 }
 0x171   : > { %v9244_v3 = vmax.f32 %v695_v63, 0.0  ;;  %v9477_v63 = vld [vmem:[%s11423_s4 + $0x3] ss:$0 sm:$0xff] }
 0x172   : > { %v699_v4 = vpop.f32.mrb[54].mxu0 }
 0x173   : > { %v700_v5 = vadd.f32 %v9026_v52, %v699_v4  ;;  %v701_v7 = vpop.f32.mrb[55].mxu0  ;;  %7180 = vmatprep.mubr.msk.f32.mxu1 %vm768_vm1, %v9244_v3  ;;  %7360 = vmatprep.mubr.msk.f32.mxu0 %vm768_vm1, %v9244_v3 }
 0x175   : > { %v9251_v8 = vmax.f32 %v700_v5, 0.0 }
 0x176   : > { %v704_v9 = vpop.f32.mrb[56].mxu0 }
 0x177   : > { %v705_v12 = vadd.f32 %v9026_v52, %v704_v9  ;;  %v706_v13 = vpop.f32.mrb[57].mxu0  ;;  %7181 = vmatmul.mubr.msk.f32.gmra.mrb[26].mxu1 %vm768_vm1, %v9251_v8  ;;  %7361 = vmatmul.mubr.msk.f32.gmra.mrb[90].mxu0 %vm768_vm1, %v9251_v8 }
 0x179   : > { %v9258_v14 = vmax.f32 %v705_v12, 0.0 }
 0x17a   : > { %v709_v17 = vpop.f32.mrb[58].mxu0 }
 0x17b   : > { %v710_v18 = vadd.f32 %v9026_v52, %v709_v17  ;;  %v711_v19 = vpop.f32.mrb[59].mxu0  ;;  %7183 = vmatprep.mubr.msk.f32.mxu1 %vm768_vm1, %v9258_v14  ;;  %7363 = vmatprep.mubr.msk.f32.mxu0 %vm768_vm1, %v9258_v14 }
 0x17d   : > { %v9265_v22 = vmax.f32 %v710_v18, 0.0 }
 0x17e   : > { %v714_v23 = vpop.f32.mrb[60].mxu0 }
 0x17f   : > { %v715_v25 = vadd.f32 %v9026_v52, %v714_v23  ;;  %v716_v27 = vpop.f32.mrb[61].mxu0  ;;  %7184 = vmatmul.mubr.msk.f32.gmra.mrb[28].mxu1 %vm768_vm1, %v9265_v22  ;;  %7364 = vmatmul.mubr.msk.f32.gmra.mrb[92].mxu0 %vm768_vm1, %v9265_v22 }
 0x181   : > { %v9272_v29 = vmax.f32 %v715_v25, 0.0 }
 0x182   : > { %v719_v30 = vpop.f32.mrb[62].mxu0 }
 0x183   : > { %v720_v33 = vadd.f32 %v9026_v52, %v719_v30  ;;  %v721_v34 = vpop.f32.mrb[63].mxu0  ;;  %7186 = vmatprep.mubr.msk.f32.mxu1 %vm768_vm1, %v9272_v29  ;;  %7366 = vmatprep.mubr.msk.f32.mxu0 %vm768_vm1, %v9272_v29  ;;  %v6159_v52 = vld [vmem:[%s11422_s3 + $0x78] sm:$0xff] }
 0x184   : > { %v8092_v39 = vpack.c.bf16 %v6159_v52, %v6158_v38 }
 0x185   : > { %v9279_v35 = vmax.f32 %v720_v33, 0.0 }
 0x187   : > { %7187 = vmatmul.mubr.msk.f32.gmra.mrb[30].mxu1 %vm768_vm1, %v9279_v35  ;;  %7367 = vmatmul.mubr.msk.f32.gmra.mrb[94].mxu0 %vm768_vm1, %v9279_v35 }
 0x188   : > { %7201 = vmatprep.mubr.msk.f32.mxu1 %vm768_vm1, %v9029_v56  ;;  %7441 = vmatprep.mubr.msk.f32.mxu0 %vm768_vm1, %v9029_v56 }
 0x18b   : > { %7202 = vmatmul.mubr.msk.f32.vlgmr.msra.gmra.mrb[32].mxu1 %vm768_vm1, %v9048_v0  ;;  %7442 = vmatmul.mubr.msk.f32.vlgmr.msra.gmra.mrb[96].mxu0 %vm768_vm1, %v9048_v0 }
 0x18c   : > { %7204 = vmatprep.mubr.msk.f32.mxu1 %vm768_vm1, %v9067_v10  ;;  %7444 = vmatprep.mubr.msk.f32.mxu0 %vm768_vm1, %v9067_v10 }
 0x18d   : > { %8091 = vmatpush3.bf16.msra.mxu1 %v9122_v42  ;;  %v9324_v42 = vpack.c.bf16 %v6237_v49, %v6236_v46 }
 0x18e   : > { %8093 = vmatprep.subr.bf16.mxu1 %v8092_v39 }
 0x18f   : > { %7205 = vmatmul.mubr.msk.f32.gmra.mrb[34].mxu1 %vm768_vm1, %v9074_v16  ;;  %7445 = vmatmul.mubr.msk.f32.gmra.mrb[98].mxu0 %vm768_vm1, %v9074_v16 }
 0x190   : > { %7207 = vmatprep.mubr.msk.f32.mxu1 %vm768_vm1, %v9081_v20  ;;  %7447 = vmatprep.mubr.msk.f32.mxu0 %vm768_vm1, %v9081_v20 }
 0x191   : > { %8095 = vmatpush3.bf16.msra.mxu1 %v8092_v39 }
 0x192   : > { %8097 = vmatprep.subr.bf16.mxu1 %v8096_v45 }
 0x193   : > { %7208 = vmatmul.mubr.msk.f32.gmra.mrb[36].mxu1 %vm768_vm1, %v9088_v24  ;;  %7448 = vmatmul.mubr.msk.f32.gmra.mrb[100].mxu0 %vm768_vm1, %v9088_v24 }
 0x194   : > { %7210 = vmatprep.mubr.msk.f32.mxu1 %vm768_vm1, %v9095_v28  ;;  %7450 = vmatprep.mubr.msk.f32.mxu0 %vm768_vm1, %v9095_v28 }
 0x195   : > { %8099 = vmatpush3.bf16.msra.mxu1 %v8096_v45 }
 0x196   : > { %8113 = vmatprep.subr.bf16.mxu1 %v9324_v42 }
 0x197   : > { %7211 = vmatmul.mubr.msk.f32.gmra.mrb[38].mxu1 %vm768_vm1, %v9102_v32  ;;  %7451 = vmatmul.mubr.msk.f32.gmra.mrb[102].mxu0 %vm768_vm1, %v9102_v32 }
 0x198   : > { %7213 = vmatprep.mubr.msk.f32.mxu1 %vm768_vm1, %v9109_v36  ;;  %7453 = vmatprep.mubr.msk.f32.mxu0 %vm768_vm1, %v9109_v36 }
 0x19b   : > { %7214 = vmatmul.mubr.msk.f32.gmra.mrb[40].mxu1 %vm768_vm1, %v9124_v43  ;;  %7454 = vmatmul.mubr.msk.f32.gmra.mrb[104].mxu0 %vm768_vm1, %v9124_v43 }
 0x19c   : > { %7216 = vmatprep.mubr.msk.f32.mxu1 %vm768_vm1, %v9132_v47  ;;  %7456 = vmatprep.mubr.msk.f32.mxu0 %vm768_vm1, %v9132_v47 }
 0x19f   : > { %7217 = vmatmul.mubr.msk.f32.gmra.mrb[42].mxu1 %vm768_vm1, %v9139_v51  ;;  %7457 = vmatmul.mubr.msk.f32.gmra.mrb[106].mxu0 %vm768_vm1, %v9139_v51 }
 0x1a0   : > { %7219 = vmatprep.mubr.msk.f32.mxu1 %vm768_vm1, %v9146_v57  ;;  %7459 = vmatprep.mubr.msk.f32.mxu0 %vm768_vm1, %v9146_v57 }
 0x1a3   : > { %7220 = vmatmul.mubr.msk.f32.gmra.mrb[44].mxu1 %vm768_vm1, %v9153_v61  ;;  %7460 = vmatmul.mubr.msk.f32.gmra.mrb[108].mxu0 %vm768_vm1, %v9153_v61 }
 0x1a4   : > { %7222 = vmatprep.mubr.msk.f32.mxu1 %vm768_vm1, %v9160_v2  ;;  %7462 = vmatprep.mubr.msk.f32.mxu0 %vm768_vm1, %v9160_v2 }
 0x1a7   : > { %7223 = vmatmul.mubr.msk.f32.gmra.mrb[46].mxu1 %vm768_vm1, %v9167_v6  ;;  %7463 = vmatmul.mubr.msk.f32.gmra.mrb[110].mxu0 %vm768_vm1, %v9167_v6 }
 0x1a8   : > { %7225 = vmatprep.mubr.msk.f32.mxu1 %vm768_vm1, %v9174_v11  ;;  %7465 = vmatprep.mubr.msk.f32.mxu0 %vm768_vm1, %v9174_v11 }
 0x1ab   : > { %7226 = vmatmul.mubr.msk.f32.gmra.mrb[48].mxu1 %vm768_vm1, %v9181_v15  ;;  %7466 = vmatmul.mubr.msk.f32.gmra.mrb[112].mxu0 %vm768_vm1, %v9181_v15 }
 0x1ac   : > { %7228 = vmatprep.mubr.msk.f32.mxu1 %vm768_vm1, %v9188_v21  ;;  %7468 = vmatprep.mubr.msk.f32.mxu0 %vm768_vm1, %v9188_v21 }
 0x1af   : > { %7229 = vmatmul.mubr.msk.f32.gmra.mrb[50].mxu1 %vm768_vm1, %v9195_v26  ;;  %7469 = vmatmul.mubr.msk.f32.gmra.mrb[114].mxu0 %vm768_vm1, %v9195_v26 }
 0x1b0   : > { %7231 = vmatprep.mubr.msk.f32.mxu1 %vm768_vm1, %v9202_v31  ;;  %7471 = vmatprep.mubr.msk.f32.mxu0 %vm768_vm1, %v9202_v31 }
 0x1b3   : > { %7232 = vmatmul.mubr.msk.f32.gmra.mrb[52].mxu1 %vm768_vm1, %v9209_v37  ;;  %7472 = vmatmul.mubr.msk.f32.gmra.mrb[116].mxu0 %vm768_vm1, %v9209_v37 }
 0x1b4   : > { %7234 = vmatprep.mubr.msk.f32.mxu1 %vm768_vm1, %v9216_v41  ;;  %7474 = vmatprep.mubr.msk.f32.mxu0 %vm768_vm1, %v9216_v41 }
 0x1b7   : > { %7235 = vmatmul.mubr.msk.f32.gmra.mrb[54].mxu1 %vm768_vm1, %v9223_v48  ;;  %7475 = vmatmul.mubr.msk.f32.gmra.mrb[118].mxu0 %vm768_vm1, %v9223_v48 }
 0x1b8   : > { %7237 = vmatprep.mubr.msk.f32.mxu1 %vm768_vm1, %v9230_v54  ;;  %7477 = vmatprep.mubr.msk.f32.mxu0 %vm768_vm1, %v9230_v54 }
 0x1bb   : > { %7238 = vmatmul.mubr.msk.f32.gmra.mrb[56].mxu1 %vm768_vm1, %v9237_v60  ;;  %7478 = vmatmul.mubr.msk.f32.gmra.mrb[120].mxu0 %vm768_vm1, %v9237_v60 }
 0x1bc   : > { %7240 = vmatprep.mubr.msk.f32.mxu1 %vm768_vm1, %v9244_v3  ;;  %7480 = vmatprep.mubr.msk.f32.mxu0 %vm768_vm1, %v9244_v3 }
 0x1bf   : > { %7241 = vmatmul.mubr.msk.f32.gmra.mrb[58].mxu1 %vm768_vm1, %v9251_v8  ;;  %7481 = vmatmul.mubr.msk.f32.gmra.mrb[122].mxu0 %vm768_vm1, %v9251_v8 }
 0x1c0   : > { %7243 = vmatprep.mubr.msk.f32.mxu1 %vm768_vm1, %v9258_v14  ;;  %7483 = vmatprep.mubr.msk.f32.mxu0 %vm768_vm1, %v9258_v14 }
 0x1c3   : > { %7244 = vmatmul.mubr.msk.f32.gmra.mrb[60].mxu1 %vm768_vm1, %v9265_v22  ;;  %7484 = vmatmul.mubr.msk.f32.gmra.mrb[124].mxu0 %vm768_vm1, %v9265_v22 }
 0x1c4   : > { %7246 = vmatprep.mubr.msk.f32.mxu1 %vm768_vm1, %v9272_v29  ;;  %7486 = vmatprep.mubr.msk.f32.mxu0 %vm768_vm1, %v9272_v29 }
 0x1c7   : > { %7247 = vmatmul.mubr.msk.f32.gmra.mrb[62].mxu1 %vm768_vm1, %v9279_v35  ;;  %7487 = vmatmul.mubr.msk.f32.gmra.mrb[126].mxu0 %vm768_vm1, %v9279_v35 }
 0x1c8   : > { %7261 = vmatprep.mubr.msk.f32.mxu1 %vm768_vm1, %v9029_v56 }
 0x1cb   : > { %7262 = vmatmul.mubr.msk.f32.vlgmr.msra.gmra.mrb[64].mxu1 %vm768_vm1, %v9048_v0 }
 0x1cc   : > { %7264 = vmatprep.mubr.msk.f32.mxu1 %vm768_vm1, %v9067_v10  ;;  %8115 = vmatpush3.bf16.msra.mxu1 %v9324_v42 }
 0x1cd   : > { %8117 = vmatprep.subr.bf16.mxu1 %v8116_v55 }
 0x1cf   : > { %7265 = vmatmul.mubr.msk.f32.gmra.mrb[66].mxu1 %vm768_vm1, %v9074_v16 }
 0x1d0   : > { %7267 = vmatprep.mubr.msk.f32.mxu1 %vm768_vm1, %v9081_v20  ;;  %8119 = vmatpush3.bf16.msra.mxu1 %v8116_v55 }
 0x1d1   : > { %8121 = vmatprep.subr.bf16.mxu1 %v8120_v62 }
 0x1d3   : > { %7268 = vmatmul.mubr.msk.f32.gmra.mrb[68].mxu1 %vm768_vm1, %v9088_v24 }
 0x1d4   : > { %7270 = vmatprep.mubr.msk.f32.mxu1 %vm768_vm1, %v9095_v28  ;;  %8123 = vmatpush3.bf16.msra.mxu1 %v8120_v62  ;;  %v9548_v62 = vld [vmem:[%s11423_s4] ss:$0 sm:$0xff] }
 0x1d7   : > { %7271 = vmatmul.mubr.msk.f32.gmra.mrb[70].mxu1 %vm768_vm1, %v9102_v32 }
 0x1d8   : > { %7273 = vmatprep.mubr.msk.f32.mxu1 %vm768_vm1, %v9109_v36 }
 0x1db   : > { %7274 = vmatmul.mubr.msk.f32.gmra.mrb[72].mxu1 %vm768_vm1, %v9124_v43 }
 0x1dc   : > { %7276 = vmatprep.mubr.msk.f32.mxu1 %vm768_vm1, %v9132_v47 }
 0x1df   : > { %7277 = vmatmul.mubr.msk.f32.gmra.mrb[74].mxu1 %vm768_vm1, %v9139_v51 }
 0x1e0   : > { %7279 = vmatprep.mubr.msk.f32.mxu1 %vm768_vm1, %v9146_v57 }
 0x1e2   : > { %v9479_v1 = vpop.f32.mrb[0].mxu1  ;;  %v7323_v4 = vpop.f32.mrb[64].mxu0 }
 0x1e3   : > { %v1657_v5 = vadd.f32 %v7323_v4, %v9477_v63  ;;  %v9482_v7 = vpop.f32.mrb[1].mxu1  ;;  %7280 = vmatmul.mubr.msk.f32.gmra.mrb[76].mxu1 %vm768_vm1, %v9153_v61  ;;  %v1651_v9 = vpop.f32.mrb[65].mxu0 }
 0x1e4   : > { %v1652_v12 = vadd.f32 %v9477_v63, %v1651_v9  ;;  %7282 = vmatprep.mubr.msk.f32.mxu1 %vm768_vm1, %v9160_v2 }
 0x1e6   : > { %v9489_v13 = vpack.c.bf16 %v1657_v5, %v1652_v12 }
 0x1e7   : > { %7283 = vmatmul.mubr.msk.f32.gmra.mrb[78].mxu1 %vm768_vm1, %v9167_v6 }
 0x1e8   : > { %7285 = vmatprep.mubr.msk.f32.mxu1 %vm768_vm1, %v9174_v11 }
 0x1ea   : > { %v9495_v17 = vpop.f32.mrb[2].mxu1  ;;  %v7326_v18 = vpop.f32.mrb[66].mxu0 }
 0x1eb   : > { %v1667_v19 = vadd.f32 %v7326_v18, %v9477_v63  ;;  %v9498_v23 = vpop.f32.mrb[3].mxu1  ;;  %7286 = vmatmul.mubr.msk.f32.gmra.mrb[80].mxu1 %vm768_vm1, %v9181_v15  ;;  %v1661_v25 = vpop.f32.mrb[67].mxu0 }
 0x1ec   : > { %v1662_v27 = vadd.f32 %v9477_v63, %v1661_v25  ;;  %7288 = vmatprep.mubr.msk.f32.mxu1 %vm768_vm1, %v9188_v21 }
 0x1ee   : > { %v9505_v30 = vpack.c.bf16 %v1667_v19, %v1662_v27 }
 0x1ef   : > { %7289 = vmatmul.mubr.msk.f32.gmra.mrb[82].mxu1 %vm768_vm1, %v9195_v26 }
 0x1f0   : > { %7291 = vmatprep.mubr.msk.f32.mxu1 %vm768_vm1, %v9202_v31 }
 0x1f2   : > { %v9511_v33 = vpop.f32.mrb[4].mxu1  ;;  %v7329_v34 = vpop.f32.mrb[68].mxu0 }
 0x1f3   : > { %v1677_v38 = vadd.f32 %v7329_v34, %v9477_v63  ;;  %v9514_v52 = vpop.f32.mrb[5].mxu1  ;;  %7292 = vmatmul.mubr.msk.f32.gmra.mrb[84].mxu1 %vm768_vm1, %v9209_v37  ;;  %v1671_v39 = vpop.f32.mrb[69].mxu0 }
 0x1f4   : > { %v1672_v40 = vadd.f32 %v9477_v63, %v1671_v39  ;;  %7294 = vmatprep.mubr.msk.f32.mxu1 %vm768_vm1, %v9216_v41 }
 0x1f6   : > { %v9521_v44 = vpack.c.bf16 %v1677_v38, %v1672_v40 }
 0x1f7   : > { %7295 = vmatmul.mubr.msk.f32.gmra.mrb[86].mxu1 %vm768_vm1, %v9223_v48 }
 0x1f8   : > { %7297 = vmatprep.mubr.msk.f32.mxu1 %vm768_vm1, %v9230_v54 }
 0x1fa   : > { %v9527_v45 = vpop.f32.mrb[6].mxu1  ;;  %v7332_v46 = vpop.f32.mrb[70].mxu0 }
 0x1fb   : > { %v1687_v49 = vadd.f32 %v7332_v46, %v9477_v63  ;;  %v9530_v42 = vpop.f32.mrb[7].mxu1  ;;  %7298 = vmatmul.mubr.msk.f32.gmra.mrb[88].mxu1 %vm768_vm1, %v9237_v60  ;;  %v1681_v50 = vpop.f32.mrb[71].mxu0 }
 0x1fc   : > { %v1682_v53 = vadd.f32 %v9477_v63, %v1681_v50  ;;  %7300 = vmatprep.mubr.msk.f32.mxu1 %vm768_vm1, %v9244_v3 }
 0x1fe   : > { %v9537_v55 = vpack.c.bf16 %v1687_v49, %v1682_v53 }
 0x1ff   : > { %7301 = vmatmul.mubr.msk.f32.gmra.mrb[90].mxu1 %vm768_vm1, %v9251_v8 }
 0x200   : > { %7303 = vmatprep.mubr.msk.f32.mxu1 %vm768_vm1, %v9258_v14 }
 0x202   : > { %v9543_v58 = vpop.f32.mrb[8].mxu1  ;;  %v7335_v59 = vpop.f32.mrb[72].mxu0 }
 0x203   : > { %v1697_v4 = vadd.f32 %v7335_v59, %v9477_v63  ;;  %v971_v5 = vpop.f32.mrb[9].mxu1  ;;  %7304 = vmatmul.mubr.msk.f32.gmra.mrb[92].mxu1 %vm768_vm1, %v9265_v22  ;;  %v1691_v9 = vpop.f32.mrb[73].mxu0 }
 0x204   : > { %v972_v12 = vadd.f32 %v9548_v62, %v971_v5  ;;  %v1692_v18 = vadd.f32 %v9477_v63, %v1691_v9  ;;  %7306 = vmatprep.mubr.msk.f32.mxu1 %vm768_vm1, %v9272_v29 }
 0x206   : > { %v9557_v19 = vpack.c.bf16 %v1697_v4, %v1692_v18  ;;  %7533 = vmatprep.mubr.msk.f32.mxu0 %vm2298_vm2, %v972_v12 }
 0x207   : > { %7307 = vmatmul.mubr.msk.f32.gmra.mrb[94].mxu1 %vm768_vm1, %v9279_v35 }
 0x208   : > { %7381 = vmatprep.mubr.msk.f32.mxu1 %vm768_vm1, %v9029_v56 }
 0x20a   : > { %v9564_v25 = vpop.f32.mrb[10].mxu1  ;;  %v7338_v27 = vpop.f32.mrb[74].mxu0 }
 0x20b   : > { %v1707_v34 = vadd.f32 %v7338_v27, %v9477_v63  ;;  %v9567_v38 = vpop.f32.mrb[11].mxu1  ;;  %v1701_v39 = vpop.f32.mrb[75].mxu0  ;;  %7382 = vmatmul.mubr.msk.f32.vlgmr.msra.gmra.mrb[96].mxu1 %vm768_vm1, %v9048_v0 }
 0x20c   : > { %v1702_v40 = vadd.f32 %v9477_v63, %v1701_v39  ;;  %7384 = vmatprep.mubr.msk.f32.mxu1 %vm768_vm1, %v9067_v10 }
 0x20e   : > { %v9574_v46 = vpack.c.bf16 %v1707_v34, %v1702_v40 }
 0x20f   : > { %7385 = vmatmul.mubr.msk.f32.gmra.mrb[98].mxu1 %vm768_vm1, %v9074_v16 }
 0x210   : > { %7387 = vmatprep.mubr.msk.f32.mxu1 %vm768_vm1, %v9081_v20 }
 0x212   : > { %v9580_v56 = vpop.f32.mrb[12].mxu1  ;;  %v7341_v49 = vpop.f32.mrb[76].mxu0 }
 0x213   : > { %v1717_v50 = vadd.f32 %v7341_v49, %v9477_v63  ;;  %v9583_v53 = vpop.f32.mrb[13].mxu1  ;;  %v1711_v0 = vpop.f32.mrb[77].mxu0  ;;  %7388 = vmatmul.mubr.msk.f32.gmra.mrb[100].mxu1 %vm768_vm1, %v9088_v24 }
 0x214   : > { %v1712_v10 = vadd.f32 %v9477_v63, %v1711_v0  ;;  %7390 = vmatprep.mubr.msk.f32.mxu1 %vm768_vm1, %v9095_v28 }
 0x216   : > { %v9590_v16 = vpack.c.bf16 %v1717_v50, %v1712_v10 }
 0x217   : > { %7391 = vmatmul.mubr.msk.f32.gmra.mrb[102].mxu1 %vm768_vm1, %v9102_v32 }
 0x218   : > { %7393 = vmatprep.mubr.msk.f32.mxu1 %vm768_vm1, %v9109_v36 }
 0x21a   : > { %v9596_v20 = vpop.f32.mrb[14].mxu1  ;;  %v7344_v59 = vpop.f32.mrb[78].mxu0 }
 0x21b   : > { %v1727_v4 = vadd.f32 %v7344_v59, %v9477_v63  ;;  %v9599_v5 = vpop.f32.mrb[15].mxu1  ;;  %v1721_v24 = vpop.f32.mrb[79].mxu0  ;;  %7394 = vmatmul.mubr.msk.f32.gmra.mrb[104].mxu1 %vm768_vm1, %v9124_v43 }
 0x21c   : > { %v1722_v28 = vadd.f32 %v9477_v63, %v1721_v24  ;;  %7396 = vmatprep.mubr.msk.f32.mxu1 %vm768_vm1, %v9132_v47 }
 0x21e   : > { %v9606_v32 = vpack.c.bf16 %v1727_v4, %v1722_v28 }
 0x21f   : > { %7397 = vmatmul.mubr.msk.f32.gmra.mrb[106].mxu1 %vm768_vm1, %v9139_v51 }
 0x220   : > { %7399 = vmatprep.mubr.msk.f32.mxu1 %vm768_vm1, %v9146_v57 }
 0x222   : > { %v9612_v36 = vpop.f32.mrb[16].mxu1  ;;  %v7347_v9 = vpop.f32.mrb[80].mxu0 }
 0x223   : > { %v1737_v12 = vadd.f32 %v7347_v9, %v9477_v63  ;;  %v9615_v18 = vpop.f32.mrb[17].mxu1  ;;  %v1731_v43 = vpop.f32.mrb[81].mxu0  ;;  %7400 = vmatmul.mubr.msk.f32.gmra.mrb[108].mxu1 %vm768_vm1, %v9153_v61 }
 0x224   : > { %v1732_v47 = vadd.f32 %v9477_v63, %v1731_v43  ;;  %7402 = vmatprep.mubr.msk.f32.mxu1 %vm768_vm1, %v9160_v2 }
 0x226   : > { %v9622_v51 = vpack.c.bf16 %v1737_v12, %v1732_v47 }
 0x227   : > { %7403 = vmatmul.mubr.msk.f32.gmra.mrb[110].mxu1 %vm768_vm1, %v9167_v6 }
 0x228   : > { %7405 = vmatprep.mubr.msk.f32.mxu1 %vm768_vm1, %v9174_v11 }
 0x22a   : > { %v9628_v57 = vpop.f32.mrb[18].mxu1  ;;  %v7350_v27 = vpop.f32.mrb[82].mxu0 }
 0x22b   : > { %v1747_v34 = vadd.f32 %v7350_v27, %v9477_v63  ;;  %v9631_v39 = vpop.f32.mrb[19].mxu1  ;;  %v1741_v61 = vpop.f32.mrb[83].mxu0  ;;  %7406 = vmatmul.mubr.msk.f32.gmra.mrb[112].mxu1 %vm768_vm1, %v9181_v15 }
 0x22c   : > { %v1742_v2 = vadd.f32 %v9477_v63, %v1741_v61  ;;  %7408 = vmatprep.mubr.msk.f32.mxu1 %vm768_vm1, %v9188_v21 }
 0x22e   : > { %v9638_v6 = vpack.c.bf16 %v1747_v34, %v1742_v2 }
 0x22f   : > { %7409 = vmatmul.mubr.msk.f32.gmra.mrb[114].mxu1 %vm768_vm1, %v9195_v26 }
 0x230   : > { %7411 = vmatprep.mubr.msk.f32.mxu1 %vm768_vm1, %v9202_v31 }
 0x232   : > { %v9644_v11 = vpop.f32.mrb[20].mxu1  ;;  %v7353_v40 = vpop.f32.mrb[84].mxu0 }
 0x233   : > { %v1757_v49 = vadd.f32 %v7353_v40, %v9477_v63  ;;  %v9647_v50 = vpop.f32.mrb[21].mxu1  ;;  %v1751_v15 = vpop.f32.mrb[85].mxu0  ;;  %7412 = vmatmul.mubr.msk.f32.gmra.mrb[116].mxu1 %vm768_vm1, %v9209_v37 }
 0x234   : > { %v1752_v21 = vadd.f32 %v9477_v63, %v1751_v15  ;;  %7414 = vmatprep.mubr.msk.f32.mxu1 %vm768_vm1, %v9216_v41 }
 0x236   : > { %v9654_v26 = vpack.c.bf16 %v1757_v49, %v1752_v21 }
 0x237   : > { %7415 = vmatmul.mubr.msk.f32.gmra.mrb[118].mxu1 %vm768_vm1, %v9223_v48 }
 0x238   : > { %11484 = vst [vmem:[#allocation2_spill] sm:$0xff] %v9654_v26  ;;  %7417 = vmatprep.mubr.msk.f32.mxu1 %vm768_vm1, %v9230_v54 }
 0x23a   : > { %v9660_v31 = vpop.f32.mrb[22].mxu1  ;;  %v7356_v0 = vpop.f32.mrb[86].mxu0 }
 0x23b   : > { %v1767_v10 = vadd.f32 %v7356_v0, %v9477_v63  ;;  %v9663_v59 = vpop.f32.mrb[23].mxu1  ;;  %v1761_v37 = vpop.f32.mrb[87].mxu0  ;;  %7418 = vmatmul.mubr.msk.f32.gmra.mrb[120].mxu1 %vm768_vm1, %v9237_v60 }
 0x23c   : > { %v1762_v41 = vadd.f32 %v9477_v63, %v1761_v37  ;;  %7420 = vmatprep.mubr.msk.f32.mxu1 %vm768_vm1, %v9244_v3 }
 0x23e   : > { %v9670_v48 = vpack.c.bf16 %v1767_v10, %v1762_v41 }
 0x23f   : > { %7421 = vmatmul.mubr.msk.f32.gmra.mrb[122].mxu1 %vm768_vm1, %v9251_v8  ;;  %v932_v8 = vadd.f32 %v9548_v62, %v9482_v7 }
 0x240   : > { %11485 = vst [vmem:[#allocation3_spill] sm:$0xff] %v9670_v48  ;;  %7423 = vmatprep.mubr.msk.f32.mxu1 %vm768_vm1, %v9258_v14 }
 0x242   : > { %v9676_v54 = vpop.f32.mrb[24].mxu1  ;;  %v7359_v4 = vpop.f32.mrb[88].mxu0 }
 0x243   : > { %v1777_v24 = vadd.f32 %v7359_v4, %v9477_v63  ;;  %v9679_v28 = vpop.f32.mrb[25].mxu1  ;;  %v1771_v60 = vpop.f32.mrb[89].mxu0  ;;  %7424 = vmatmul.mubr.msk.f32.gmra.mrb[124].mxu1 %vm768_vm1, %v9265_v22  ;;  %v9718_v4 = vld [vmem:[%s11423_s4 + $0x5] ss:$0 sm:$0xff] }
 0x244   : > { %v1772_v3 = vadd.f32 %v9477_v63, %v1771_v60  ;;  %7426 = vmatprep.mubr.msk.f32.mxu1 %vm768_vm1, %v9272_v29 }
 0x246   : > { %v9688_v14 = vpack.c.bf16 %v1777_v24, %v1772_v3 }
 0x247   : > { %7427 = vmatmul.mubr.msk.f32.gmra.mrb[126].mxu1 %vm768_vm1, %v9279_v35 }
 0x248   : > { %11486 = vst [vmem:[#allocation4_spill] sm:$0xff] %v9688_v14  ;;  %7505 = vmatprep.mubr.msk.f32.mxu1 %vm2298_vm2, %v932_v8 }
 0x24a   : > { %v9693_v9 = vpop.f32.mrb[26].mxu1  ;;  %v7362_v12 = vpop.f32.mrb[90].mxu0 }
 0x24b   : > { %v1787_v22 = vadd.f32 %v7362_v12, %v9477_v63  ;;  %v9696_v43 = vpop.f32.mrb[27].mxu1  ;;  %v1781_v47 = vpop.f32.mrb[91].mxu0 }
 0x24c   : > { %v1782_v29 = vadd.f32 %v9477_v63, %v1781_v47 }
 0x24e   : > { %v9699_v27 = vpack.c.bf16 %v1787_v22, %v1782_v29 }
 0x250   : > { %11487 = vst [vmem:[#allocation5_spill] sm:$0xff] %v9699_v27 }
 0x252   : > { %v9701_v7 = vpop.f32.mrb[28].mxu1  ;;  %v7365_v34 = vpop.f32.mrb[92].mxu0 }
 0x253   : > { %v1797_v61 = vadd.f32 %v7365_v34, %v9477_v63  ;;  %v9704_v35 = vpop.f32.mrb[29].mxu1  ;;  %v1791_v2 = vpop.f32.mrb[93].mxu0 }
 0x254   : > { %v1792_v40 = vadd.f32 %v9477_v63, %v1791_v2 }
 0x256   : > { %v9707_v49 = vpack.c.bf16 %v1797_v61, %v1792_v40 }
 0x258   : > { %11488 = vst [vmem:[#allocation6_spill] sm:$0xff] %v9707_v49 }
 0x25a   : > { %v9709_v15 = vpop.f32.mrb[30].mxu1  ;;  %v7368_v21 = vpop.f32.mrb[94].mxu0 }
 0x25b   : > { %v1807_v0 = vadd.f32 %v7368_v21, %v9477_v63  ;;  %v9712_v10 = vpop.f32.mrb[31].mxu1  ;;  %v1801_v37 = vpop.f32.mrb[95].mxu0 }
 0x25c   : > { %v1802_v41 = vadd.f32 %v9477_v63, %v1801_v37 }
 0x25e   : > { %v9720_v24 = vpack.c.bf16 %v1807_v0, %v1802_v41  ;;  %v9722_v60 = vpop.f32.mrb[32].mxu1  ;;  %v7443_v3 = vpop.f32.mrb[96].mxu0 }
 0x25f   : > { %v2137_v8 = vadd.f32 %v7443_v3, %v9718_v4  ;;  %v9725_v12 = vpop.f32.mrb[33].mxu1  ;;  %v2131_v22 = vpop.f32.mrb[97].mxu0 }
 0x260   : > { %11489 = vst [vmem:[#allocation7_spill] sm:$0xff] %v9720_v24  ;;  %v2132_v47 = vadd.f32 %v9718_v4, %v2131_v22 }
 0x262   : > { %v9728_v29 = vpack.c.bf16 %v2137_v8, %v2132_v47  ;;  %v9730_v63 = vpop.f32.mrb[34].mxu1  ;;  %v7446_v34 = vpop.f32.mrb[98].mxu0 }
 0x263   : > { %v2147_v61 = vadd.f32 %v7446_v34, %v9718_v4  ;;  %v9733_v2 = vpop.f32.mrb[35].mxu1  ;;  %v2141_v40 = vpop.f32.mrb[99].mxu0 }
 0x264   : > { %11490 = vst [vmem:[#allocation8_spill] sm:$0xff] %v9728_v29  ;;  %v2142_v21 = vadd.f32 %v9718_v4, %v2141_v40 }
 0x266   : > { %v9736_v0 = vpack.c.bf16 %v2147_v61, %v2142_v21  ;;  %v9738_v37 = vpop.f32.mrb[36].mxu1  ;;  %v7449_v41 = vpop.f32.mrb[100].mxu0 }
 0x267   : > { %11492 = vst [vmem:[#allocation10_spill] sm:$0xff] %v9738_v37  ;;  %v2157_v3 = vadd.f32 %v7449_v41, %v9718_v4  ;;  %v9741_v22 = vpop.f32.mrb[37].mxu1  ;;  %v2151_v8 = vpop.f32.mrb[101].mxu0 }
 0x268   : > { %11491 = vst [vmem:[#allocation9_spill] sm:$0xff] %v9736_v0  ;;  %v2152_v47 = vadd.f32 %v9718_v4, %v2151_v8 }
 0x26a   : > { %v9744_v29 = vpack.c.bf16 %v2157_v3, %v2152_v47  ;;  %v9746_v34 = vpop.f32.mrb[38].mxu1  ;;  %v7452_v24 = vpop.f32.mrb[102].mxu0 }
 0x26b   : > { %11494 = vst [vmem:[#allocation12_spill] sm:$0xff] %v9746_v34  ;;  %v2167_v49 = vadd.f32 %v7452_v24, %v9718_v4  ;;  %v9749_v40 = vpop.f32.mrb[39].mxu1  ;;  %v2161_v61 = vpop.f32.mrb[103].mxu0 }
 0x26c   : > { %11493 = vst [vmem:[#allocation11_spill] sm:$0xff] %v9744_v29  ;;  %11495 = vst [vmem:[#allocation13_spill] sm:$0xff] %v9749_v40  ;;  %v2162_v21 = vadd.f32 %v9718_v4, %v2161_v61 }
 0x26e   : > { %v9752_v0 = vpack.c.bf16 %v2167_v49, %v2162_v21  ;;  %v9754_v41 = vpop.f32.mrb[40].mxu1  ;;  %v7455_v48 = vpop.f32.mrb[104].mxu0 }
 0x26f   : > { %11497 = vst [vmem:[#allocation15_spill] sm:$0xff] %v9754_v41  ;;  %v2177_v27 = vadd.f32 %v7455_v48, %v9718_v4  ;;  %v9757_v8 = vpop.f32.mrb[41].mxu1  ;;  %v2171_v3 = vpop.f32.mrb[105].mxu0 }
 0x270   : > { %11496 = vst [vmem:[#allocation14_spill] sm:$0xff] %v9752_v0  ;;  %v2172_v47 = vadd.f32 %v9718_v4, %v2171_v3 }
 0x272   : > { %v9760_v29 = vpack.c.bf16 %v2177_v27, %v2172_v47  ;;  %v9762_v24 = vpop.f32.mrb[42].mxu1  ;;  %v7458_v14 = vpop.f32.mrb[106].mxu0 }
 0x273   : > { %11499 = vst [vmem:[#allocation17_spill] sm:$0xff] %v9762_v24  ;;  %v2187_v26 = vadd.f32 %v7458_v14, %v9718_v4  ;;  %v9765_v61 = vpop.f32.mrb[43].mxu1  ;;  %v2181_v49 = vpop.f32.mrb[107].mxu0 }
 0x274   : > { %11498 = vst [vmem:[#allocation16_spill] sm:$0xff] %v9760_v29  ;;  %11500 = vst [vmem:[#allocation18_spill] sm:$0xff] %v9765_v61  ;;  %v2182_v21 = vadd.f32 %v9718_v4, %v2181_v49 }
 0x276   : > { %v9768_v0 = vpack.c.bf16 %v2187_v26, %v2182_v21  ;;  %v9770_v48 = vpop.f32.mrb[44].mxu1  ;;  %v7461_v41 = vpop.f32.mrb[108].mxu0 }
 0x277   : > { %11502 = vst [vmem:[#allocation20_spill] sm:$0xff] %v9770_v48  ;;  %v2197_v34 = vadd.f32 %v7461_v41, %v9718_v4  ;;  %v9773_v3 = vpop.f32.mrb[45].mxu1  ;;  %v2191_v27 = vpop.f32.mrb[109].mxu0 }
 0x278   : > { %11501 = vst [vmem:[#allocation19_spill] sm:$0xff] %v9768_v0  ;;  %11503 = vst [vmem:[#allocation21_spill] sm:$0xff] %v9773_v3  ;;  %v2192_v47 = vadd.f32 %v9718_v4, %v2191_v27 }
 0x27a   : > { %v9776_v29 = vpack.c.bf16 %v2197_v34, %v2192_v47  ;;  %v9778_v14 = vpop.f32.mrb[46].mxu1  ;;  %v7464_v24 = vpop.f32.mrb[110].mxu0 }
 0x27b   : > { %11505 = vst [vmem:[#allocation23_spill] sm:$0xff] %v9778_v14  ;;  %v2207_v61 = vadd.f32 %v7464_v24, %v9718_v4  ;;  %v9781_v49 = vpop.f32.mrb[47].mxu1  ;;  %v2201_v26 = vpop.f32.mrb[111].mxu0 }
 0x27c   : > { %11504 = vst [vmem:[#allocation22_spill] sm:$0xff] %v9776_v29  ;;  %11506 = vst [vmem:[#allocation24_spill] sm:$0xff] %v9781_v49  ;;  %v2202_v21 = vadd.f32 %v9718_v4, %v2201_v26 }
 0x27e   : > { %v9784_v0 = vpack.c.bf16 %v2207_v61, %v2202_v21  ;;  %v9786_v41 = vpop.f32.mrb[48].mxu1  ;;  %v7467_v48 = vpop.f32.mrb[112].mxu0 }
 0x27f   : > { %11508 = vst [vmem:[#allocation26_spill] sm:$0xff] %v9786_v41  ;;  %v2217_v3 = vadd.f32 %v7467_v48, %v9718_v4  ;;  %v9789_v27 = vpop.f32.mrb[49].mxu1  ;;  %v2211_v34 = vpop.f32.mrb[113].mxu0 }
 0x280   : > { %11507 = vst [vmem:[#allocation25_spill] sm:$0xff] %v9784_v0  ;;  %11509 = vst [vmem:[#allocation27_spill] sm:$0xff] %v9789_v27  ;;  %v2212_v47 = vadd.f32 %v9718_v4, %v2211_v34 }
 0x282   : > { %v9792_v29 = vpack.c.bf16 %v2217_v3, %v2212_v47  ;;  %v9794_v24 = vpop.f32.mrb[50].mxu1  ;;  %v7470_v14 = vpop.f32.mrb[114].mxu0 }
 0x283   : > { %11511 = vst [vmem:[#allocation29_spill] sm:$0xff] %v9794_v24  ;;  %v2227_v49 = vadd.f32 %v7470_v14, %v9718_v4  ;;  %v9797_v26 = vpop.f32.mrb[51].mxu1  ;;  %v2221_v61 = vpop.f32.mrb[115].mxu0 }
 0x284   : > { %11510 = vst [vmem:[#allocation28_spill] sm:$0xff] %v9792_v29  ;;  %11512 = vst [vmem:[#allocation30_spill] sm:$0xff] %v9797_v26  ;;  %v2222_v21 = vadd.f32 %v9718_v4, %v2221_v61 }
 0x286   : > { %v9800_v0 = vpack.c.bf16 %v2227_v49, %v2222_v21  ;;  %v9802_v48 = vpop.f32.mrb[52].mxu1  ;;  %v7473_v41 = vpop.f32.mrb[116].mxu0 }
 0x287   : > { %11514 = vst [vmem:[#allocation32_spill] sm:$0xff] %v9802_v48  ;;  %v2237_v27 = vadd.f32 %v7473_v41, %v9718_v4  ;;  %v9805_v34 = vpop.f32.mrb[53].mxu1  ;;  %v2231_v3 = vpop.f32.mrb[117].mxu0  ;;  %v9819_v41 = vld [vmem:[%s11423_s4 + $0x1] ss:$0 sm:$0xff] }
 0x288   : > { %11513 = vst [vmem:[#allocation31_spill] sm:$0xff] %v9800_v0  ;;  %11515 = vst [vmem:[#allocation33_spill] sm:$0xff] %v9805_v34  ;;  %v2232_v47 = vadd.f32 %v9718_v4, %v2231_v3 }
 0x28a   : > { %v9808_v29 = vpack.c.bf16 %v2237_v27, %v2232_v47  ;;  %v9810_v14 = vpop.f32.mrb[54].mxu1  ;;  %v7476_v24 = vpop.f32.mrb[118].mxu0 }
 0x28b   : > { %11517 = vst [vmem:[#allocation35_spill] sm:$0xff] %v9810_v14  ;;  %v2247_v26 = vadd.f32 %v7476_v24, %v9718_v4  ;;  %v9813_v61 = vpop.f32.mrb[55].mxu1  ;;  %v2241_v49 = vpop.f32.mrb[119].mxu0 }
 0x28c   : > { %11516 = vst [vmem:[#allocation34_spill] sm:$0xff] %v9808_v29  ;;  %11518 = vst [vmem:[#allocation36_spill] sm:$0xff] %v9813_v61  ;;  %v2242_v21 = vadd.f32 %v9718_v4, %v2241_v49 }
 0x28e   : > { %v9821_v0 = vpack.c.bf16 %v2247_v26, %v2242_v21  ;;  %v7239_v3 = vpop.f32.mrb[56].mxu1  ;;  %v7479_v27 = vpop.f32.mrb[120].mxu0 }
 0x28f   : > { %v9824_v47 = vadd.f32 %v7239_v3, %v9819_v41  ;;  %v2257_v29 = vadd.f32 %v7479_v27, %v9718_v4  ;;  %v9827_v24 = vpop.f32.mrb[57].mxu1  ;;  %v2251_v14 = vpop.f32.mrb[121].mxu0 }
 0x290   : > { %11519 = vst [vmem:[#allocation37_spill] sm:$0xff] %v9821_v0  ;;  %11521 = vst [vmem:[#allocation39_spill] sm:$0xff] %v9827_v24  ;;  %v2252_v61 = vadd.f32 %v9718_v4, %v2251_v14 }
 0x291   : > { %11520 = vst [vmem:[#allocation38_spill] sm:$0xff] %v9824_v47 }
 0x292   : > { %v9830_v49 = vpack.c.bf16 %v2257_v29, %v2252_v61  ;;  %v7242_v48 = vpop.f32.mrb[58].mxu1  ;;  %v7482_v34 = vpop.f32.mrb[122].mxu0 }
 0x293   : > { %v9833_v40 = vadd.f32 %v7242_v48, %v9819_v41  ;;  %v2267_v26 = vadd.f32 %v7482_v34, %v9718_v4  ;;  %v1301_v21 = vpop.f32.mrb[59].mxu1  ;;  %v2261_v0 = vpop.f32.mrb[123].mxu0 }
 0x294   : > { %11522 = vst [vmem:[#allocation40_spill] sm:$0xff] %v9830_v49  ;;  %v9837_v3 = vadd.f32 %v9819_v41, %v1301_v21  ;;  %v2262_v27 = vadd.f32 %v9718_v4, %v2261_v0 }
 0x295   : > { %11523 = vst [vmem:[#allocation41_spill] sm:$0xff] %v9833_v40 }
 0x296   : > { %11524 = vst [vmem:[#allocation42_spill] sm:$0xff] %v9837_v3  ;;  %v9840_v47 = vpack.c.bf16 %v2267_v26, %v2262_v27  ;;  %v7245_v24 = vpop.f32.mrb[60].mxu1  ;;  %v7485_v14 = vpop.f32.mrb[124].mxu0 }
 0x297   : > { %v9843_v29 = vadd.f32 %v7245_v24, %v9819_v41  ;;  %v2277_v61 = vadd.f32 %v7485_v14, %v9718_v4  ;;  %v1311_v48 = vpop.f32.mrb[61].mxu1  ;;  %v2271_v49 = vpop.f32.mrb[125].mxu0 }
 0x298   : > { %11525 = vst [vmem:[#allocation43_spill] sm:$0xff] %v9840_v47  ;;  %v9847_v34 = vadd.f32 %v9819_v41, %v1311_v48  ;;  %v2272_v40 = vadd.f32 %v9718_v4, %v2271_v49  ;;  %v9863_v49 = vld [vmem:[%s11423_s4 + $0x2] ss:$0 sm:$0xff] }
 0x299   : > { %11526 = vst [vmem:[#allocation44_spill] sm:$0xff] %v9843_v29 }
 0x29a   : > { %11527 = vst [vmem:[#allocation45_spill] sm:$0xff] %v9847_v34  ;;  %v9850_v21 = vpack.c.bf16 %v2277_v61, %v2272_v40  ;;  %v7248_v3 = vpop.f32.mrb[62].mxu1  ;;  %v7488_v0 = vpop.f32.mrb[126].mxu0 }
 0x29b   : > { %v9853_v26 = vadd.f32 %v7248_v3, %v9819_v41  ;;  %v2287_v27 = vadd.f32 %v7488_v0, %v9718_v4  ;;  %v1321_v24 = vpop.f32.mrb[63].mxu1  ;;  %v2281_v47 = vpop.f32.mrb[127].mxu0 }
 0x29c   : > { %11528 = vst [vmem:[#allocation46_spill] sm:$0xff] %v9850_v21  ;;  %v9857_v14 = vadd.f32 %v9819_v41, %v1321_v24  ;;  %v2282_v29 = vadd.f32 %v9718_v4, %v2281_v47 }
 0x29d   : > { %11529 = vst [vmem:[#allocation47_spill] sm:$0xff] %v9853_v26  ;;  %v11568_v24 = vld [vmem:[#allocation42_spill] sm:$0xff] }
 0x29e   : > { %11530 = vst [vmem:[#allocation48_spill] sm:$0xff] %v9857_v14  ;;  %v9865_v40 = vpack.c.bf16 %v2287_v27, %v2282_v29  ;;  %v7263_v61 = vpop.f32.mrb[64].mxu1 }
 0x29f   : > { %v1417_v3 = vadd.f32 %v7263_v61, %v9863_v49  ;;  %v1411_v48 = vpop.f32.mrb[65].mxu1 }
 0x2a0   : > { %11531 = vst [vmem:[#allocation49_spill] sm:$0xff] %v9865_v40  ;;  %v1412_v0 = vadd.f32 %v9863_v49, %v1411_v48 }
 0x2a2   : > { %v8136_v4 = vpack.c.bf16 %v1417_v3, %v1412_v0  ;;  %v7266_v47 = vpop.f32.mrb[66].mxu1 }
 0x2a3   : > { %v1427_v21 = vadd.f32 %v7266_v47, %v9863_v49  ;;  %v1421_v26 = vpop.f32.mrb[67].mxu1 }
 0x2a4   : > { %v1422_v29 = vadd.f32 %v9863_v49, %v1421_v26  ;;  %8138 = vmatprep.subr.msk.bf16.mxu1 %vm9871_vm3, %v8136_v4 }
 0x2a5   : > { %8141 = vmatpush3.bf16.xpose.msk.msra.mxu1 %vm9871_vm3, %v8136_v4 }
 0x2a6   : > { %v8142_v27 = vpack.c.bf16 %v1427_v21, %v1422_v29  ;;  %v7269_v61 = vpop.f32.mrb[68].mxu1 }
 0x2a7   : > { %v1437_v48 = vadd.f32 %v7269_v61, %v9863_v49  ;;  %v1431_v40 = vpop.f32.mrb[69].mxu1 }
 0x2a8   : > { %v1432_v14 = vadd.f32 %v9863_v49, %v1431_v40  ;;  %8144 = vmatprep.subr.msk.bf16.mxu1 %vm9871_vm3, %v8142_v27 }
 0x2aa   : > { %v8148_v3 = vpack.c.bf16 %v1437_v48, %v1432_v14  ;;  %v7272_v0 = vpop.f32.mrb[70].mxu1 }
 0x2ab   : > { %v1447_v26 = vadd.f32 %v7272_v0, %v9863_v49  ;;  %v1441_v47 = vpop.f32.mrb[71].mxu1 }
 0x2ac   : > { %v1442_v34 = vadd.f32 %v9863_v49, %v1441_v47 }
 0x2ad   : > { %8147 = vmatpush3.bf16.xpose.msk.msra.mxu1 %vm9871_vm3, %v8142_v27 }
 0x2ae   : > { %v8154_v21 = vpack.c.bf16 %v1447_v26, %v1442_v34  ;;  %v7275_v4 = vpop.f32.mrb[72].mxu1  ;;  %8150 = vmatprep.subr.msk.bf16.mxu1 %vm9871_vm3, %v8148_v3 }
 0x2af   : > { %v1457_v40 = vadd.f32 %v7275_v4, %v9863_v49  ;;  %v1451_v29 = vpop.f32.mrb[73].mxu1 }
 0x2b0   : > { %v1452_v61 = vadd.f32 %v9863_v49, %v1451_v29 }
 0x2b2   : > { %v8160_v14 = vpack.c.bf16 %v1457_v40, %v1452_v61  ;;  %v7278_v48 = vpop.f32.mrb[74].mxu1 }
 0x2b3   : > { %v1467_v0 = vadd.f32 %v7278_v48, %v9863_v49  ;;  %v1461_v37 = vpop.f32.mrb[75].mxu1 }
 0x2b4   : > { %v1462_v47 = vadd.f32 %v9863_v49, %v1461_v37  ;;  %8162 = vmatprep.subr.msk.bf16.mxu0 %vm9871_vm3, %v8160_v14 }
 0x2b5   : > { %8153 = vmatpush3.bf16.xpose.msk.msra.mxu1 %vm9871_vm3, %v8148_v3  ;;  %8165 = vmatpush3.bf16.xpose.msk.msra.mxu0 %vm9871_vm3, %v8160_v14 }
 0x2b6   : > { %v8166_v34 = vpack.c.bf16 %v1467_v0, %v1462_v47  ;;  %v7281_v27 = vpop.f32.mrb[76].mxu1  ;;  %8156 = vmatprep.subr.msk.bf16.mxu1 %vm9871_vm3, %v8154_v21 }
 0x2b7   : > { %v1477_v26 = vadd.f32 %v7281_v27, %v9863_v49  ;;  %v1471_v4 = vpop.f32.mrb[77].mxu1 }
 0x2b8   : > { %v1472_v40 = vadd.f32 %v9863_v49, %v1471_v4  ;;  %8168 = vmatprep.subr.msk.bf16.mxu0 %vm9871_vm3, %v8166_v34  ;;  %v937_v4 = vadd.f32 %v9479_v1, %v9548_v62  ;;  %v947_v1 = vadd.f32 %v9495_v17, %v9548_v62  ;;  %v957_v17 = vadd.f32 %v9511_v33, %v9548_v62 }
 0x2b9   : > { %v967_v33 = vadd.f32 %v9527_v45, %v9548_v62  ;;  %v977_v45 = vadd.f32 %v9543_v58, %v9548_v62  ;;  %v987_v58 = vadd.f32 %v9564_v25, %v9548_v62  ;;  %v997_v25 = vadd.f32 %v9580_v56, %v9548_v62 }
 0x2ba   : > { %v8172_v37 = vpack.c.bf16 %v1477_v26, %v1472_v40  ;;  %v7284_v29 = vpop.f32.mrb[78].mxu1  ;;  %v1007_v56 = vadd.f32 %v9596_v20, %v9548_v62 }
 0x2bb   : > { %v1487_v3 = vadd.f32 %v7284_v29, %v9863_v49  ;;  %v1481_v61 = vpop.f32.mrb[79].mxu1 }
 0x2bc   : > { %v1482_v14 = vadd.f32 %v9863_v49, %v1481_v61 }
 0x2bd   : > { %8159 = vmatpush3.bf16.xpose.msk.msra.mxu1 %vm9871_vm3, %v8154_v21  ;;  %8171 = vmatpush3.bf16.xpose.msk.msra.mxu0 %vm9871_vm3, %v8166_v34  ;;  %v942_v21 = vadd.f32 %v9548_v62, %v9498_v23 }
 0x2be   : > { %v8178_v48 = vpack.c.bf16 %v1487_v3, %v1482_v14  ;;  %v7287_v0 = vpop.f32.mrb[80].mxu1  ;;  %8174 = vmatprep.subr.msk.bf16.mxu0 %vm9871_vm3, %v8172_v37 }
 0x2bf   : > { %v1497_v47 = vadd.f32 %v7287_v0, %v9863_v49  ;;  %v1491_v27 = vpop.f32.mrb[81].mxu1  ;;  %v952_v0 = vadd.f32 %v9548_v62, %v9514_v52  ;;  %v962_v52 = vadd.f32 %v9548_v62, %v9530_v42 }
 0x2c0   : > { %v1492_v26 = vadd.f32 %v9863_v49, %v1491_v27 }
 0x2c2   : > { %v8184_v40 = vpack.c.bf16 %v1497_v47, %v1492_v26  ;;  %v7290_v29 = vpop.f32.mrb[82].mxu1 }
 0x2c3   : > { %v1507_v34 = vadd.f32 %v7290_v29, %v9863_v49  ;;  %v1501_v3 = vpop.f32.mrb[83].mxu1 }
 0x2c4   : > { %v1502_v61 = vadd.f32 %v9863_v49, %v1501_v3  ;;  %7506 = vmatmul.mubr.msk.f32.vlgmr.msra.gmra.mrb[128].mxu1 %vm2298_vm2, %v937_v4  ;;  %8186 = vmatprep.subr.msk.bf16.mxu1 %vm9871_vm3, %v8184_v40  ;;  %v1012_v3 = vadd.f32 %v9548_v62, %v9615_v18  ;;  %v982_v18 = vadd.f32 %v9548_v62, %v9567_v38 }
 0x2c5   : > { %7508 = vmatprep.mubr.msk.f32.mxu1 %vm2298_vm2, %v942_v21  ;;  %8177 = vmatpush3.bf16.xpose.msk.msra.mxu0 %vm9871_vm3, %v8172_v37 }
 0x2c6   : > { %v8190_v14 = vpack.c.bf16 %v1507_v34, %v1502_v61  ;;  %8189 = vmatpush3.bf16.xpose.msk.msra.mxu1 %vm9871_vm3, %v8184_v40  ;;  %v7293_v23 = vpop.f32.mrb[84].mxu1  ;;  %8180 = vmatprep.subr.msk.bf16.mxu0 %vm9871_vm3, %v8178_v48 }
 0x2c7   : > { %v1517_v47 = vadd.f32 %v7293_v23, %v9863_v49  ;;  %v1511_v27 = vpop.f32.mrb[85].mxu1 }
 0x2c8   : > { %v1512_v26 = vadd.f32 %v9863_v49, %v1511_v27  ;;  %7509 = vmatmul.mubr.msk.f32.gmra.mrb[130].mxu1 %vm2298_vm2, %v947_v1  ;;  %8192 = vmatprep.subr.msk.bf16.mxu1 %vm9871_vm3, %v8190_v14 }
 0x2c9   : > { %7511 = vmatprep.mubr.msk.f32.mxu1 %vm2298_vm2, %v952_v0 }
 0x2ca   : > { %v8196_v37 = vpack.c.bf16 %v1517_v47, %v1512_v26  ;;  %v7296_v4 = vpop.f32.mrb[86].mxu1 }
 0x2cb   : > { %v1527_v40 = vadd.f32 %v7296_v4, %v9863_v49  ;;  %v1521_v29 = vpop.f32.mrb[87].mxu1 }
 0x2cc   : > { %v1522_v21 = vadd.f32 %v9863_v49, %v1521_v29  ;;  %7512 = vmatmul.mubr.msk.f32.gmra.mrb[132].mxu1 %vm2298_vm2, %v957_v17  ;;  %v992_v17 = vadd.f32 %v9548_v62, %v9583_v53  ;;  %v1002_v29 = vadd.f32 %v9548_v62, %v9599_v5 }
 0x2cd   : > { %7514 = vmatprep.mubr.msk.f32.mxu1 %vm2298_vm2, %v962_v52  ;;  %8183 = vmatpush3.bf16.xpose.msk.msra.mxu0 %vm9871_vm3, %v8178_v48 }
 0x2ce   : > { %v8202_v34 = vpack.c.bf16 %v1527_v40, %v1522_v21  ;;  %8195 = vmatpush3.bf16.xpose.msk.msra.mxu1 %vm9871_vm3, %v8190_v14  ;;  %v7299_v42 = vpop.f32.mrb[88].mxu1 }
 0x2cf   : > { %v1537_v61 = vadd.f32 %v7299_v42, %v9863_v49  ;;  %8198 = vmatprep.subr.msk.bf16.mxu1 %vm9871_vm3, %v8196_v37  ;;  %v1531_v1 = vpop.f32.mrb[89].mxu1 }
 0x2d0   : > { %v1532_v23 = vadd.f32 %v9863_v49, %v1531_v1  ;;  %7515 = vmatmul.mubr.msk.f32.gmra.mrb[134].mxu1 %vm2298_vm2, %v967_v33 }
 0x2d1   : > { %7561 = vmatprep.mubr.msk.f32.mxu1 %vm2298_vm2, %v1012_v3  ;;  %v10001_v3 = vld [vmem:[%s11423_s4 + $0x4] ss:$0 sm:$0xff] }
 0x2d2   : > { %v8208_v48 = vpack.c.bf16 %v1537_v61, %v1532_v23  ;;  %v7302_v14 = vpop.f32.mrb[90].mxu1  ;;  %v1052_v61 = vadd.f32 %v9548_v62, %v9679_v28 }
 0x2d3   : > { %v1547_v0 = vadd.f32 %v7302_v14, %v9863_v49  ;;  %v1541_v47 = vpop.f32.mrb[91].mxu1 }
 0x2d4   : > { %v1542_v27 = vadd.f32 %v9863_v49, %v1541_v47  ;;  %7534 = vmatmul.mubr.msk.f32.vlgmr.msra.gmra.mrb[128].mxu0 %vm2298_vm2, %v977_v45  ;;  %8210 = vmatprep.subr.msk.bf16.mxu0 %vm9871_vm3, %v8208_v48 }
 0x2d5   : > { %7536 = vmatprep.mubr.msk.f32.mxu0 %vm2298_vm2, %v982_v18  ;;  %8213 = vmatpush3.bf16.xpose.msk.msra.mxu0 %vm9871_vm3, %v8208_v48  ;;  %v1017_v48 = vadd.f32 %v9612_v36, %v9548_v62  ;;  %v1022_v18 = vadd.f32 %v9548_v62, %v9631_v39 }
 0x2d6   : > { %v8214_v26 = vpack.c.bf16 %v1547_v0, %v1542_v27  ;;  %8201 = vmatpush3.bf16.xpose.msk.msra.mxu1 %vm9871_vm3, %v8196_v37  ;;  %v7305_v38 = vpop.f32.mrb[92].mxu1  ;;  %v1027_v27 = vadd.f32 %v9628_v57, %v9548_v62 }
 0x2d7   : > { %v1557_v4 = vadd.f32 %v7305_v38, %v9863_v49  ;;  %8204 = vmatprep.subr.msk.bf16.mxu1 %vm9871_vm3, %v8202_v34  ;;  %v1551_v52 = vpop.f32.mrb[93].mxu1 }
 0x2d8   : > { %v1552_v40 = vadd.f32 %v9863_v49, %v1551_v52  ;;  %7537 = vmatmul.mubr.msk.f32.gmra.mrb[130].mxu0 %vm2298_vm2, %v987_v58  ;;  %8216 = vmatprep.subr.msk.bf16.mxu0 %vm9871_vm3, %v8214_v26 }
 0x2d9   : > { %7539 = vmatprep.mubr.msk.f32.mxu0 %vm2298_vm2, %v992_v17  ;;  %v1037_v17 = vadd.f32 %v9644_v11, %v9548_v62 }
 0x2da   : > { %v8220_v37 = vpack.c.bf16 %v1557_v4, %v1552_v40  ;;  %v7308_v53 = vpop.f32.mrb[94].mxu1  ;;  %v1042_v40 = vadd.f32 %v9548_v62, %v9663_v59 }
 0x2db   : > { %v1567_v21 = vadd.f32 %v7308_v53, %v9863_v49  ;;  %v1561_v33 = vpop.f32.mrb[95].mxu1 }
 0x2dc   : > { %v1562_v42 = vadd.f32 %v9863_v49, %v1561_v33  ;;  %7540 = vmatmul.mubr.msk.f32.gmra.mrb[132].mxu0 %vm2298_vm2, %v997_v25 }
 0x2dd   : > { %7542 = vmatprep.mubr.msk.f32.mxu0 %vm2298_vm2, %v1002_v29  ;;  %8219 = vmatpush3.bf16.xpose.msk.msra.mxu0 %vm9871_vm3, %v8214_v26  ;;  %v1032_v26 = vadd.f32 %v9548_v62, %v9647_v50  ;;  %v1172_v29 = vadd.f32 %v9819_v41, %v9725_v12 }
 0x2de   : > { %v8226_v5 = vpack.c.bf16 %v1567_v21, %v1562_v42  ;;  %8207 = vmatpush3.bf16.xpose.msk.msra.mxu1 %vm9871_vm3, %v8202_v34  ;;  %v7383_v49 = vpop.f32.mrb[96].mxu1  ;;  %8222 = vmatprep.subr.msk.bf16.mxu0 %vm9871_vm3, %v8220_v37  ;;  %v1062_v42 = vadd.f32 %v9548_v62, %v9696_v43 }
 0x2df   : > { %v1897_v1 = vadd.f32 %v7383_v49, %v10001_v3  ;;  %8234 = vmatprep.subr.msk.bf16.mxu1 %vm9871_vm3, %v9489_v13  ;;  %v1891_v23 = vpop.f32.mrb[97].mxu1 }
 0x2e0   : > { %v1892_v20 = vadd.f32 %v10001_v3, %v1891_v23  ;;  %7543 = vmatmul.mubr.msk.f32.gmra.mrb[134].mxu0 %vm2298_vm2, %v1007_v56 }
 0x2e1   : > { %7589 = vmatprep.mubr.msk.f32.mxu0 %vm2298_vm2, %v1052_v61  ;;  %v1072_v61 = vadd.f32 %v9548_v62, %v9704_v35  ;;  %v1082_v35 = vadd.f32 %v9548_v62, %v9712_v10 }
 0x2e2   : > { %v10021_v34 = vpack.c.bf16 %v1897_v1, %v1892_v20  ;;  %v7386_v45 = vpop.f32.mrb[98].mxu1 }
 0x2e3   : > { %v1907_v28 = vadd.f32 %v7386_v45, %v10001_v3  ;;  %v1901_v14 = vpop.f32.mrb[99].mxu1 }
 0x2e4   : > { %v1902_v0 = vadd.f32 %v10001_v3, %v1901_v14 }
 0x2e5   : > { %7562 = vmatmul.mubr.msk.f32.vlgmr.msra.gmra.mrb[136].mxu1 %vm2298_vm2, %v1017_v48  ;;  %8225 = vmatpush3.bf16.xpose.msk.msra.mxu0 %vm9871_vm3, %v8220_v37  ;;  %v1047_v37 = vadd.f32 %v9660_v31, %v9548_v62  ;;  %v1057_v31 = vadd.f32 %v9676_v54, %v9548_v62  ;;  %v1067_v54 = vadd.f32 %v9693_v9, %v9548_v62 }
 0x2e6   : > { %v10032_v47 = vpack.c.bf16 %v1907_v28, %v1902_v0  ;;  %7564 = vmatprep.mubr.msk.f32.mxu1 %vm2298_vm2, %v1022_v18  ;;  %8237 = vmatpush3.bf16.xpose.msk.msra.mxu1 %vm9871_vm3, %v9489_v13  ;;  %v7389_v36 = vpop.f32.mrb[100].mxu1  ;;  %v1212_v18 = vadd.f32 %v9819_v41, %v9757_v8 }
 0x2e7   : > { %v1917_v39 = vadd.f32 %v7389_v36, %v10001_v3  ;;  %8228 = vmatprep.subr.msk.bf16.mxu0 %vm9871_vm3, %v8226_v5  ;;  %8240 = vmatprep.subr.msk.bf16.mxu1 %vm9871_vm3, %v9505_v30  ;;  %v1911_v58 = vpop.f32.mrb[101].mxu1  ;;  %v1177_v36 = vadd.f32 %v9722_v60, %v9819_v41 }
 0x2e8   : > { %v1912_v38 = vadd.f32 %v10001_v3, %v1911_v58 }
 0x2e9   : > { %7565 = vmatmul.mubr.msk.f32.gmra.mrb[138].mxu1 %vm2298_vm2, %v1027_v27 }
 0x2ea   : > { %v10050_v13 = vpack.c.bf16 %v1917_v39, %v1912_v38  ;;  %7567 = vmatprep.mubr.msk.f32.mxu1 %vm2298_vm2, %v1032_v26  ;;  %v7392_v57 = vpop.f32.mrb[102].mxu1  ;;  %v1182_v39 = vadd.f32 %v9819_v41, %v9733_v2  ;;  %v1187_v2 = vadd.f32 %v9730_v63, %v9819_v41 }
 0x2eb   : > { %v1927_v4 = vadd.f32 %v7392_v57, %v10001_v3  ;;  %v1921_v52 = vpop.f32.mrb[103].mxu1  ;;  %v1192_v57 = vadd.f32 %v9819_v41, %v9741_v22 }
 0x2ec   : > { %v1922_v50 = vadd.f32 %v10001_v3, %v1921_v52 }
 0x2ed   : > { %7568 = vmatmul.mubr.msk.f32.gmra.mrb[140].mxu1 %vm2298_vm2, %v1037_v17  ;;  %8231 = vmatpush3.bf16.xpose.msk.msra.mxu0 %vm9871_vm3, %v8226_v5 }
 0x2ee   : > { %v10062_v25 = vpack.c.bf16 %v1927_v4, %v1922_v50  ;;  %7570 = vmatprep.mubr.msk.f32.mxu1 %vm2298_vm2, %v1042_v40  ;;  %8243 = vmatpush3.bf16.xpose.msk.msra.mxu1 %vm9871_vm3, %v9505_v30  ;;  %v7395_v11 = vpop.f32.mrb[104].mxu1  ;;  %v11538_v4 = vld [vmem:[#allocation10_spill] sm:$0xff] }
 0x2ef   : > { %v1937_v59 = vadd.f32 %v7395_v11, %v10001_v3  ;;  %8246 = vmatprep.subr.msk.bf16.mxu1 %vm9871_vm3, %v9521_v44  ;;  %8258 = vmatprep.subr.msk.bf16.mxu0 %vm9871_vm3, %v9557_v19  ;;  %v1931_v53 = vpop.f32.mrb[105].mxu1  ;;  %v1197_v52 = vadd.f32 %v11538_v4, %v9819_v41  ;;  %v11539_v11 = vld [vmem:[#allocation13_spill] sm:$0xff]  ;;  %v11557_v4 = vld [vmem:[#allocation6_spill] sm:$0xff] }
 0x2f0   : > { %v1932_v30 = vadd.f32 %v10001_v3, %v1931_v53 }
 0x2f1   : > { %7571 = vmatmul.mubr.msk.f32.gmra.mrb[142].mxu1 %vm2298_vm2, %v1047_v37  ;;  %v1202_v37 = vadd.f32 %v9819_v41, %v11539_v11  ;;  %v11560_v11 = vld [vmem:[#allocation30_spill] sm:$0xff] }
 0x2f2   : > { %v10083_v21 = vpack.c.bf16 %v1937_v59, %v1932_v30  ;;  %7617 = vmatprep.mubr.msk.f32.mxu1 %vm2298_vm2, %v1172_v29  ;;  %v7398_v33 = vpop.f32.mrb[106].mxu1  ;;  %v11540_v29 = vld [vmem:[#allocation12_spill] sm:$0xff] }
 0x2f3   : > { %v1947_v56 = vadd.f32 %v7398_v33, %v10001_v3  ;;  %v1941_v5 = vpop.f32.mrb[107].mxu1  ;;  %v1207_v30 = vadd.f32 %v11540_v29, %v9819_v41  ;;  %v11541_v33 = vld [vmem:[#allocation2_spill] sm:$0xff]  ;;  %v11562_v29 = vld [vmem:[#allocation7_spill] sm:$0xff] }
 0x2f4   : > { %11534 = vst [vmem:[#allocation50_spill] sm:$0xff] %v10083_v21  ;;  %v1942_v12 = vadd.f32 %v10001_v3, %v1941_v5  ;;  %7590 = vmatmul.mubr.msk.f32.vlgmr.msra.gmra.mrb[136].mxu0 %vm2298_vm2, %v1057_v31 }
 0x2f5   : > { %7592 = vmatprep.mubr.msk.f32.mxu0 %vm2298_vm2, %v1062_v42  ;;  %8261 = vmatpush3.bf16.xpose.msk.msra.mxu0 %vm9871_vm3, %v9557_v19  ;;  %v11542_v42 = vld [vmem:[#allocation4_spill] sm:$0xff] }
 0x2f6   : > { %v10097_v49 = vpack.c.bf16 %v1947_v56, %v1942_v12  ;;  %8249 = vmatpush3.bf16.xpose.msk.msra.mxu1 %vm9871_vm3, %v9521_v44  ;;  %v7401_v43 = vpop.f32.mrb[108].mxu1  ;;  %8264 = vmatprep.subr.msk.bf16.mxu0 %vm9871_vm3, %v9574_v46  ;;  %v1077_v44 = vadd.f32 %v9701_v7, %v9548_v62  ;;  %v1087_v7 = vadd.f32 %v9709_v15, %v9548_v62  ;;  %v11543_v56 = vld [vmem:[#allocation27_spill] sm:$0xff] }
 0x2f7   : > { %v1957_v1 = vadd.f32 %v7401_v43, %v10001_v3  ;;  %8252 = vmatprep.subr.msk.bf16.mxu1 %vm9871_vm3, %v9537_v55  ;;  %v1951_v19 = vpop.f32.mrb[109].mxu1  ;;  %v1252_v5 = vadd.f32 %v9819_v41, %v11543_v56  ;;  %v11544_v12 = vld [vmem:[#allocation15_spill] sm:$0xff] }
 0x2f8   : > { %11535 = vst [vmem:[#allocation51_spill] sm:$0xff] %v10097_v49  ;;  %v1952_v9 = vadd.f32 %v10001_v3, %v1951_v19  ;;  %7593 = vmatmul.mubr.msk.f32.gmra.mrb[138].mxu0 %vm2298_vm2, %v1067_v54  ;;  %v1217_v54 = vadd.f32 %v11544_v12, %v9819_v41  ;;  %v11574_v12 = vld [vmem:[#allocation8_spill] sm:$0xff] }
 0x2f9   : > { %7595 = vmatprep.mubr.msk.f32.mxu0 %vm2298_vm2, %v1072_v61 }
 0x2fa   : > { %v10116_v23 = vpack.c.bf16 %v1957_v1, %v1952_v9  ;;  %v7404_v20 = vpop.f32.mrb[110].mxu1  ;;  %v11546_v1 = vld [vmem:[#allocation18_spill] sm:$0xff] }
 0x2fb   : > { %v1967_v45 = vadd.f32 %v7404_v20, %v10001_v3  ;;  %v1961_v48 = vpop.f32.mrb[111].mxu1  ;;  %v1222_v19 = vadd.f32 %v9819_v41, %v11546_v1 }
 0x2fc   : > { %11536 = vst [vmem:[#allocation52_spill] sm:$0xff] %v10116_v23  ;;  %v1962_v28 = vadd.f32 %v10001_v3, %v1961_v48  ;;  %7596 = vmatmul.mubr.msk.f32.gmra.mrb[140].mxu0 %vm2298_vm2, %v1077_v44 }
 0x2fd   : > { %7598 = vmatprep.mubr.msk.f32.mxu0 %vm2298_vm2, %v1082_v35  ;;  %8267 = vmatpush3.bf16.xpose.msk.msra.mxu0 %vm9871_vm3, %v9574_v46  ;;  %v11547_v35 = vld [vmem:[#allocation17_spill] sm:$0xff] }
 0x2fe   : > { %v10129_v14 = vpack.c.bf16 %v1967_v45, %v1962_v28  ;;  %8255 = vmatpush3.bf16.xpose.msk.msra.mxu1 %vm9871_vm3, %v9537_v55  ;;  %v7407_v10 = vpop.f32.mrb[112].mxu1  ;;  %8270 = vmatprep.subr.msk.bf16.mxu0 %vm9871_vm3, %v9590_v16  ;;  %v1227_v45 = vadd.f32 %v11547_v35, %v9819_v41 }
 0x2ff   : > { %v1977_v0 = vadd.f32 %v7407_v10, %v10001_v3  ;;  %8282 = vmatprep.subr.msk.bf16.mxu1 %vm9871_vm3, %v9622_v51  ;;  %v1971_v62 = vpop.f32.mrb[113].mxu1  ;;  %v11550_v10 = vld [vmem:[#allocation21_spill] sm:$0xff] }
 0x300   : > { %11537 = vst [vmem:[#allocation53_spill] sm:$0xff] %v10129_v14  ;;  %v1972_v46 = vadd.f32 %v10001_v3, %v1971_v62  ;;  %7599 = vmatmul.mubr.msk.f32.gmra.mrb[142].mxu0 %vm2298_vm2, %v1087_v7  ;;  %v11549_v7 = vld [vmem:[#allocation5_spill] sm:$0xff]  ;;  %v11551_v62 = vld [vmem:[#allocation3_spill] sm:$0xff] }
 0x301   : > { %7645 = vmatprep.mubr.msk.f32.mxu0 %vm2298_vm2, %v1212_v18  ;;  %v1232_v18 = vadd.f32 %v9819_v41, %v11550_v10 }
 0x302   : > { %v10146_v55 = vpack.c.bf16 %v1977_v0, %v1972_v46  ;;  %v7410_v15 = vpop.f32.mrb[114].mxu1 }
 0x303   : > { %v1987_v8 = vadd.f32 %v7410_v15, %v10001_v3  ;;  %v1981_v27 = vpop.f32.mrb[115].mxu1 }
 0x304   : > { %v1982_v58 = vadd.f32 %v10001_v3, %v1981_v27 }
 0x305   : > { %7618 = vmatmul.mubr.msk.f32.vlgmr.msra.gmra.mrb[144].mxu1 %vm2298_vm2, %v1177_v36  ;;  %8273 = vmatpush3.bf16.xpose.msk.msra.mxu0 %vm9871_vm3, %v9590_v16  ;;  %v11552_v36 = vld [vmem:[#allocation20_spill] sm:$0xff] }
 0x306   : > { %v10158_v26 = vpack.c.bf16 %v1987_v8, %v1982_v58  ;;  %7620 = vmatprep.mubr.msk.f32.mxu1 %vm2298_vm2, %v1182_v39  ;;  %8285 = vmatpush3.bf16.xpose.msk.msra.mxu1 %vm9871_vm3, %v9622_v51  ;;  %v7413_v60 = vpop.f32.mrb[116].mxu1  ;;  %v1237_v8 = vadd.f32 %v11552_v36, %v9819_v41  ;;  %v11554_v58 = vld [vmem:[#allocation24_spill] sm:$0xff] }
 0x307   : > { %v1997_v38 = vadd.f32 %v7413_v60, %v10001_v3  ;;  %8276 = vmatprep.subr.msk.bf16.mxu0 %vm9871_vm3, %v9606_v32  ;;  %8288 = vmatprep.subr.msk.bf16.mxu1 %vm9871_vm3, %v9638_v6  ;;  %v1991_v16 = vpop.f32.mrb[117].mxu1  ;;  %v1242_v60 = vadd.f32 %v9819_v41, %v11554_v58  ;;  %v10392_v58 = vld [vmem:[%s11424_s5 + $0x38] sm:$0xff] }
 0x308   : > { %v1992_v51 = vadd.f32 %v10001_v3, %v1991_v16 }
 0x309   : > { %7621 = vmatmul.mubr.msk.f32.gmra.mrb[146].mxu1 %vm2298_vm2, %v1187_v2 }
 0x30a   : > { %v10177_v17 = vpack.c.bf16 %v1997_v38, %v1992_v51  ;;  %7623 = vmatprep.mubr.msk.f32.mxu1 %vm2298_vm2, %v1192_v57  ;;  %v7416_v63 = vpop.f32.mrb[118].mxu1  ;;  %v11555_v57 = vld [vmem:[#allocation23_spill] sm:$0xff] }
 0x30b   : > { %v2007_v40 = vadd.f32 %v7416_v63, %v10001_v3  ;;  %v2001_v50 = vpop.f32.mrb[119].mxu1  ;;  %v1247_v51 = vadd.f32 %v11555_v57, %v9819_v41  ;;  %v10402_v57 = vld [vmem:[%s11424_s5 + $0x30] sm:$0xff] }
 0x30c   : > { %v2002_v22 = vadd.f32 %v10001_v3, %v2001_v50 }
 0x30d   : > { %7624 = vmatmul.mubr.msk.f32.gmra.mrb[148].mxu1 %vm2298_vm2, %v1197_v52  ;;  %8279 = vmatpush3.bf16.xpose.msk.msra.mxu0 %vm9871_vm3, %v9606_v32 }
 0x30e   : > { %v10190_v59 = vpack.c.bf16 %v2007_v40, %v2002_v22  ;;  %7626 = vmatprep.mubr.msk.f32.mxu1 %vm2298_vm2, %v1202_v37  ;;  %8291 = vmatpush3.bf16.xpose.msk.msra.mxu1 %vm9871_vm3, %v9638_v6  ;;  %v7419_v53 = vpop.f32.mrb[120].mxu1  ;;  %v11559_v40 = vld [vmem:[#allocation26_spill] sm:$0xff]  ;;  %v1262_v37 = vadd.f32 %v9819_v41, %v11560_v11  ;;  %v11561_v22 = vld [vmem:[#allocation29_spill] sm:$0xff] }
 0x30f   : > { %v2017_v31 = vadd.f32 %v7419_v53, %v10001_v3  ;;  %8294 = vmatprep.subr.msk.bf16.mxu1 %vm9871_vm3, %v11541_v33  ;;  %8306 = vmatprep.subr.msk.bf16.mxu0 %vm9871_vm3, %v11542_v42  ;;  %v2011_v32 = vpop.f32.mrb[121].mxu1  ;;  %v1257_v50 = vadd.f32 %v11559_v40, %v9819_v41  ;;  %v1267_v53 = vadd.f32 %v11561_v22, %v9819_v41 }
 0x310   : > { %v2012_v6 = vadd.f32 %v10001_v3, %v2011_v32 }
 0x311   : > { %7627 = vmatmul.mubr.msk.f32.gmra.mrb[150].mxu1 %vm2298_vm2, %v1207_v30  ;;  %v11563_v30 = vld [vmem:[#allocation33_spill] sm:$0xff] }
 0x312   : > { %v10211_v43 = vpack.c.bf16 %v2017_v31, %v2012_v6  ;;  %7673 = vmatprep.mubr.msk.f32.mxu1 %vm2298_vm2, %v1252_v5  ;;  %v7422_v61 = vpop.f32.mrb[122].mxu1  ;;  %v1272_v31 = vadd.f32 %v9819_v41, %v11563_v30  ;;  %v11567_v5 = vld [vmem:[#allocation38_spill] sm:$0xff]  ;;  %v11572_v6 = vld [vmem:[#allocation48_spill] sm:$0xff] }
 0x313   : > { %v2027_v9 = vadd.f32 %v7422_v61, %v10001_v3  ;;  %v2021_v44 = vpop.f32.mrb[123].mxu1  ;;  %v10339_v61 = vld [vmem:[%s11424_s5] sm:$0xff] }
 0x314   : > { %11545 = vst [vmem:[#allocation10_spill] sm:$0xff] %v10211_v43  ;;  %v2022_v20 = vadd.f32 %v10001_v3, %v2021_v44  ;;  %7646 = vmatmul.mubr.msk.f32.vlgmr.msra.gmra.mrb[144].mxu0 %vm2298_vm2, %v1217_v54 }
 0x315   : > { %7648 = vmatprep.mubr.msk.f32.mxu0 %vm2298_vm2, %v1222_v19  ;;  %8309 = vmatpush3.bf16.xpose.msk.msra.mxu0 %vm9871_vm3, %v11542_v42  ;;  %v11565_v42 = vld [vmem:[#allocation36_spill] sm:$0xff] }
 0x316   : > { %v10225_v48 = vpack.c.bf16 %v2027_v9, %v2022_v20  ;;  %8297 = vmatpush3.bf16.xpose.msk.msra.mxu1 %vm9871_vm3, %v11541_v33  ;;  %v7425_v28 = vpop.f32.mrb[124].mxu1  ;;  %8312 = vmatprep.subr.msk.bf16.mxu0 %vm9871_vm3, %v11549_v7  ;;  %v1282_v32 = vadd.f32 %v9819_v41, %v11565_v42  ;;  %v10357_v20 = vld [vmem:[%s11424_s5 + $0x10] sm:$0xff] }
 0x317   : > { %v2037_v0 = vadd.f32 %v7425_v28, %v10001_v3  ;;  %8300 = vmatprep.subr.msk.bf16.mxu1 %vm9871_vm3, %v11551_v62  ;;  %v2031_v46 = vpop.f32.mrb[125].mxu1  ;;  %v10365_v28 = vld [vmem:[%s11424_s5 + $0x28] sm:$0xff] }
 0x318   : > { %11548 = vst [vmem:[#allocation13_spill] sm:$0xff] %v10225_v48  ;;  %v2032_v15 = vadd.f32 %v10001_v3, %v2031_v46  ;;  %7649 = vmatmul.mubr.msk.f32.gmra.mrb[146].mxu0 %vm2298_vm2, %v1227_v45 }
 0x319   : > { %7651 = vmatprep.mubr.msk.f32.mxu0 %vm2298_vm2, %v1232_v18 }
 0x31a   : > { %v10244_v27 = vpack.c.bf16 %v2037_v0, %v2032_v15  ;;  %v7428_v39 = vpop.f32.mrb[126].mxu1 }
 0x31b   : > { %v2047_v2 = vadd.f32 %v7428_v39, %v10001_v3  ;;  %v2041_v38 = vpop.f32.mrb[127].mxu1 }
 0x31c   : > { %11553 = vst [vmem:[#allocation12_spill] sm:$0xff] %v10244_v27  ;;  %v2042_v16 = vadd.f32 %v10001_v3, %v2041_v38  ;;  %7652 = vmatmul.mubr.msk.f32.gmra.mrb[148].mxu0 %vm2298_vm2, %v1237_v8  ;;  %v11558_v3 = vld [vmem:[#allocation39_spill] sm:$0xff] }
 0x31d   : > { %7654 = vmatprep.mubr.msk.f32.mxu0 %vm2298_vm2, %v1242_v60  ;;  %8315 = vmatpush3.bf16.xpose.msk.msra.mxu0 %vm9871_vm3, %v11549_v7  ;;  %v1292_v52 = vadd.f32 %v9819_v41, %v11558_v3 }
 0x31e   : > { %v10257_v63 = vpack.c.bf16 %v2047_v2, %v2042_v16  ;;  %8303 = vmatpush3.bf16.xpose.msk.msra.mxu1 %vm9871_vm3, %v11551_v62  ;;  %8318 = vmatprep.subr.msk.bf16.mxu0 %vm9871_vm3, %v11557_v4  ;;  %v10377_v62 = vld [vmem:[%s11424_s5 + $0x20] sm:$0xff] }
 0x31f   : > { %8329 = vmatprep.subr.bf16.mxu1 %v10021_v34 }
 0x320   : > { %11556 = vst [vmem:[#allocation2_spill] sm:$0xff] %v10257_v63  ;;  %7655 = vmatmul.mubr.msk.f32.gmra.mrb[150].mxu0 %vm2298_vm2, %v1247_v51 }
 0x321   : > { %7701 = vmatprep.mubr.msk.f32.mxu0 %vm2298_vm2, %v1292_v52 }
 0x325   : > { %7674 = vmatmul.mubr.msk.f32.vlgmr.msra.gmra.mrb[152].mxu1 %vm2298_vm2, %v1257_v50  ;;  %8321 = vmatpush3.bf16.xpose.msk.msra.mxu0 %vm9871_vm3, %v11557_v4 }
 0x326   : > { %7676 = vmatprep.mubr.msk.f32.mxu1 %vm2298_vm2, %v1262_v37  ;;  %8331 = vmatpush3.bf16.msra.mxu1 %v10021_v34  ;;  %v11564_v34 = vld [vmem:[#allocation32_spill] sm:$0xff] }
 0x327   : > { %8324 = vmatprep.subr.msk.bf16.mxu0 %vm9871_vm3, %v11562_v29  ;;  %8333 = vmatprep.subr.bf16.mxu1 %v10032_v47  ;;  %v1277_v33 = vadd.f32 %v11564_v34, %v9819_v41 }
 0x329   : > { %7677 = vmatmul.mubr.msk.f32.gmra.mrb[154].mxu1 %vm2298_vm2, %v1267_v53 }
 0x32a   : > { %7679 = vmatprep.mubr.msk.f32.mxu1 %vm2298_vm2, %v1272_v31  ;;  %8335 = vmatpush3.bf16.msra.mxu1 %v10032_v47  ;;  %v11566_v47 = vld [vmem:[#allocation35_spill] sm:$0xff] }
 0x32b   : > { %8337 = vmatprep.subr.bf16.mxu1 %v10050_v13  ;;  %v1287_v56 = vadd.f32 %v11566_v47, %v9819_v41  ;;  %v11569_v41 = vld [vmem:[#allocation41_spill] sm:$0xff] }
 0x32d   : > { %7680 = vmatmul.mubr.msk.f32.gmra.mrb[156].mxu1 %vm2298_vm2, %v1277_v33  ;;  %8327 = vmatpush3.bf16.xpose.msk.msra.mxu0 %vm9871_vm3, %v11562_v29 }
 0x32e   : > { %7682 = vmatprep.mubr.msk.f32.mxu1 %vm2298_vm2, %v1282_v32  ;;  %8339 = vmatpush3.bf16.msra.mxu1 %v10050_v13  ;;  %v11570_v13 = vld [vmem:[#allocation45_spill] sm:$0xff] }
 0x32f   : > { %8341 = vmatprep.subr.bf16.mxu1 %v10062_v25  ;;  %8361 = vmatprep.subr.bf16.mxu0 %v10146_v55 }
 0x331   : > { %7683 = vmatmul.mubr.msk.f32.gmra.mrb[158].mxu1 %vm2298_vm2, %v1287_v56 }
 0x332   : > { %8343 = vmatpush3.bf16.msra.mxu1 %v10062_v25  ;;  %v11571_v25 = vld [vmem:[#allocation44_spill] sm:$0xff] }
 0x333   : > { %8345 = vmatprep.subr.bf16.mxu1 %v10083_v21 }
 0x334   : > { %7702 = vmatmul.mubr.msk.f32.vlgmr.msra.gmra.mrb[152].mxu0 %vm2298_vm2, %v11567_v5 }
 0x335   : > { %7704 = vmatprep.mubr.msk.f32.mxu0 %vm2298_vm2, %v11568_v24  ;;  %8363 = vmatpush3.bf16.msra.mxu0 %v10146_v55  ;;  %v11573_v55 = vld [vmem:[#allocation47_spill] sm:$0xff] }
 0x336   : > { %8365 = vmatprep.subr.bf16.mxu0 %v10158_v26 }
 0x338   : > { %7705 = vmatmul.mubr.msk.f32.gmra.mrb[154].mxu0 %vm2298_vm2, %v11569_v41 }
 0x339   : > { %7707 = vmatprep.mubr.msk.f32.mxu0 %vm2298_vm2, %v11570_v13  ;;  %8367 = vmatpush3.bf16.msra.mxu0 %v10158_v26  ;;  %v10334_v26 = vld [vmem:[%s11424_s5 + $0x8] sm:$0xff] }
 0x33a   : > { %8369 = vmatprep.subr.bf16.mxu0 %v10177_v17 }
 0x33c   : > { %7708 = vmatmul.mubr.msk.f32.gmra.mrb[156].mxu0 %vm2298_vm2, %v11571_v25 }
 0x33d   : > { %7710 = vmatprep.mubr.msk.f32.mxu0 %vm2298_vm2, %v11572_v6  ;;  %8371 = vmatpush3.bf16.msra.mxu0 %v10177_v17 }
 0x33e   : > { %8373 = vmatprep.subr.bf16.mxu0 %v10190_v59 }
 0x340   : > { %7711 = vmatmul.mubr.msk.f32.gmra.mrb[158].mxu0 %vm2298_vm2, %v11573_v55 }
 0x341   : > { %8375 = vmatpush3.bf16.msra.mxu0 %v10190_v59  ;;  %v10347_v59 = vld [vmem:[%s11424_s5 + $0x18] sm:$0xff] }
 0x342   : > { %8393 = vmatprep.subr.bf16.mxu0 %v11574_v12 }
 0x397   : > { %v7507_v54 = vpop.f32.mrb[128].mxu1 }
 0x398   : > { %v10342_v17 = vadd.f32 %v7507_v54, %v10334_v26  ;;  %v2413_v1 = vpop.f32.mrb[129].mxu1 }
 0x399   : > { %v10350_v19 = vadd.f32 %v2413_v1, %v10339_v61 }
 0x39a   : > { %v3527_v9 = vsel %vm3523_vm4, %v10342_v17, -inf }
 0x39b   : > { %3528 = vmax.xlane.f32.xlu0 %v3527_v9  ;;  %v7510_v44 = vpop.f32.mrb[130].mxu1  ;;  %v3524_v18 = vsel %vm3523_vm4, %v10350_v19, -inf }
 0x39c   : > { %v10360_v35 = vadd.f32 %v7510_v44, %v10347_v59  ;;  %v2423_v45 = vpop.f32.mrb[131].mxu1 }
 0x39d   : > { %v10368_v7 = vadd.f32 %v2423_v45, %v10357_v20 }
 0x39e   : > { %v3533_v10 = vsel %vm3523_vm4, %v10360_v35, -inf }
 0x39f   : > { %3534 = vmax.xlane.f32.xlu1 %v3533_v10  ;;  %v7513_v0 = vpop.f32.mrb[132].mxu1  ;;  %3525 = vmax.xlane.f32.xlu0 %v3524_v18  ;;  %v3530_v8 = vsel %vm3523_vm4, %v10368_v7, -inf }
 0x3a0   : > { %v10380_v46 = vadd.f32 %v7513_v0, %v10365_v28  ;;  %v2433_v15 = vpop.f32.mrb[133].mxu1 }
 0x3a1   : > { %v10383_v36 = vadd.f32 %v2433_v15, %v10377_v62 }
 0x3a2   : > { %v3539_v39 = vsel %vm3523_vm4, %v10380_v46, -inf }
 0x3a3   : > { %v7516_v60 = vpop.f32.mrb[134].mxu1  ;;  %3531 = vmax.xlane.f32.xlu1 %v3530_v8  ;;  %3540 = vmax.xlane.f32.xlu0 %v3539_v39  ;;  %v3536_v16 = vsel %vm3523_vm4, %v10383_v36, -inf }
 0x3a4   : > { %v2443_v2 = vpop.f32.mrb[135].mxu1  ;;  %v10395_v38 = vadd.f32 %v7516_v60, %v10392_v58 }
 0x3a5   : > { %v10405_v3 = vadd.f32 %v2443_v2, %v10402_v57 }
 0x3a6   : > { %v3545_v52 = vsel %vm3523_vm4, %v10395_v38, -inf }
 0x3a7   : > { %v7535_v51 = vpop.f32.mrb[128].mxu0  ;;  %3537 = vmax.xlane.f32.xlu0 %v3536_v16  ;;  %v3542_v37 = vsel %vm3523_vm4, %v10405_v3, -inf }
 0x3a8   : > { %v2566_v4 = vpop.f32.mrb[129].mxu0  ;;  %v10410_v11 = vadd.f32 %v7535_v51, %v10334_v26 }
 0x3a9   : > { %v10415_v29 = vadd.f32 %v2566_v4, %v10339_v61 }
 0x3aa   : > { %v3551_v30 = vsel %vm3523_vm4, %v10410_v11, -inf }
 0x3ab   : > { %v7538_v40 = vpop.f32.mrb[130].mxu0  ;;  %3546 = vmax.xlane.f32.xlu0 %v3545_v52  ;;  %v3548_v47 = vsel %vm3523_vm4, %v10415_v29, -inf }
 0x3ac   : > { %v2576_v50 = vpop.f32.mrb[131].mxu0  ;;  %v10423_v42 = vadd.f32 %v7538_v40, %v10347_v59 }
 0x3ad   : > { %v10433_v41 = vadd.f32 %v2576_v50, %v10357_v20 }
 0x3ae   : > { %v3557_v13 = vsel %vm3523_vm4, %v10423_v42, -inf }
 0x3af   : > { %v7541_v22 = vpop.f32.mrb[132].mxu0  ;;  %3543 = vmax.xlane.f32.xlu0 %v3542_v37  ;;  %v3554_v9 = vsel %vm3523_vm4, %v10433_v41, -inf }
 0x3b0   : > { %v2586_v53 = vpop.f32.mrb[133].mxu0  ;;  %v10443_v1 = vadd.f32 %v7541_v22, %v10365_v28 }
 0x3b1   : > { %v10453_v0 = vadd.f32 %v2586_v53, %v10377_v62 }
 0x3b2   : > { %v3563_v15 = vsel %vm3523_vm4, %v10443_v1, -inf }
 0x3b3   : > { %v7544_v31 = vpop.f32.mrb[134].mxu0  ;;  %3552 = vmax.xlane.f32.xlu0 %v3551_v30  ;;  %v3560_v51 = vsel %vm3523_vm4, %v10453_v0, -inf }
 0x3b4   : > { %v10420_v34 = vadd.f32 %v7544_v31, %v10392_v58  ;;  %v2596_v33 = vpop.f32.mrb[135].mxu0 }
 0x3b5   : > { %v10463_v16 = vadd.f32 %v2596_v33, %v10402_v57 }
 0x3b6   : > { %v3569_v32 = vsel %vm3523_vm4, %v10420_v34, -inf }
 0x3b7   : > { %3570 = vmax.xlane.f32.xlu1 %v3569_v32  ;;  %3549 = vmax.xlane.f32.xlu0 %v3548_v47  ;;  %v3566_v22 = vsel %vm3523_vm4, %v10463_v16, -inf }
 0x3b8   : > { %v7563_v56 = vpop.f32.mrb[136].mxu1 }
 0x3b9   : > { %v10430_v5 = vadd.f32 %v7563_v56, %v10334_v26  ;;  %v2719_v24 = vpop.f32.mrb[137].mxu1 }
 0x3ba   : > { %v10438_v25 = vadd.f32 %v2719_v24, %v10339_v61 }
 0x3bb   : > { %v3575_v6 = vsel %vm3523_vm4, %v10430_v5, -inf  ;;  %3558 = vmax.xlane.f32.xlu0 %v3557_v13 }
 0x3bc   : > { %v7566_v55 = vpop.f32.mrb[138].mxu1  ;;  %3576 = vmax.xlane.f32.xlu1 %v3575_v6  ;;  %v3572_v45 = vsel %vm3523_vm4, %v10438_v25, -inf }
 0x3bd   : > { %v2729_v54 = vpop.f32.mrb[139].mxu1  ;;  %v10448_v44 = vadd.f32 %v7566_v55, %v10347_v59 }
 0x3be   : > { %v10458_v8 = vadd.f32 %v2729_v54, %v10357_v20 }
 0x3bf   : > { %3555 = vmax.xlane.f32.xlu0 %v3554_v9  ;;  %v3581_v39 = vsel %vm3523_vm4, %v10448_v44, -inf }
 0x3c0   : > { %v7569_v10 = vpop.f32.mrb[140].mxu1  ;;  %3573 = vmax.xlane.f32.xlu1 %v3572_v45  ;;  %v3578_v40 = vsel %vm3523_vm4, %v10458_v8, -inf }
 0x3c1   : > { %v2739_v18 = vpop.f32.mrb[141].mxu1  ;;  %v10468_v4 = vadd.f32 %v7569_v10, %v10365_v28 }
 0x3c2   : > { %v10478_v53 = vadd.f32 %v2739_v18, %v10377_v62 }
 0x3c3   : > { %3564 = vmax.xlane.f32.xlu0 %v3563_v15  ;;  %v3587_v31 = vsel %vm3523_vm4, %v10468_v4, -inf }
 0x3c4   : > { %v7572_v60 = vpop.f32.mrb[142].mxu1  ;;  %3582 = vmax.xlane.f32.xlu1 %v3581_v39  ;;  %v3584_v13 = vsel %vm3523_vm4, %v10478_v53, -inf }
 0x3c5   : > { %v2749_v2 = vpop.f32.mrb[143].mxu1  ;;  %v10488_v56 = vadd.f32 %v7572_v60, %v10392_v58 }
 0x3c6   : > { %v10498_v9 = vadd.f32 %v2749_v2, %v10402_v57 }
 0x3c7   : > { %v7591_v52 = vpop.f32.mrb[136].mxu0  ;;  %3561 = vmax.xlane.f32.xlu0 %v3560_v51  ;;  %v3593_v10 = vsel %vm3523_vm4, %v10488_v56, -inf }
 0x3c8   : > { %3579 = vmax.xlane.f32.xlu1 %v3578_v40  ;;  %v2872_v50 = vpop.f32.mrb[137].mxu0  ;;  %v10508_v60 = vadd.f32 %v7591_v52, %v10334_v26  ;;  %v3590_v2 = vsel %vm3523_vm4, %v10498_v9, -inf }
 0x3c9   : > { %v10473_v37 = vadd.f32 %v2872_v50, %v10339_v61 }
 0x3ca   : > { %v3599_v52 = vsel %vm3523_vm4, %v10508_v60, -inf }
 0x3cb   : > { %v7594_v30 = vpop.f32.mrb[138].mxu0  ;;  %3567 = vmax.xlane.f32.xlu0 %v3566_v22  ;;  %v3596_v47 = vsel %vm3523_vm4, %v10473_v37, -inf }
 0x3cc   : > { %3588 = vmax.xlane.f32.xlu1 %v3587_v31  ;;  %v2882_v33 = vpop.f32.mrb[139].mxu0  ;;  %v10483_v32 = vadd.f32 %v7594_v30, %v10347_v59 }
 0x3cd   : > { %v10493_v55 = vadd.f32 %v2882_v33, %v10357_v20 }
 0x3ce   : > { %v3605_v54 = vsel %vm3523_vm4, %v10483_v32, -inf }
 0x3cf   : > { %v7597_v24 = vpop.f32.mrb[140].mxu0  ;;  %3597 = vmax.xlane.f32.xlu0 %v3596_v47  ;;  %v3602_v39 = vsel %vm3523_vm4, %v10493_v55, -inf }
 0x3d0   : > { %3585 = vmax.xlane.f32.xlu1 %v3584_v13  ;;  %v2892_v6 = vpop.f32.mrb[141].mxu0  ;;  %v10503_v15 = vadd.f32 %v7597_v24, %v10365_v28 }
 0x3d1   : > { %v10513_v50 = vadd.f32 %v2892_v6, %v10377_v62 }
 0x3d2   : > { %v3611_v22 = vsel %vm3523_vm4, %v10503_v15, -inf }
 0x3d3   : > { %v7600_v45 = vpop.f32.mrb[142].mxu0  ;;  %3606 = vmax.xlane.f32.xlu0 %v3605_v54  ;;  %v3608_v24 = vsel %vm3523_vm4, %v10513_v50, -inf }
 0x3d4   : > { %3594 = vmax.xlane.f32.xlu1 %v3593_v10  ;;  %v2902_v18 = vpop.f32.mrb[143].mxu0  ;;  %v10523_v47 = vadd.f32 %v7600_v45, %v10392_v58 }
 0x3d6   : > { %v3617_v45 = vsel %vm3523_vm4, %v10523_v47, -inf }
 0x3d7   : > { %3603 = vmax.xlane.f32.xlu0 %v3602_v39  ;;  %v10533_v39 = vadd.f32 %v2902_v18, %v10402_v57 }
 0x3d8   : > { %v7619_v51 = vpop.f32.mrb[144].mxu1  ;;  %3591 = vmax.xlane.f32.xlu1 %v3590_v2 }
 0x3d9   : > { %v3025_v40 = vpop.f32.mrb[145].mxu1  ;;  %v10518_v30 = vadd.f32 %v7619_v51, %v10334_v26 }
 0x3da   : > { %v10528_v13 = vadd.f32 %v3025_v40, %v10339_v61 }
 0x3db   : > { %3612 = vmax.xlane.f32.xlu0 %v3611_v22  ;;  %v3623_v6 = vsel %vm3523_vm4, %v10518_v30, -inf }
 0x3dc   : > { %v7622_v31 = vpop.f32.mrb[146].mxu1  ;;  %3600 = vmax.xlane.f32.xlu1 %v3599_v52  ;;  %v3620_v51 = vsel %vm3523_vm4, %v10528_v13, -inf  ;;  %v3614_v52 = vsel %vm3523_vm4, %v10533_v39, -inf }
 0x3dd   : > { %v3035_v33 = vpop.f32.mrb[147].mxu1  ;;  %v10538_v2 = vadd.f32 %v7622_v31, %v10347_v59 }
 0x3df   : > { %3609 = vmax.xlane.f32.xlu0 %v3608_v24  ;;  %v10545_v24 = vadd.f32 %v3035_v33, %v10357_v20 }
 0x3e0   : > { %v7625_v54 = vpop.f32.mrb[148].mxu1  ;;  %3624 = vmax.xlane.f32.xlu1 %v3623_v6  ;;  %v3629_v6 = vsel %vm3523_vm4, %v10538_v2, -inf }
 0x3e1   : > { %v3045_v10 = vpop.f32.mrb[149].mxu1  ;;  %v3626_v12 = vsel %vm3523_vm4, %v10545_v24, -inf }
 0x3e3   : > { %3618 = vmax.xlane.f32.xlu0 %v3617_v45  ;;  %v10553_v45 = vadd.f32 %v7625_v54, %v10365_v28 }
 0x3e4   : > { %v7628_v40 = vpop.f32.mrb[150].mxu1  ;;  %3621 = vmax.xlane.f32.xlu1 %v3620_v51 }
 0x3e5   : > { %v3055_v22 = vpop.f32.mrb[151].mxu1  ;;  %v3635_v54 = vsel %vm3523_vm4, %v10553_v45, -inf }
 0x3e7   : > { %v7647_v18 = vpop.f32.mrb[144].mxu0  ;;  %3615 = vmax.xlane.f32.xlu0 %v3614_v52 }
 0x3e8   : > { %3630 = vmax.xlane.f32.xlu1 %v3629_v6  ;;  %v3178_v31 = vpop.f32.mrb[145].mxu0  ;;  %v10563_v6 = vadd.f32 %v3045_v10, %v10377_v62 }
 0x3e9   : > { %v10550_v63 = vadd.f32 %v3178_v31, %v10339_v61 }
 0x3ea   : > { %v3632_v10 = vsel %vm3523_vm4, %v10563_v6, -inf }
 0x3eb   : > { %v7650_v51 = vpop.f32.mrb[146].mxu0  ;;  %v3644_v33 = vsel %vm3523_vm4, %v10550_v63, -inf }
 0x3ec   : > { %3627 = vmax.xlane.f32.xlu1 %v3626_v12  ;;  %v3188_v27 = vpop.f32.mrb[147].mxu0  ;;  %3645 = vmax.xlane.f32.xlu0 %v3644_v33  ;;  %v10573_v33 = vadd.f32 %v7628_v40, %v10392_v58 }
 0x3ed   : > { %v10560_v52 = vadd.f32 %v3188_v27, %v10357_v20 }
 0x3ee   : > { %11576 = vst [vmem:[#allocation27_spill] sm:$0xff] %v10573_v33 }
 0x3ef   : > { %v7653_v31 = vpop.f32.mrb[148].mxu0  ;;  %v3650_v48 = vsel %vm3523_vm4, %v10560_v52, -inf }
 0x3f0   : > { %3636 = vmax.xlane.f32.xlu1 %v3635_v54  ;;  %v3198_v43 = vpop.f32.mrb[149].mxu0  ;;  %3651 = vmax.xlane.f32.xlu0 %v3650_v48  ;;  %v10583_v48 = vadd.f32 %v3055_v22, %v10402_v57 }
 0x3f1   : > { %v10570_v12 = vadd.f32 %v3198_v43, %v10377_v62  ;;  %v3641_v43 = vsel %vm3523_vm4, %v10573_v33, -inf }
 0x3f2   : > { %11578 = vst [vmem:[#allocation18_spill] sm:$0xff] %v10583_v48 }
 0x3f3   : > { %11575 = vst [vmem:[#allocation4_spill] sm:$0xff] %v10570_v12  ;;  %v7656_v27 = vpop.f32.mrb[150].mxu0  ;;  %v3656_v14 = vsel %vm3523_vm4, %v10570_v12, -inf }
 0x3f4   : > { %3633 = vmax.xlane.f32.xlu1 %v3632_v10  ;;  %v3208_v23 = vpop.f32.mrb[151].mxu0  ;;  %3657 = vmax.xlane.f32.xlu0 %v3656_v14  ;;  %v10593_v14 = vadd.f32 %v7647_v18, %v10334_v26 }
 0x3f5   : > { %v10580_v54 = vadd.f32 %v3208_v23, %v10402_v57  ;;  %v3638_v23 = vsel %vm3523_vm4, %v10583_v48, -inf }
 0x3f6   : > { %11580 = vst [vmem:[#allocation5_spill] sm:$0xff] %v10593_v14 }
 0x3f7   : > { %11577 = vst [vmem:[#allocation15_spill] sm:$0xff] %v10580_v54  ;;  %v3662_v40 = vsel %vm3523_vm4, %v10580_v54, -inf }
 0x3f8   : > { %v7675_v49 = vpop.f32.mrb[152].mxu1  ;;  %3642 = vmax.xlane.f32.xlu1 %v3641_v43  ;;  %3663 = vmax.xlane.f32.xlu0 %v3662_v40  ;;  %v10603_v40 = vadd.f32 %v7650_v51, %v10347_v59 }
 0x3f9   : > { %v3331_v21 = vpop.f32.mrb[153].mxu1 }
 0x3fa   : > { %v10590_v10 = vadd.f32 %v3331_v21, %v10339_v61  ;;  %11582 = vst [vmem:[#allocation3_spill] sm:$0xff] %v10603_v40  ;;  %v3647_v21 = vsel %vm3523_vm4, %v10593_v14, -inf  ;;  %v3653_v51 = vsel %vm3523_vm4, %v10603_v40, -inf }
 0x3fc   : > { %11579 = vst [vmem:[#allocation17_spill] sm:$0xff] %v10590_v10  ;;  %v7678_v22 = vpop.f32.mrb[154].mxu1  ;;  %3639 = vmax.xlane.f32.xlu1 %v3638_v23  ;;  %v3668_v33 = vsel %vm3523_vm4, %v10590_v10, -inf }
 0x3fd   : > { %v3341_v12 = vpop.f32.mrb[155].mxu1  ;;  %3669 = vmax.xlane.f32.xlu0 %v3668_v33  ;;  %v10613_v33 = vadd.f32 %v7653_v31, %v10365_v28 }
 0x3fe   : > { %v10600_v43 = vadd.f32 %v3341_v12, %v10357_v20 }
 0x3ff   : > { %11584 = vst [vmem:[#allocation24_spill] sm:$0xff] %v10613_v33  ;;  %v3659_v31 = vsel %vm3523_vm4, %v10613_v33, -inf }
 0x400   : > { %11581 = vst [vmem:[#allocation21_spill] sm:$0xff] %v10600_v43  ;;  %v7681_v18 = vpop.f32.mrb[156].mxu1  ;;  %3648 = vmax.xlane.f32.xlu1 %v3647_v21  ;;  %v3674_v48 = vsel %vm3523_vm4, %v10600_v43, -inf }
 0x401   : > { %v3351_v23 = vpop.f32.mrb[157].mxu1  ;;  %3675 = vmax.xlane.f32.xlu0 %v3674_v48  ;;  %v10623_v48 = vadd.f32 %v7656_v27, %v10392_v58 }
 0x402   : > { %v10610_v10 = vadd.f32 %v3351_v23, %v10377_v62 }
 0x403   : > { %11585 = vst [vmem:[#allocation23_spill] sm:$0xff] %v10623_v48  ;;  %v3665_v27 = vsel %vm3523_vm4, %v10623_v48, -inf }
 0x404   : > { %11583 = vst [vmem:[#allocation20_spill] sm:$0xff] %v10610_v10  ;;  %v7684_v12 = vpop.f32.mrb[158].mxu1  ;;  %3654 = vmax.xlane.f32.xlu1 %v3653_v51  ;;  %v3680_v14 = vsel %vm3523_vm4, %v10610_v10, -inf }
 0x405   : > { %v3361_v21 = vpop.f32.mrb[159].mxu1  ;;  %3681 = vmax.xlane.f32.xlu0 %v3680_v14  ;;  %v10633_v14 = vadd.f32 %v7675_v49, %v10334_v26 }
 0x406   : > { %v10620_v43 = vadd.f32 %v3361_v21, %v10402_v57 }
 0x407   : > { %v7703_v23 = vpop.f32.mrb[152].mxu0  ;;  %11586 = vst [vmem:[#allocation6_spill] sm:$0xff] %v10633_v14  ;;  %v3671_v49 = vsel %vm3523_vm4, %v10633_v14, -inf }
 0x408   : > { %3660 = vmax.xlane.f32.xlu1 %v3659_v31  ;;  %v3484_v54 = vpop.f32.mrb[153].mxu0  ;;  %v3686_v51 = vsel %vm3523_vm4, %v10620_v43, -inf }
 0x409   : > { %v10630_v40 = vadd.f32 %v3484_v54, %v10339_v61  ;;  %3687 = vmax.xlane.f32.xlu0 %v3686_v51  ;;  %v10643_v61 = vadd.f32 %v7678_v22, %v10347_v59 }
 0x40b   : > { %v7706_v21 = vpop.f32.mrb[154].mxu0  ;;  %v3692_v10 = vsel %vm3523_vm4, %v10630_v40, -inf }
 0x40c   : > { %3666 = vmax.xlane.f32.xlu1 %v3665_v27  ;;  %v3494_v31 = vpop.f32.mrb[155].mxu0 }
 0x40d   : > { %v10640_v33 = vadd.f32 %v3494_v31, %v10357_v20  ;;  %3693 = vmax.xlane.f32.xlu0 %v3692_v10  ;;  %v10655_v10 = vadd.f32 %v7681_v18, %v10365_v28  ;;  %v3677_v31 = vsel %vm3523_vm4, %v10643_v61, -inf }
 0x40f   : > { %11587 = vst [vmem:[#allocation39_spill] sm:$0xff] %v10640_v33  ;;  %v7709_v54 = vpop.f32.mrb[156].mxu0  ;;  %v3698_v51 = vsel %vm3523_vm4, %v10640_v33, -inf }
 0x410   : > { %v10650_v48 = vadd.f32 %v7709_v54, %v10365_v28  ;;  %3672 = vmax.xlane.f32.xlu1 %v3671_v49  ;;  %v3504_v27 = vpop.f32.mrb[157].mxu0  ;;  %v10663_v54 = vadd.f32 %v7684_v12, %v10392_v58  ;;  %v3683_v49 = vsel %vm3523_vm4, %v10655_v10, -inf }
 0x411   : > { %3699 = vmax.xlane.f32.xlu0 %v3698_v51  ;;  %v10660_v14 = vadd.f32 %v3504_v27, %v10377_v62  ;;  %v10673_v62 = vadd.f32 %v7703_v23, %v10334_v26 }
 0x412   : > { %v3707_v20 = vsel %vm3523_vm4, %v10650_v48, -inf  ;;  %v3689_v18 = vsel %vm3523_vm4, %v10663_v54, -inf }
 0x413   : > { %v7712_v22 = vpop.f32.mrb[158].mxu0  ;;  %v3704_v28 = vsel %vm3523_vm4, %v10660_v14, -inf }
 0x414   : > { %3678 = vmax.xlane.f32.xlu1 %v3677_v31  ;;  %v3514_v33 = vpop.f32.mrb[159].mxu0  ;;  %v10668_v51 = vadd.f32 %v7712_v22, %v10392_v58  ;;  %v10683_v58 = vadd.f32 %v7706_v21, %v10347_v59 }
 0x415   : > { %3708 = vmax.xlane.f32.xlu0 %v3707_v20  ;;  %v10678_v12 = vadd.f32 %v3514_v33, %v10402_v57  ;;  %v3695_v20 = vsel %vm3523_vm4, %v10673_v62, -inf }
 0x416   : > { %11588 = vst [vmem:[#allocation26_spill] sm:$0xff] %v10668_v51  ;;  %v3713_v27 = vsel %vm3523_vm4, %v10668_v51, -inf  ;;  %v3701_v57 = vsel %vm3523_vm4, %v10683_v58, -inf }
 0x417   : > { %v3710_v26 = vsel %vm3523_vm4, %v10678_v12, -inf }
 0x418   : > { %3684 = vmax.xlane.f32.xlu1 %v3683_v49 }
 0x419   : > { %3705 = vmax.xlane.f32.xlu0 %v3704_v28 }
 0x41c   : > { %3690 = vmax.xlane.f32.xlu1 %v3689_v18 }
 0x41d   : > { %3714 = vmax.xlane.f32.xlu0 %v3713_v27 }
 0x420   : > { %3696 = vmax.xlane.f32.xlu1 %v3695_v20 }
 0x421   : > { %3711 = vmax.xlane.f32.xlu0 %v3710_v26 }
 0x424   : > { %3702 = vmax.xlane.f32.xlu1 %v3701_v57 }
 0x428   : > { %v3529_v33 = vpop.xlane.xlu0 %3528 }
 0x429   : > { %v3717_v23 = vsub.f32 %v10342_v17, %v3529_v33 }
 0x42b   : > { %v3782_v22 = vmul.f32 1.442695, %v3717_v23 }
 0x42c   : > { %v3535_v31 = vpop.xlane.xlu1 %3534  ;;  %v3526_v49 = vpop.xlane.xlu0 %3525 }
 0x42d   : > { %8499 = vpow2.f32 %v3782_v22  ;;  %v3719_v59 = vsub.f32 %v10360_v35, %v3535_v31  ;;  %v3716_v21 = vsub.f32 %v10350_v19, %v3526_v49 }
 0x42f   : > { %v3780_v28 = vmul.f32 1.442695, %v3716_v21  ;;  %v3786_v18 = vmul.f32 1.442695, %v3719_v59 }
 0x430   : > { %v3532_v27 = vpop.xlane.xlu1 %3531  ;;  %v3541_v20 = vpop.xlane.xlu0 %3540 }
 0x431   : > { %v3718_v26 = vsub.f32 %v10368_v7, %v3532_v27  ;;  %v3721_v51 = vsub.f32 %v10380_v46, %v3541_v20  ;;  %8501 = vpow2.f32 %v3780_v28 }
 0x432   : > { %8503 = vpow2.f32 %v3786_v18 }
 0x433   : > { %v3790_v57 = vmul.f32 1.442695, %v3721_v51  ;;  %v3784_v17 = vmul.f32 1.442695, %v3718_v26 }
 0x434   : > { %v3538_v33 = vpop.xlane.xlu0 %3537 }
 0x435   : > { %v3720_v23 = vsub.f32 %v10383_v36, %v3538_v33  ;;  %8505 = vpow2.f32 %v3790_v57 }
 0x436   : > { %8507 = vpow2.f32 %v3784_v17 }
 0x437   : > { %v10697_v22 = vpop.eup %8499  ;;  %v3788_v35 = vmul.f32 1.442695, %v3720_v23 }
 0x438   : > { %v3547_v19 = vpop.xlane.xlu0 %3546  ;;  %v3911_v31 = vsel %vm3523_vm4, %v10697_v22, 0.0 }
 0x439   : > { %8509 = vpow2.f32 %v3788_v35  ;;  %v3723_v7 = vsub.f32 %v10395_v38, %v3547_v19  ;;  %3912 = vadd.xlane.f32.xlu1 %v3911_v31 }
 0x43b   : > { %v3794_v46 = vmul.f32 1.442695, %v3723_v7  ;;  %v10702_v51 = vpop.eup %8501 }
 0x43c   : > { %v3544_v49 = vpop.xlane.xlu0 %3543  ;;  %v3908_v59 = vsel %vm3523_vm4, %v10702_v51, 0.0  ;;  %v10707_v21 = vpop.eup %8503 }
 0x43d   : > { %8511 = vpow2.f32 %v3794_v46  ;;  %v3722_v36 = vsub.f32 %v10405_v3, %v3544_v49  ;;  %3909 = vadd.xlane.f32.xlu1 %v3908_v59  ;;  %v3917_v20 = vsel %vm3523_vm4, %v10707_v21, 0.0 }
 0x43f   : > { %v3792_v28 = vmul.f32 1.442695, %v3722_v36  ;;  %v10709_v18 = vpop.eup %8505 }
 0x440   : > { %v3553_v27 = vpop.xlane.xlu0 %3552  ;;  %v3923_v26 = vsel %vm3523_vm4, %v10709_v18, 0.0  ;;  %v10716_v3 = vpop.eup %8507 }
 0x441   : > { %8513 = vpow2.f32 %v3792_v28  ;;  %v3725_v38 = vsub.f32 %v10410_v11, %v3553_v27  ;;  %3918 = vadd.xlane.f32.xlu1 %v3917_v20  ;;  %3924 = vadd.xlane.f32.xlu0 %v3923_v26  ;;  %v3914_v31 = vsel %vm3523_vm4, %v10716_v3, 0.0 }
 0x443   : > { %v10718_v57 = vpop.eup %8509  ;;  %v3798_v17 = vmul.f32 1.442695, %v3725_v38 }
 0x444   : > { %v3571_v33 = vpop.xlane.xlu1 %3570  ;;  %v3550_v23 = vpop.xlane.xlu0 %3549  ;;  %v3920_v35 = vsel %vm3523_vm4, %v10718_v57, 0.0 }
 0x445   : > { %8515 = vpow2.f32 %v3798_v17  ;;  %v3731_v11 = vsub.f32 %v10420_v34, %v3571_v33  ;;  %v3724_v19 = vsub.f32 %v10415_v29, %v3550_v23  ;;  %3915 = vadd.xlane.f32.xlu1 %v3914_v31  ;;  %3921 = vadd.xlane.f32.xlu0 %v3920_v35 }
 0x447   : > { %v10726_v7 = vpop.eup %8511  ;;  %v3810_v46 = vmul.f32 1.442695, %v3731_v11  ;;  %v3796_v49 = vmul.f32 1.442695, %v3724_v19 }
 0x448   : > { %v3559_v36 = vpop.xlane.xlu0 %3558  ;;  %v3929_v59 = vsel %vm3523_vm4, %v10726_v7, 0.0 }
 0x449   : > { %8517 = vpow2.f32 %v3810_v46  ;;  %v3577_v28 = vpop.xlane.xlu1 %3576  ;;  %v3727_v27 = vsub.f32 %v10423_v42, %v3559_v36  ;;  %3930 = vadd.xlane.f32.xlu0 %v3929_v59 }
 0x44a   : > { %8519 = vpow2.f32 %v3796_v49  ;;  %v3733_v29 = vsub.f32 %v10430_v5, %v3577_v28 }
 0x44b   : > { %v10732_v34 = vpop.eup %8513  ;;  %v3802_v38 = vmul.f32 1.442695, %v3727_v27 }
 0x44c   : > { %v3814_v20 = vmul.f32 1.442695, %v3733_v29  ;;  %v3556_v26 = vpop.xlane.xlu0 %3555  ;;  %v3926_v17 = vsel %vm3523_vm4, %v10732_v34, 0.0 }
 0x44d   : > { %8521 = vpow2.f32 %v3802_v38  ;;  %v3574_v33 = vpop.xlane.xlu1 %3573  ;;  %v3726_v23 = vsub.f32 %v10433_v41, %v3556_v26  ;;  %3927 = vadd.xlane.f32.xlu0 %v3926_v17 }
 0x44e   : > { %8523 = vpow2.f32 %v3814_v20  ;;  %v3732_v35 = vsub.f32 %v10438_v25, %v3574_v33 }
 0x44f   : > { %v10738_v42 = vpop.eup %8515  ;;  %v3800_v5 = vmul.f32 1.442695, %v3726_v23 }
 0x450   : > { %v3812_v11 = vmul.f32 1.442695, %v3732_v35  ;;  %v3565_v19 = vpop.xlane.xlu0 %3564  ;;  %v3935_v31 = vsel %vm3523_vm4, %v10738_v42, 0.0 }
 0x451   : > { %8525 = vpow2.f32 %v3800_v5  ;;  %v3583_v46 = vpop.xlane.xlu1 %3582  ;;  %v3729_v49 = vsub.f32 %v10443_v1, %v3565_v19  ;;  %3936 = vadd.xlane.f32.xlu0 %v3935_v31 }
 0x452   : > { %8527 = vpow2.f32 %v3812_v11  ;;  %v3735_v36 = vsub.f32 %v10448_v44, %v3583_v46 }
 0x453   : > { %v10744_v41 = vpop.eup %8517  ;;  %v3806_v25 = vmul.f32 1.442695, %v3729_v49 }
 0x454   : > { %v10746_v59 = vpop.eup %8519  ;;  %v3818_v28 = vmul.f32 1.442695, %v3735_v36  ;;  %v3562_v27 = vpop.xlane.xlu0 %3561  ;;  %v3953_v29 = vsel %vm3523_vm4, %v10744_v41, 0.0 }
 0x455   : > { %8529 = vpow2.f32 %v3806_v25  ;;  %v3580_v38 = vpop.xlane.xlu1 %3579  ;;  %v3728_v20 = vsub.f32 %v10453_v0, %v3562_v27  ;;  %3954 = vadd.xlane.f32.xlu1 %v3953_v29  ;;  %v3932_v1 = vsel %vm3523_vm4, %v10746_v59, 0.0 }
 0x456   : > { %8531 = vpow2.f32 %v3818_v28  ;;  %v3734_v44 = vsub.f32 %v10458_v8, %v3580_v38  ;;  %3933 = vadd.xlane.f32.xlu0 %v3932_v1 }
 0x457   : > { %v10754_v26 = vpop.eup %8521  ;;  %v3804_v17 = vmul.f32 1.442695, %v3728_v20 }
 0x458   : > { %v10756_v33 = vpop.eup %8523  ;;  %v3816_v23 = vmul.f32 1.442695, %v3734_v44  ;;  %v3568_v35 = vpop.xlane.xlu0 %3567  ;;  %v3941_v5 = vsel %vm3523_vm4, %v10754_v26, 0.0 }
 0x459   : > { %8533 = vpow2.f32 %v3804_v17  ;;  %v3589_v0 = vpop.xlane.xlu1 %3588  ;;  %v3730_v11 = vsub.f32 %v10463_v16, %v3568_v35  ;;  %v3959_v19 = vsel %vm3523_vm4, %v10756_v33, 0.0 }
 0x45a   : > { %8535 = vpow2.f32 %v3816_v23  ;;  %v3737_v8 = vsub.f32 %v10468_v4, %v3589_v0  ;;  %3960 = vadd.xlane.f32.xlu1 %v3959_v19  ;;  %3942 = vadd.xlane.f32.xlu0 %v3941_v5 }
 0x45b   : > { %v10764_v31 = vpop.eup %8525  ;;  %v3808_v46 = vmul.f32 1.442695, %v3730_v11 }
 0x45c   : > { %v10766_v49 = vpop.eup %8527  ;;  %v3822_v36 = vmul.f32 1.442695, %v3737_v8  ;;  %v3598_v25 = vpop.xlane.xlu0 %3597  ;;  %v3938_v28 = vsel %vm3523_vm4, %v10764_v31, 0.0 }
 0x45d   : > { %8537 = vpow2.f32 %v3808_v46  ;;  %v3586_v16 = vpop.xlane.xlu1 %3585  ;;  %v3740_v27 = vsub.f32 %v10473_v37, %v3598_v25  ;;  %v3956_v29 = vsel %vm3523_vm4, %v10766_v49, 0.0 }
 0x45e   : > { %8539 = vpow2.f32 %v3822_v36  ;;  %v3736_v4 = vsub.f32 %v10478_v53, %v3586_v16  ;;  %3957 = vadd.xlane.f32.xlu1 %v3956_v29  ;;  %3939 = vadd.xlane.f32.xlu0 %v3938_v28 }
 0x45f   : > { %v10774_v38 = vpop.eup %8529  ;;  %v3828_v20 = vmul.f32 1.442695, %v3740_v27 }
 0x460   : > { %v10776_v1 = vpop.eup %8531  ;;  %v3820_v44 = vmul.f32 1.442695, %v3736_v4  ;;  %v3607_v17 = vpop.xlane.xlu0 %3606  ;;  %v3947_v23 = vsel %vm3523_vm4, %v10774_v38, 0.0 }
 0x461   : > { %8541 = vpow2.f32 %v3828_v20  ;;  %v3595_v37 = vpop.xlane.xlu1 %3594  ;;  %v3743_v35 = vsub.f32 %v10483_v32, %v3607_v17  ;;  %v3965_v5 = vsel %vm3523_vm4, %v10776_v1, 0.0 }
 0x462   : > { %8543 = vpow2.f32 %v3820_v44  ;;  %v3739_v53 = vsub.f32 %v10488_v56, %v3595_v37  ;;  %3966 = vadd.xlane.f32.xlu1 %v3965_v5  ;;  %3948 = vadd.xlane.f32.xlu0 %v3947_v23 }
 0x463   : > { %v10784_v0 = vpop.eup %8533  ;;  %v3834_v11 = vmul.f32 1.442695, %v3743_v35 }
 0x464   : > { %v10786_v19 = vpop.eup %8535  ;;  %v3826_v8 = vmul.f32 1.442695, %v3739_v53  ;;  %v3604_v46 = vpop.xlane.xlu0 %3603  ;;  %v3944_v36 = vsel %vm3523_vm4, %v10784_v0, 0.0 }
 0x465   : > { %8545 = vpow2.f32 %v3834_v11  ;;  %v3592_v32 = vpop.xlane.xlu1 %3591  ;;  %v3742_v25 = vsub.f32 %v10493_v55, %v3604_v46  ;;  %v3962_v28 = vsel %vm3523_vm4, %v10786_v19, 0.0 }
 0x466   : > { %8547 = vpow2.f32 %v3826_v8  ;;  %v3738_v56 = vsub.f32 %v10498_v9, %v3592_v32  ;;  %3963 = vadd.xlane.f32.xlu1 %v3962_v28  ;;  %3945 = vadd.xlane.f32.xlu0 %v3944_v36 }
 0x467   : > { %v10794_v16 = vpop.eup %8537  ;;  %v3832_v27 = vmul.f32 1.442695, %v3742_v25 }
 0x468   : > { %v10796_v29 = vpop.eup %8539  ;;  %v3824_v4 = vmul.f32 1.442695, %v3738_v56  ;;  %v3613_v20 = vpop.xlane.xlu0 %3612  ;;  %v3950_v44 = vsel %vm3523_vm4, %v10794_v16, 0.0 }
 0x469   : > { %8549 = vpow2.f32 %v3832_v27  ;;  %v3601_v55 = vpop.xlane.xlu1 %3600  ;;  %v3745_v17 = vsub.f32 %v10503_v15, %v3613_v20  ;;  %v3971_v23 = vsel %vm3523_vm4, %v10796_v29, 0.0 }
 0x46a   : > { %8551 = vpow2.f32 %v3824_v4  ;;  %v3741_v9 = vsub.f32 %v10508_v60, %v3601_v55  ;;  %3972 = vadd.xlane.f32.xlu1 %v3971_v23  ;;  %3951 = vadd.xlane.f32.xlu0 %v3950_v44 }
 0x46b   : > { %v10804_v37 = vpop.eup %8541  ;;  %v3838_v35 = vmul.f32 1.442695, %v3745_v17 }
 0x46c   : > { %v10806_v5 = vpop.eup %8543  ;;  %v3830_v53 = vmul.f32 1.442695, %v3741_v9  ;;  %v3610_v11 = vpop.xlane.xlu0 %3609  ;;  %v3980_v8 = vsel %vm3523_vm4, %v10804_v37, 0.0 }
 0x46d   : > { %8553 = vpow2.f32 %v3838_v35  ;;  %v3625_v15 = vpop.xlane.xlu1 %3624  ;;  %v3744_v46 = vsub.f32 %v10513_v50, %v3610_v11  ;;  %v3968_v36 = vsel %vm3523_vm4, %v10806_v5, 0.0 }
 0x46e   : > { %8555 = vpow2.f32 %v3830_v53  ;;  %v3749_v60 = vsub.f32 %v10518_v30, %v3625_v15  ;;  %3969 = vadd.xlane.f32.xlu1 %v3968_v36  ;;  %3981 = vadd.xlane.f32.xlu0 %v3980_v8 }
 0x46f   : > { %v10814_v32 = vpop.eup %8545  ;;  %v3836_v25 = vmul.f32 1.442695, %v3744_v46 }
 0x470   : > { %v10816_v28 = vpop.eup %8547  ;;  %v3846_v56 = vmul.f32 1.442695, %v3749_v60  ;;  %v3619_v27 = vpop.xlane.xlu0 %3618  ;;  %v3989_v4 = vsel %vm3523_vm4, %v10814_v32, 0.0 }
 0x471   : > { %8557 = vpow2.f32 %v3836_v25  ;;  %v3622_v50 = vpop.xlane.xlu1 %3621  ;;  %v3747_v20 = vsub.f32 %v10523_v47, %v3619_v27  ;;  %v3977_v44 = vsel %vm3523_vm4, %v10816_v28, 0.0 }
 0x472   : > { %8559 = vpow2.f32 %v3846_v56  ;;  %v3748_v30 = vsub.f32 %v10528_v13, %v3622_v50  ;;  %3978 = vadd.xlane.f32.xlu1 %v3977_v44  ;;  %3990 = vadd.xlane.f32.xlu0 %v3989_v4 }
 0x473   : > { %v10824_v55 = vpop.eup %8549  ;;  %v3842_v17 = vmul.f32 1.442695, %v3747_v20 }
 0x474   : > { %v10826_v23 = vpop.eup %8551  ;;  %v3844_v9 = vmul.f32 1.442695, %v3748_v30  ;;  %v3616_v35 = vpop.xlane.xlu0 %3615  ;;  %v3986_v53 = vsel %vm3523_vm4, %v10824_v55, 0.0 }
 0x475   : > { %8561 = vpow2.f32 %v3842_v17  ;;  %v3631_v47 = vpop.xlane.xlu1 %3630  ;;  %v3746_v11 = vsub.f32 %v10533_v39, %v3616_v35  ;;  %v3974_v8 = vsel %vm3523_vm4, %v10826_v23, 0.0 }
 0x476   : > { %8563 = vpow2.f32 %v3844_v9  ;;  %v3751_v13 = vsub.f32 %v10538_v2, %v3631_v47  ;;  %3975 = vadd.xlane.f32.xlu1 %v3974_v8  ;;  %3987 = vadd.xlane.f32.xlu0 %v3986_v53 }
 0x477   : > { %v10834_v15 = vpop.eup %8553  ;;  %v3840_v46 = vmul.f32 1.442695, %v3746_v11 }
 0x478   : > { %v10836_v36 = vpop.eup %8555  ;;  %v3850_v60 = vmul.f32 1.442695, %v3751_v13  ;;  %v3995_v25 = vsel %vm3523_vm4, %v10834_v15, 0.0 }
 0x479   : > { %8565 = vpow2.f32 %v3840_v46  ;;  %v3628_v56 = vpop.xlane.xlu1 %3627  ;;  %v3983_v39 = vsel %vm3523_vm4, %v10836_v36, 0.0  ;;  %v3646_v27 = vpop.xlane.xlu0 %3645 }
 0x47a   : > { %8567 = vpow2.f32 %v3850_v60  ;;  %v3750_v2 = vsub.f32 %v10545_v24, %v3628_v56  ;;  %3984 = vadd.xlane.f32.xlu1 %v3983_v39  ;;  %3996 = vadd.xlane.f32.xlu0 %v3995_v25  ;;  %v3756_v4 = vsub.f32 %v10550_v63, %v3646_v27 }
 0x47b   : > { %v10844_v50 = vpop.eup %8557 }
 0x47c   : > { %v10846_v20 = vpop.eup %8559  ;;  %v3848_v44 = vmul.f32 1.442695, %v3750_v2  ;;  %v3860_v30 = vmul.f32 1.442695, %v3756_v4  ;;  %v3992_v17 = vsel %vm3523_vm4, %v10844_v50, 0.0 }
 0x47d   : > { %v3637_v9 = vpop.xlane.xlu1 %3636  ;;  %v4007_v35 = vsel %vm3523_vm4, %v10846_v20, 0.0  ;;  %v3652_v53 = vpop.xlane.xlu0 %3651 }
 0x47e   : > { %8569 = vpow2.f32 %v3848_v44  ;;  %v3753_v24 = vsub.f32 %v10553_v45, %v3637_v9  ;;  %4008 = vadd.xlane.f32.xlu1 %v4007_v35  ;;  %3993 = vadd.xlane.f32.xlu0 %v3992_v17  ;;  %v3758_v63 = vsub.f32 %v10560_v52, %v3652_v53  ;;  %v11589_v52 = vld [vmem:[#allocation4_spill] sm:$0xff] }
 0x47f   : > { %v10854_v47 = vpop.eup %8561  ;;  %8571 = vpow2.f32 %v3860_v30 }
 0x480   : > { %v10856_v11 = vpop.eup %8563  ;;  %v3854_v8 = vmul.f32 1.442695, %v3753_v24  ;;  %v3864_v13 = vmul.f32 1.442695, %v3758_v63  ;;  %v4001_v46 = vsel %vm3523_vm4, %v10854_v47, 0.0  ;;  %v11591_v63 = vld [vmem:[#allocation27_spill] sm:$0xff] }
 0x481   : > { %v3634_v60 = vpop.xlane.xlu1 %3633  ;;  %v4004_v25 = vsel %vm3523_vm4, %v10856_v11, 0.0  ;;  %v3658_v56 = vpop.xlane.xlu0 %3657 }
 0x482   : > { %8573 = vpow2.f32 %v3854_v8  ;;  %v3752_v45 = vsub.f32 %v10563_v6, %v3634_v60  ;;  %4005 = vadd.xlane.f32.xlu1 %v4004_v25  ;;  %4002 = vadd.xlane.f32.xlu0 %v4001_v46  ;;  %v3760_v39 = vsub.f32 %v11589_v52, %v3658_v56  ;;  %v11590_v6 = vld [vmem:[#allocation15_spill] sm:$0xff]  ;;  %v11593_v56 = vld [vmem:[#allocation18_spill] sm:$0xff] }
 0x483   : > { %v10864_v27 = vpop.eup %8565  ;;  %8575 = vpow2.f32 %v3864_v13 }
 0x484   : > { %v10866_v2 = vpop.eup %8567  ;;  %v3852_v4 = vmul.f32 1.442695, %v3752_v45  ;;  %v3868_v44 = vmul.f32 1.442695, %v3760_v39  ;;  %v3998_v30 = vsel %vm3523_vm4, %v10864_v27, 0.0 }
 0x485   : > { %v3643_v17 = vpop.xlane.xlu1 %3642  ;;  %v4013_v9 = vsel %vm3523_vm4, %v10866_v2, 0.0  ;;  %v3664_v35 = vpop.xlane.xlu0 %3663 }
 0x486   : > { %8577 = vpow2.f32 %v3852_v4  ;;  %4014 = vadd.xlane.f32.xlu1 %v4013_v9  ;;  %3999 = vadd.xlane.f32.xlu0 %v3998_v30  ;;  %v3762_v53 = vsub.f32 %v11590_v6, %v3664_v35  ;;  %v3755_v8 = vsub.f32 %v11591_v63, %v3643_v17  ;;  %v11594_v4 = vld [vmem:[#allocation17_spill] sm:$0xff] }
 0x487   : > { %8579 = vpow2.f32 %v3868_v44 }
 0x488   : > { %v10873_v24 = vpop.eup %8569  ;;  %v3872_v13 = vmul.f32 1.442695, %v3762_v53  ;;  %v3858_v17 = vmul.f32 1.442695, %v3755_v8 }
 0x489   : > { %v10876_v46 = vpop.eup %8571  ;;  %v3640_v60 = vpop.xlane.xlu1 %3639  ;;  %v4010_v25 = vsel %vm3523_vm4, %v10873_v24, 0.0 }
 0x48a   : > { %11592 = vst [vmem:[#allocation30_spill] sm:$0xff] %v10876_v46  ;;  %v3754_v45 = vsub.f32 %v11593_v56, %v3640_v60  ;;  %4011 = vadd.xlane.f32.xlu1 %v4010_v25  ;;  %v3670_v52 = vpop.xlane.xlu0 %3669  ;;  %v4028_v39 = vsel %vm3523_vm4, %v10876_v46, 0.0  ;;  %8581 = vpow2.f32 %v3872_v13  ;;  %v11597_v60 = vld [vmem:[#allocation5_spill] sm:$0xff] }
 0x48b   : > { %v3764_v44 = vsub.f32 %v11594_v4, %v3670_v52  ;;  %4029 = vadd.xlane.f32.xlu0 %v4028_v39  ;;  %v11598_v52 = vld [vmem:[#allocation21_spill] sm:$0xff] }
 0x48c   : > { %v10884_v30 = vpop.eup %8573  ;;  %v3856_v9 = vmul.f32 1.442695, %v3754_v45 }
 0x48d   : > { %11595 = vst [vmem:[#allocation29_spill] sm:$0xff] %v10884_v30  ;;  %v10886_v35 = vpop.eup %8575  ;;  %v3876_v6 = vmul.f32 1.442695, %v3764_v44  ;;  %v3649_v53 = vpop.xlane.xlu1 %3648  ;;  %v4019_v63 = vsel %vm3523_vm4, %v10884_v30, 0.0 }
 0x48e   : > { %11596 = vst [vmem:[#allocation7_spill] sm:$0xff] %v10886_v35  ;;  %8583 = vpow2.f32 %v3856_v9  ;;  %v3757_v25 = vsub.f32 %v11597_v60, %v3649_v53  ;;  %4020 = vadd.xlane.f32.xlu1 %v4019_v63  ;;  %v3676_v56 = vpop.xlane.xlu0 %3675  ;;  %v4034_v13 = vsel %vm3523_vm4, %v10886_v35, 0.0  ;;  %v11601_v53 = vld [vmem:[#allocation3_spill] sm:$0xff]  ;;  %v11604_v35 = vld [vmem:[#allocation24_spill] sm:$0xff] }
 0x48f   : > { %8585 = vpow2.f32 %v3876_v6  ;;  %v3766_v39 = vsub.f32 %v11598_v52, %v3676_v56  ;;  %4035 = vadd.xlane.f32.xlu0 %v4034_v13  ;;  %v11602_v56 = vld [vmem:[#allocation20_spill] sm:$0xff] }
 0x490   : > { %v10894_v8 = vpop.eup %8577  ;;  %8587 = vpow2.f32 %v3858_v17  ;;  %v3862_v45 = vmul.f32 1.442695, %v3757_v25 }
 0x491   : > { %11599 = vst [vmem:[#allocation33_spill] sm:$0xff] %v10894_v8  ;;  %v10896_v4 = vpop.eup %8579  ;;  %v3880_v44 = vmul.f32 1.442695, %v3766_v39  ;;  %v3655_v30 = vpop.xlane.xlu1 %3654  ;;  %v4016_v9 = vsel %vm3523_vm4, %v10894_v8, 0.0 }
 0x492   : > { %11600 = vst [vmem:[#allocation32_spill] sm:$0xff] %v10896_v4  ;;  %v3759_v63 = vsub.f32 %v11601_v53, %v3655_v30  ;;  %4017 = vadd.xlane.f32.xlu1 %v4016_v9  ;;  %v3682_v60 = vpop.xlane.xlu0 %3681  ;;  %v4040_v6 = vsel %vm3523_vm4, %v10896_v4, 0.0 }
 0x493   : > { %8589 = vpow2.f32 %v3880_v44  ;;  %v3768_v13 = vsub.f32 %v11602_v56, %v3682_v60  ;;  %4041 = vadd.xlane.f32.xlu0 %v4040_v6  ;;  %v11606_v56 = vld [vmem:[#allocation23_spill] sm:$0xff] }
 0x494   : > { %8591 = vpow2.f32 %v3862_v45  ;;  %v3866_v17 = vmul.f32 1.442695, %v3759_v63  ;;  %v10904_v25 = vpop.eup %8581 }
 0x495   : > { %11603 = vst [vmem:[#allocation36_spill] sm:$0xff] %v10904_v25  ;;  %v3884_v52 = vmul.f32 1.442695, %v3768_v13  ;;  %v3661_v39 = vpop.xlane.xlu1 %3660  ;;  %v4046_v30 = vsel %vm3523_vm4, %v10904_v25, 0.0 }
 0x496   : > { %v3761_v46 = vsub.f32 %v11604_v35, %v3661_v39  ;;  %v3688_v8 = vpop.xlane.xlu0 %3687 }
 0x497   : > { %8593 = vpow2.f32 %v3884_v52  ;;  %v3770_v9 = vsub.f32 %v10620_v43, %v3688_v8  ;;  %4047 = vadd.xlane.f32.xlu0 %v4046_v30 }
 0x498   : > { %v10910_v44 = vpop.eup %8583  ;;  %8595 = vpow2.f32 %v3866_v17  ;;  %v3870_v53 = vmul.f32 1.442695, %v3761_v46 }
 0x499   : > { %v10912_v45 = vpop.eup %8585  ;;  %v3888_v63 = vmul.f32 1.442695, %v3770_v9  ;;  %v3667_v60 = vpop.xlane.xlu1 %3666  ;;  %v4022_v6 = vsel %vm3523_vm4, %v10910_v44, 0.0 }
 0x49a   : > { %11605 = vst [vmem:[#allocation35_spill] sm:$0xff] %v10912_v45  ;;  %v10916_v35 = vpop.eup %8587  ;;  %v3763_v13 = vsub.f32 %v11606_v56, %v3667_v60  ;;  %4023 = vadd.xlane.f32.xlu1 %v4022_v6  ;;  %v3694_v52 = vpop.xlane.xlu0 %3693  ;;  %v4052_v43 = vsel %vm3523_vm4, %v10912_v45, 0.0  ;;  %v11608_v60 = vld [vmem:[#allocation6_spill] sm:$0xff] }
 0x49b   : > { %8597 = vpow2.f32 %v3888_v63  ;;  %v3772_v8 = vsub.f32 %v10630_v40, %v3694_v52  ;;  %4053 = vadd.xlane.f32.xlu0 %v4052_v43  ;;  %v4025_v9 = vsel %vm3523_vm4, %v10916_v35, 0.0  ;;  %v11609_v40 = vld [vmem:[#allocation39_spill] sm:$0xff] }
 0x49c   : > { %8599 = vpow2.f32 %v3870_v53  ;;  %v3874_v46 = vmul.f32 1.442695, %v3763_v13 }
 0x49d   : > { %v10922_v17 = vpop.eup %8589  ;;  %v3892_v39 = vmul.f32 1.442695, %v3772_v8  ;;  %v3673_v30 = vpop.xlane.xlu1 %3672 }
 0x49e   : > { %11607 = vst [vmem:[#allocation38_spill] sm:$0xff] %v10922_v17  ;;  %v10926_v25 = vpop.eup %8591  ;;  %v3765_v6 = vsub.f32 %v11608_v60, %v3673_v30  ;;  %4026 = vadd.xlane.f32.xlu1 %v4025_v9  ;;  %v3700_v56 = vpop.xlane.xlu0 %3699  ;;  %v4058_v63 = vsel %vm3523_vm4, %v10922_v17, 0.0 }
 0x49f   : > { %8601 = vpow2.f32 %v3892_v39  ;;  %v3774_v53 = vsub.f32 %v11609_v40, %v3700_v56  ;;  %4059 = vadd.xlane.f32.xlu0 %v4058_v63  ;;  %v4031_v4 = vsel %vm3523_vm4, %v10926_v25, 0.0 }
 0x4a0   : > { %8603 = vpow2.f32 %v3874_v46  ;;  %v3878_v13 = vmul.f32 1.442695, %v3765_v6 }
 0x4a1   : > { %v10932_v52 = vpop.eup %8593  ;;  %v3896_v43 = vmul.f32 1.442695, %v3774_v53  ;;  %v3679_v8 = vpop.xlane.xlu1 %3678 }
 0x4a2   : > { %11610 = vst [vmem:[#allocation42_spill] sm:$0xff] %v10932_v52  ;;  %v10936_v45 = vpop.eup %8595  ;;  %v3767_v30 = vsub.f32 %v10643_v61, %v3679_v8  ;;  %4032 = vadd.xlane.f32.xlu1 %v4031_v4  ;;  %v3709_v9 = vpop.xlane.xlu0 %3708  ;;  %v4064_v39 = vsel %vm3523_vm4, %v10932_v52, 0.0 }
 0x4a3   : > { %8605 = vpow2.f32 %v3896_v43  ;;  %4065 = vadd.xlane.f32.xlu0 %v4064_v39  ;;  %v4037_v56 = vsel %vm3523_vm4, %v10936_v45, 0.0 }
 0x4a4   : > { %8607 = vpow2.f32 %v3878_v13  ;;  %v3882_v46 = vmul.f32 1.442695, %v3767_v30 }
 0x4a5   : > { %v10941_v60 = vpop.eup %8597  ;;  %v3685_v6 = vpop.xlane.xlu1 %3684 }
 0x4a6   : > { %11611 = vst [vmem:[#allocation41_spill] sm:$0xff] %v10941_v60  ;;  %v10945_v63 = vpop.eup %8599  ;;  %v3769_v40 = vsub.f32 %v10655_v10, %v3685_v6  ;;  %4038 = vadd.xlane.f32.xlu1 %v4037_v56  ;;  %v3706_v61 = vpop.xlane.xlu0 %3705  ;;  %v4070_v4 = vsel %vm3523_vm4, %v10941_v60, 0.0  ;;  %8609 = vpow2.f32 %v3882_v46 }
 0x4a7   : > { %v3776_v53 = vsub.f32 %v10660_v14, %v3706_v61  ;;  %4071 = vadd.xlane.f32.xlu0 %v4070_v4  ;;  %v4043_v39 = vsel %vm3523_vm4, %v10945_v63, 0.0 }
 0x4a8   : > { %v3886_v13 = vmul.f32 1.442695, %v3769_v40 }
 0x4a9   : > { %v10951_v43 = vpop.eup %8601  ;;  %v3900_v8 = vmul.f32 1.442695, %v3776_v53  ;;  %v3691_v30 = vpop.xlane.xlu1 %3690 }
 0x4aa   : > { %v10955_v52 = vpop.eup %8603  ;;  %v3771_v10 = vsub.f32 %v10663_v54, %v3691_v30  ;;  %4044 = vadd.xlane.f32.xlu1 %v4043_v39  ;;  %v3715_v6 = vpop.xlane.xlu0 %3714  ;;  %v4076_v56 = vsel %vm3523_vm4, %v10951_v43, 0.0 }
 0x4ab   : > { %8611 = vpow2.f32 %v3900_v8  ;;  %4077 = vadd.xlane.f32.xlu0 %v4076_v56  ;;  %v4049_v61 = vsel %vm3523_vm4, %v10955_v52, 0.0 }
 0x4ac   : > { %8613 = vpow2.f32 %v3886_v13  ;;  %v3890_v14 = vmul.f32 1.442695, %v3771_v10 }
 0x4ad   : > { %v10960_v46 = vpop.eup %8605  ;;  %v3697_v40 = vpop.xlane.xlu1 %3696 }
 0x4ae   : > { %v10964_v4 = vpop.eup %8607  ;;  %v3773_v53 = vsub.f32 %v10673_v62, %v3697_v40  ;;  %4050 = vadd.xlane.f32.xlu1 %v4049_v61  ;;  %v3712_v54 = vpop.xlane.xlu0 %3711  ;;  %v4082_v30 = vsel %vm3523_vm4, %v10960_v46, 0.0  ;;  %8615 = vpow2.f32 %v3890_v14  ;;  %v3777_v62 = vsub.f32 %v10650_v48, %v3709_v9 }
 0x4af   : > { %v3778_v8 = vsub.f32 %v10678_v12, %v3712_v54  ;;  %4083 = vadd.xlane.f32.xlu0 %v4082_v30  ;;  %v4055_v56 = vsel %vm3523_vm4, %v10964_v4, 0.0 }
 0x4b0   : > { %v3894_v13 = vmul.f32 1.442695, %v3773_v53  ;;  %v10972_v60 = vpop.eup %8609  ;;  %v3902_v54 = vmul.f32 1.442695, %v3777_v62 }
 0x4b1   : > { %v3904_v39 = vmul.f32 1.442695, %v3778_v8  ;;  %v3703_v10 = vpop.xlane.xlu1 %3702  ;;  %v4061_v12 = vsel %vm3523_vm4, %v10972_v60, 0.0 }
 0x4b2   : > { %v3775_v17 = vsub.f32 %v10683_v58, %v3703_v10  ;;  %4056 = vadd.xlane.f32.xlu1 %v4055_v56  ;;  %v11612_v58 = vld [vmem:[#allocation26_spill] sm:$0xff] }
 0x4b3   : > { %8617 = vpow2.f32 %v3904_v39  ;;  %v3779_v30 = vsub.f32 %v11612_v58, %v3715_v6 }
 0x4b4   : > { %8619 = vpow2.f32 %v3894_v13  ;;  %v3898_v40 = vmul.f32 1.442695, %v3775_v17 }
 0x4b5   : > { %v10976_v61 = vpop.eup %8611  ;;  %v3906_v9 = vmul.f32 1.442695, %v3779_v30 }
 0x4b6   : > { %v10980_v14 = vpop.eup %8613  ;;  %4062 = vadd.xlane.f32.xlu1 %v4061_v12  ;;  %v4088_v53 = vsel %vm3523_vm4, %v10976_v61, 0.0  ;;  %8621 = vpow2.f32 %v3898_v40 }
 0x4b7   : > { %4089 = vadd.xlane.f32.xlu0 %v4088_v53  ;;  %v4067_v48 = vsel %vm3523_vm4, %v10980_v14, 0.0  ;;  %8623 = vpow2.f32 %v3902_v54 }
 0x4b8   : > { %v10987_v17 = vpop.eup %8615  ;;  %8625 = vpow2.f32 %v3906_v9 }
 0x4b9   : > { %v4073_v13 = vsel %vm3523_vm4, %v10987_v17, 0.0 }
 0x4ba   : > { %4068 = vadd.xlane.f32.xlu1 %v4067_v48 }
 0x4bd   : > { %v10989_v8 = vpop.eup %8617 }
 0x4be   : > { %11613 = vst [vmem:[#allocation45_spill] sm:$0xff] %v10989_v8  ;;  %v10993_v39 = vpop.eup %8619  ;;  %4074 = vadd.xlane.f32.xlu1 %v4073_v13  ;;  %v4094_v6 = vsel %vm3523_vm4, %v10989_v8, 0.0 }
 0x4bf   : > { %4095 = vadd.xlane.f32.xlu0 %v4094_v6  ;;  %v4079_v10 = vsel %vm3523_vm4, %v10993_v39, 0.0 }
 0x4c0   : > { %v10999_v56 = vpop.eup %8621 }
 0x4c1   : > { %v4085_v62 = vsel %vm3523_vm4, %v10999_v56, 0.0  ;;  %v11003_v40 = vpop.eup %8623 }
 0x4c2   : > { %4080 = vadd.xlane.f32.xlu1 %v4079_v10  ;;  %v4091_v53 = vsel %vm3523_vm4, %v11003_v40, 0.0  ;;  %v11007_v54 = vpop.eup %8625 }
 0x4c3   : > { %11614 = vst [vmem:[#allocation44_spill] sm:$0xff] %v11007_v54  ;;  %v4097_v30 = vsel %vm3523_vm4, %v11007_v54, 0.0 }
 0x4c6   : > { %4086 = vadd.xlane.f32.xlu1 %v4085_v62  ;;  %v3913_v12 = vpop.xlane.xlu1 %3912 }
 0x4c7   : > { %8627 = vrcp.f32 %v3913_v12 }
 0x4ca   : > { %4092 = vadd.xlane.f32.xlu1 %v4091_v53  ;;  %v3910_v58 = vpop.xlane.xlu1 %3909 }
 0x4cb   : > { %8629 = vrcp.f32 %v3910_v58  ;;  %v11615_v58 = vld [vmem:[#allocation50_spill] sm:$0xff] }
 0x4ce   : > { %4098 = vadd.xlane.f32.xlu1 %v4097_v30  ;;  %v3919_v48 = vpop.xlane.xlu1 %3918  ;;  %v3925_v9 = vpop.xlane.xlu0 %3924 }
 0x4cf   : > { %8631 = vrcp.f32 %v3919_v48  ;;  %v11616_v48 = vld [vmem:[#allocation51_spill] sm:$0xff] }
 0x4d1   : > { %v8628_v10 = vpop.eup %8627 }
 0x4d2   : > { %v3916_v13 = vpop.xlane.xlu1 %3915  ;;  %v3922_v6 = vpop.xlane.xlu0 %3921  ;;  %v4165_v12 = vmul.f32 %v8628_v10, %v10697_v22  ;;  %v11617_v22 = vld [vmem:[#allocation52_spill] sm:$0xff] }
 0x4d3   : > { %8633 = vrcp.f32 %v3916_v13 }
 0x4d4   : > { %8635 = vrcp.f32 %v3922_v6 }
 0x4d5   : > { %v8630_v62 = vpop.eup %8629  ;;  %8637 = vrcp.f32 %v3925_v9 }
 0x4d6   : > { %v3931_v8 = vpop.xlane.xlu0 %3930  ;;  %v4164_v53 = vmul.f32 %v8630_v62, %v10702_v51 }
 0x4d7   : > { %8639 = vrcp.f32 %v3931_v8 }
 0x4d8   : > { %7729 = vmatprep.mubr.msk.f32.mxu1 %vm3523_vm4, %v4164_v53 }
 0x4d9   : > { %7730 = vmatmul.mubr.msk.f32.vlgmr.msra.gmra.mrb[160].mxu1 %vm3523_vm4, %v4165_v12  ;;  %v8632_v13 = vpop.eup %8631 }
 0x4da   : > { %8347 = vmatpush3.bf16.msra.mxu1 %v11615_v58  ;;  %v3928_v30 = vpop.xlane.xlu0 %3927  ;;  %v4167_v10 = vmul.f32 %v8632_v13, %v10707_v21  ;;  %v11618_v58 = vld [vmem:[#allocation53_spill] sm:$0xff]  ;;  %v11619_v13 = vld [vmem:[#allocation10_spill] sm:$0xff] }
 0x4db   : > { %8349 = vmatprep.subr.bf16.mxu1 %v11616_v48  ;;  %8641 = vrcp.f32 %v3928_v30 }
 0x4dd   : > { %v8634_v6 = vpop.eup %8633 }
 0x4de   : > { %v8636_v54 = vpop.eup %8635  ;;  %8351 = vmatpush3.bf16.msra.mxu1 %v11616_v48  ;;  %v3937_v9 = vpop.xlane.xlu0 %3936  ;;  %v4166_v51 = vmul.f32 %v8634_v6, %v10716_v3 }
 0x4df   : > { %8353 = vmatprep.subr.bf16.mxu1 %v11617_v22  ;;  %v8638_v62 = vpop.eup %8637  ;;  %v4168_v8 = vmul.f32 %v8636_v54, %v10718_v57  ;;  %8643 = vrcp.f32 %v3937_v9 }
 0x4e0   : > { %7732 = vmatprep.mubr.msk.f32.mxu1 %vm3523_vm4, %v4166_v51  ;;  %v4169_v3 = vmul.f32 %v8638_v62, %v10709_v18 }
 0x4e1   : > { %7733 = vmatmul.mubr.msk.f32.gmra.mrb[162].mxu1 %vm3523_vm4, %v4167_v10  ;;  %v8640_v21 = vpop.eup %8639 }
 0x4e2   : > { %v3955_v53 = vpop.xlane.xlu1 %3954  ;;  %8355 = vmatpush3.bf16.msra.mxu1 %v11617_v22  ;;  %7735 = vmatprep.mubr.msk.f32.mxu1 %vm3523_vm4, %v4168_v8  ;;  %v4171_v6 = vmul.f32 %v8640_v21, %v10726_v7 }
 0x4e3   : > { %v3934_v12 = vpop.xlane.xlu0 %3933  ;;  %8357 = vmatprep.subr.bf16.mxu1 %v11618_v58 }
 0x4e4   : > { %8645 = vrcp.f32 %v3934_v12 }
 0x4e5   : > { %v8642_v30 = vpop.eup %8641  ;;  %7736 = vmatmul.mubr.msk.f32.gmra.mrb[164].mxu1 %vm3523_vm4, %v4169_v3  ;;  %v11620_v3 = vld [vmem:[#allocation13_spill] sm:$0xff] }
 0x4e6   : > { %8359 = vmatpush3.bf16.msra.mxu1 %v11618_v58  ;;  %v4170_v48 = vmul.f32 %v8642_v30, %v10732_v34 }
 0x4e7   : > { %v3961_v57 = vpop.xlane.xlu1 %3960  ;;  %v3943_v54 = vpop.xlane.xlu0 %3942  ;;  %8377 = vmatprep.subr.bf16.mxu1 %v11619_v13 }
 0x4e8   : > { %7738 = vmatprep.mubr.msk.f32.mxu1 %vm3523_vm4, %v4170_v48  ;;  %8647 = vrcp.f32 %v3961_v57 }
 0x4e9   : > { %7739 = vmatmul.mubr.msk.f32.gmra.mrb[166].mxu1 %vm3523_vm4, %v4171_v6  ;;  %8649 = vrcp.f32 %v3943_v54  ;;  %v8644_v51 = vpop.eup %8643 }
 0x4ea   : > { %v4173_v8 = vmul.f32 %v8644_v51, %v10738_v42 }
 0x4eb   : > { %v3958_v18 = vpop.xlane.xlu1 %3957  ;;  %v3940_v9 = vpop.xlane.xlu0 %3939 }
 0x4ec   : > { %8651 = vrcp.f32 %v3958_v18 }
 0x4ed   : > { %8653 = vrcp.f32 %v3940_v9 }
 0x4ee   : > { %v8646_v22 = vpop.eup %8645 }
 0x4ef   : > { %v3967_v10 = vpop.xlane.xlu1 %3966  ;;  %v3949_v62 = vpop.xlane.xlu0 %3948  ;;  %v4172_v34 = vmul.f32 %v8646_v22, %v10746_v59  ;;  %v11624_v22 = vld [vmem:[#allocation2_spill] sm:$0xff] }
 0x4f0   : > { %8655 = vrcp.f32 %v3967_v10 }
 0x4f1   : > { %7757 = vmatprep.mubr.msk.f32.mxu1 %vm3523_vm4, %v4172_v34  ;;  %8657 = vrcp.f32 %v3949_v62 }
 0x4f2   : > { %7758 = vmatmul.mubr.msk.f32.vlgmr.msra.gmra.mrb[168].mxu1 %vm3523_vm4, %v4173_v8  ;;  %v8648_v58 = vpop.eup %8647 }
 0x4f3   : > { %8379 = vmatpush3.bf16.msra.mxu1 %v11619_v13  ;;  %v3964_v7 = vpop.xlane.xlu1 %3963  ;;  %v3946_v12 = vpop.xlane.xlu0 %3945  ;;  %v4181_v48 = vmul.f32 %v8648_v58, %v10756_v33  ;;  %v11621_v13 = vld [vmem:[#allocation12_spill] sm:$0xff] }
 0x4f4   : > { %8659 = vrcp.f32 %v3964_v7  ;;  %8381 = vmatprep.subr.bf16.mxu1 %v11620_v3  ;;  %v8650_v21 = vpop.eup %8649  ;;  %v11625_v7 = vld [vmem:[#allocation11_spill] sm:$0xff] }
 0x4f5   : > { %8661 = vrcp.f32 %v3946_v12  ;;  %v4175_v18 = vmul.f32 %v8650_v21, %v10754_v26 }
 0x4f6   : > { %v8652_v30 = vpop.eup %8651  ;;  %8663 = vrcp.f32 %v3955_v53 }
 0x4f7   : > { %v8654_v59 = vpop.eup %8653  ;;  %8383 = vmatpush3.bf16.msra.mxu1 %v11620_v3  ;;  %v3973_v42 = vpop.xlane.xlu1 %3972  ;;  %v4180_v54 = vmul.f32 %v8652_v30, %v10766_v49  ;;  %v11622_v49 = vld [vmem:[#allocation8_spill] sm:$0xff] }
 0x4f8   : > { %v3952_v57 = vpop.xlane.xlu0 %3951  ;;  %8385 = vmatprep.subr.bf16.mxu1 %v11621_v13  ;;  %v4174_v6 = vmul.f32 %v8654_v59, %v10764_v31  ;;  %v11623_v31 = vld [vmem:[#allocation9_spill] sm:$0xff]  ;;  %v11626_v3 = vld [vmem:[#allocation16_spill] sm:$0xff] }
 0x4f9   : > { %8665 = vrcp.f32 %v3952_v57  ;;  %7785 = vmatprep.mubr.msk.f32.mxu0 %vm3523_vm4, %v4180_v54 }
 0x4fa   : > { %7760 = vmatprep.mubr.msk.f32.mxu1 %vm3523_vm4, %v4174_v6  ;;  %7786 = vmatmul.mubr.msk.f32.vlgmr.msra.gmra.mrb[160].mxu0 %vm3523_vm4, %v4181_v48  ;;  %8667 = vrcp.f32 %v3973_v42  ;;  %v8656_v9 = vpop.eup %8655 }
 0x4fb   : > { %7761 = vmatmul.mubr.msk.f32.gmra.mrb[170].mxu1 %vm3523_vm4, %v4175_v18  ;;  %8395 = vmatpush3.bf16.msra.mxu0 %v11622_v49  ;;  %v3970_v53 = vpop.xlane.xlu1 %3969  ;;  %v8658_v51 = vpop.eup %8657  ;;  %v4183_v58 = vmul.f32 %v8656_v9, %v10776_v1  ;;  %v11627_v1 = vld [vmem:[#allocation14_spill] sm:$0xff]  ;;  %v11628_v49 = vld [vmem:[#allocation28_spill] sm:$0xff] }
 0x4fc   : > { %v3982_v33 = vpop.xlane.xlu0 %3981  ;;  %8387 = vmatpush3.bf16.msra.mxu1 %v11621_v13  ;;  %8397 = vmatprep.subr.bf16.mxu0 %v11623_v31  ;;  %8669 = vrcp.f32 %v3970_v53  ;;  %v4177_v21 = vmul.f32 %v8658_v51, %v10774_v38 }
 0x4fd   : > { %8389 = vmatprep.subr.bf16.mxu1 %v11624_v22  ;;  %8671 = vrcp.f32 %v3982_v33 }
 0x4fe   : > { %v8660_v26 = vpop.eup %8659 }
 0x4ff   : > { %v8662_v10 = vpop.eup %8661  ;;  %8399 = vmatpush3.bf16.msra.mxu0 %v11623_v31  ;;  %v3979_v62 = vpop.xlane.xlu1 %3978  ;;  %v4182_v8 = vmul.f32 %v8660_v26, %v10786_v19 }
 0x500   : > { %v3991_v34 = vpop.xlane.xlu0 %3990  ;;  %8391 = vmatpush3.bf16.msra.mxu1 %v11624_v22  ;;  %8401 = vmatprep.subr.bf16.mxu0 %v11625_v7  ;;  %v4176_v12 = vmul.f32 %v8662_v10, %v10784_v0  ;;  %v8664_v30 = vpop.eup %8663  ;;  %8673 = vrcp.f32 %v3979_v62 }
 0x501   : > { %8409 = vmatprep.subr.bf16.mxu1 %v11626_v3  ;;  %7788 = vmatprep.mubr.msk.f32.mxu0 %vm3523_vm4, %v4182_v8  ;;  %v4179_v38 = vmul.f32 %v8664_v30, %v10744_v41 }
 0x502   : > { %7763 = vmatprep.mubr.msk.f32.mxu1 %vm3523_vm4, %v4176_v12  ;;  %7789 = vmatmul.mubr.msk.f32.gmra.mrb[162].mxu0 %vm3523_vm4, %v4183_v58 }
 0x503   : > { %v8666_v19 = vpop.eup %8665  ;;  %7764 = vmatmul.mubr.msk.f32.gmra.mrb[172].mxu1 %vm3523_vm4, %v4177_v21  ;;  %8403 = vmatpush3.bf16.msra.mxu0 %v11625_v7  ;;  %v3976_v0 = vpop.xlane.xlu1 %3975 }
 0x504   : > { %v3988_v59 = vpop.xlane.xlu0 %3987  ;;  %8405 = vmatprep.subr.bf16.mxu0 %v11627_v1  ;;  %8675 = vrcp.f32 %v3976_v0  ;;  %v4178_v42 = vmul.f32 %v8666_v19, %v10794_v16  ;;  %v8668_v57 = vpop.eup %8667 }
 0x505   : > { %8677 = vrcp.f32 %v3988_v59  ;;  %v4185_v41 = vmul.f32 %v8668_v57, %v10796_v29 }
 0x506   : > { %v8670_v54 = vpop.eup %8669  ;;  %7766 = vmatprep.mubr.msk.f32.mxu1 %vm3523_vm4, %v4178_v42 }
 0x507   : > { %v8672_v48 = vpop.eup %8671  ;;  %7767 = vmatmul.mubr.msk.f32.gmra.mrb[174].mxu1 %vm3523_vm4, %v4179_v38  ;;  %8407 = vmatpush3.bf16.msra.mxu0 %v11627_v1  ;;  %v3985_v13 = vpop.xlane.xlu1 %3984  ;;  %v4184_v18 = vmul.f32 %v8670_v54, %v10806_v5  ;;  %v11631_v38 = vld [vmem:[#allocation25_spill] sm:$0xff] }
 0x508   : > { %v3997_v6 = vpop.xlane.xlu0 %3996  ;;  %8425 = vmatprep.subr.bf16.mxu0 %v11628_v49  ;;  %8679 = vrcp.f32 %v3985_v13  ;;  %v4188_v16 = vmul.f32 %v8672_v48, %v10804_v37 }
 0x509   : > { %7791 = vmatprep.mubr.msk.f32.mxu0 %vm3523_vm4, %v4184_v18  ;;  %8681 = vrcp.f32 %v3991_v34 }
 0x50a   : > { %7813 = vmatprep.mubr.msk.f32.mxu1 %vm3523_vm4, %v4188_v16  ;;  %7792 = vmatmul.mubr.msk.f32.gmra.mrb[164].mxu0 %vm3523_vm4, %v4185_v41  ;;  %v8674_v9 = vpop.eup %8673  ;;  %v11633_v16 = vld [vmem:[#allocation40_spill] sm:$0xff]  ;;  %v11634_v41 = vld [vmem:[#allocation34_spill] sm:$0xff] }
 0x50b   : > { %v4009_v53 = vpop.xlane.xlu1 %4008  ;;  %v4187_v29 = vmul.f32 %v8674_v9, %v10816_v28 }
 0x50c   : > { %v3994_v33 = vpop.xlane.xlu0 %3993 }
 0x50d   : > { %8683 = vrcp.f32 %v3994_v33 }
 0x50e   : > { %v8676_v31 = vpop.eup %8675  ;;  %8685 = vrcp.f32 %v3997_v6 }
 0x50f   : > { %8687 = vrcp.f32 %v4009_v53  ;;  %v4006_v5 = vpop.xlane.xlu1 %4005  ;;  %v4186_v37 = vmul.f32 %v8676_v31, %v10826_v23  ;;  %v8678_v22 = vpop.eup %8677  ;;  %v11629_v23 = vld [vmem:[#allocation19_spill] sm:$0xff]  ;;  %v11636_v31 = vld [vmem:[#allocation37_spill] sm:$0xff] }
 0x510   : > { %v4003_v51 = vpop.xlane.xlu0 %4002  ;;  %8689 = vrcp.f32 %v4006_v5  ;;  %v4190_v7 = vmul.f32 %v8678_v22, %v10824_v55 }
 0x511   : > { %7794 = vmatprep.mubr.msk.f32.mxu0 %vm3523_vm4, %v4186_v37  ;;  %8691 = vrcp.f32 %v4003_v51  ;;  %v11637_v37 = vld [vmem:[#allocation33_spill] sm:$0xff] }
 0x512   : > { %v8680_v26 = vpop.eup %8679  ;;  %7795 = vmatmul.mubr.msk.f32.gmra.mrb[166].mxu0 %vm3523_vm4, %v4187_v29 }
 0x513   : > { %v4189_v10 = vmul.f32 %v8680_v26, %v10836_v36  ;;  %v4015_v62 = vpop.xlane.xlu1 %4014  ;;  %v8682_v8 = vpop.eup %8681  ;;  %v11638_v26 = vld [vmem:[#allocation29_spill] sm:$0xff] }
 0x514   : > { %v4000_v34 = vpop.xlane.xlu0 %3999  ;;  %v4191_v36 = vmul.f32 %v8682_v8, %v10814_v32 }
 0x515   : > { %8693 = vrcp.f32 %v4000_v34  ;;  %7814 = vmatmul.mubr.msk.f32.vlgmr.msra.gmra.mrb[176].mxu1 %vm3523_vm4, %v4189_v10 }
 0x516   : > { %8411 = vmatpush3.bf16.msra.mxu1 %v11626_v3  ;;  %7816 = vmatprep.mubr.msk.f32.mxu1 %vm3523_vm4, %v4190_v7  ;;  %8695 = vrcp.f32 %v4015_v62  ;;  %v11630_v3 = vld [vmem:[#allocation22_spill] sm:$0xff] }
 0x517   : > { %v8684_v28 = vpop.eup %8683  ;;  %8413 = vmatprep.subr.bf16.mxu1 %v11629_v23  ;;  %v4012_v12 = vpop.xlane.xlu1 %4011 }
 0x518   : > { %v8686_v58 = vpop.eup %8685  ;;  %8697 = vrcp.f32 %v4012_v12  ;;  %v4030_v21 = vpop.xlane.xlu0 %4029  ;;  %v4192_v30 = vmul.f32 %v8684_v28, %v10844_v50 }
 0x519   : > { %v8688_v55 = vpop.eup %8687  ;;  %8699 = vrcp.f32 %v4030_v21  ;;  %7817 = vmatmul.mubr.msk.f32.gmra.mrb[178].mxu1 %vm3523_vm4, %v4191_v36  ;;  %v4193_v59 = vmul.f32 %v8686_v58, %v10834_v15 }
 0x51a   : > { %v8690_v19 = vpop.eup %8689  ;;  %8415 = vmatpush3.bf16.msra.mxu1 %v11629_v23  ;;  %7819 = vmatprep.mubr.msk.f32.mxu1 %vm3523_vm4, %v4192_v30  ;;  %v4197_v1 = vmul.f32 %v8688_v55, %v10846_v20  ;;  %v11639_v55 = vld [vmem:[#allocation35_spill] sm:$0xff] }
 0x51b   : > { %8417 = vmatprep.subr.bf16.mxu1 %v11630_v3  ;;  %v4021_v0 = vpop.xlane.xlu1 %4020  ;;  %v4196_v32 = vmul.f32 %v8690_v19, %v10856_v11  ;;  %v8692_v50 = vpop.eup %8691  ;;  %v11632_v11 = vld [vmem:[#allocation31_spill] sm:$0xff] }
 0x51c   : > { %v4036_v42 = vpop.xlane.xlu0 %4035  ;;  %8701 = vrcp.f32 %v4021_v0  ;;  %v4195_v13 = vmul.f32 %v8692_v50, %v10854_v47  ;;  %v11635_v47 = vld [vmem:[#allocation30_spill] sm:$0xff]  ;;  %v11641_v50 = vld [vmem:[#allocation43_spill] sm:$0xff] }
 0x51d   : > { %7820 = vmatmul.mubr.msk.f32.gmra.mrb[180].mxu1 %vm3523_vm4, %v4193_v59  ;;  %7841 = vmatprep.mubr.msk.f32.mxu0 %vm3523_vm4, %v4196_v32  ;;  %v11640_v32 = vld [vmem:[#allocation7_spill] sm:$0xff] }
 0x51e   : > { %8419 = vmatpush3.bf16.msra.mxu1 %v11630_v3  ;;  %7842 = vmatmul.mubr.msk.f32.vlgmr.msra.gmra.mrb[168].mxu0 %vm3523_vm4, %v4197_v1 }
 0x51f   : > { %v8694_v57 = vpop.eup %8693  ;;  %8421 = vmatprep.subr.bf16.mxu1 %v11631_v38  ;;  %8427 = vmatpush3.bf16.msra.mxu0 %v11628_v49  ;;  %v4018_v15 = vpop.xlane.xlu1 %4017 }
 0x520   : > { %8429 = vmatprep.subr.bf16.mxu0 %v11632_v11  ;;  %8703 = vrcp.f32 %v4018_v15  ;;  %v4042_v20 = vpop.xlane.xlu0 %4041  ;;  %v4194_v54 = vmul.f32 %v8694_v57, %v10864_v27  ;;  %v8696_v48 = vpop.eup %8695 }
 0x521   : > { %v4199_v53 = vmul.f32 %v8696_v48, %v10866_v2 }
 0x522   : > { %v8698_v6 = vpop.eup %8697  ;;  %7822 = vmatprep.mubr.msk.f32.mxu1 %vm3523_vm4, %v4194_v54  ;;  %8423 = vmatpush3.bf16.msra.mxu1 %v11631_v38  ;;  %v11643_v54 = vld [vmem:[#allocation46_spill] sm:$0xff] }
 0x523   : > { %v8700_v18 = vpop.eup %8699  ;;  %7823 = vmatmul.mubr.msk.f32.gmra.mrb[182].mxu1 %vm3523_vm4, %v4195_v13  ;;  %8431 = vmatpush3.bf16.msra.mxu0 %v11632_v11  ;;  %v4198_v49 = vmul.f32 %v8698_v6, %v10873_v24  ;;  %v11644_v6 = vld [vmem:[#allocation36_spill] sm:$0xff] }
 0x524   : > { %8441 = vmatprep.subr.bf16.mxu1 %v11633_v16  ;;  %8433 = vmatprep.subr.bf16.mxu0 %v11634_v41  ;;  %v4048_v27 = vpop.xlane.xlu0 %4047  ;;  %v4204_v33 = vmul.f32 %v8700_v18, %v11635_v47 }
 0x525   : > { %7844 = vmatprep.mubr.msk.f32.mxu0 %vm3523_vm4, %v4198_v49 }
 0x526   : > { %7845 = vmatmul.mubr.msk.f32.gmra.mrb[170].mxu0 %vm3523_vm4, %v4199_v53  ;;  %7869 = vmatprep.mubr.msk.f32.mxu1 %vm3523_vm4, %v4204_v33  ;;  %v8702_v5 = vpop.eup %8701 }
 0x527   : > { %8435 = vmatpush3.bf16.msra.mxu0 %v11634_v41  ;;  %v4024_v9 = vpop.xlane.xlu1 %4023  ;;  %v4201_v10 = vmul.f32 %v8702_v5, %v11638_v26 }
 0x528   : > { %8437 = vmatprep.subr.bf16.mxu0 %v11636_v31  ;;  %8705 = vrcp.f32 %v4024_v9  ;;  %v4054_v24 = vpop.xlane.xlu0 %4053 }
 0x529   : > { %8707 = vrcp.f32 %v4054_v24  ;;  %v11646_v24 = vld [vmem:[#allocation38_spill] sm:$0xff] }
 0x52a   : > { %v8704_v51 = vpop.eup %8703 }
 0x52b   : > { %8439 = vmatpush3.bf16.msra.mxu0 %v11636_v31  ;;  %v4027_v2 = vpop.xlane.xlu1 %4026  ;;  %v4200_v29 = vmul.f32 %v8704_v51, %v11637_v37 }
 0x52c   : > { %8709 = vrcp.f32 %v4027_v2  ;;  %v4060_v22 = vpop.xlane.xlu0 %4059 }
 0x52d   : > { %7847 = vmatprep.mubr.msk.f32.mxu0 %vm3523_vm4, %v4200_v29  ;;  %8711 = vrcp.f32 %v4036_v42  ;;  %v11647_v29 = vld [vmem:[#allocation42_spill] sm:$0xff] }
 0x52e   : > { %7848 = vmatmul.mubr.msk.f32.gmra.mrb[172].mxu0 %vm3523_vm4, %v4201_v10 }
 0x52f   : > { %v4033_v62 = vpop.xlane.xlu1 %4032 }
 0x530   : > { %8713 = vrcp.f32 %v4033_v62  ;;  %v4066_v34 = vpop.xlane.xlu0 %4065 }
 0x531   : > { %8715 = vrcp.f32 %v4042_v20 }
 0x532   : > { %v8706_v8 = vpop.eup %8705 }
 0x533   : > { %v4039_v7 = vpop.xlane.xlu1 %4038  ;;  %v4202_v28 = vmul.f32 %v8706_v8, %v10910_v44  ;;  %v8708_v12 = vpop.eup %8707  ;;  %v11648_v8 = vld [vmem:[#allocation41_spill] sm:$0xff] }
 0x534   : > { %8717 = vrcp.f32 %v4039_v7  ;;  %v4072_v23 = vpop.xlane.xlu0 %4071  ;;  %v4212_v19 = vmul.f32 %v8708_v12, %v11639_v55 }
 0x535   : > { %7850 = vmatprep.mubr.msk.f32.mxu0 %vm3523_vm4, %v4202_v28  ;;  %8719 = vrcp.f32 %v4048_v27 }
 0x536   : > { %v8710_v36 = vpop.eup %8709 }
 0x537   : > { %v4045_v58 = vpop.xlane.xlu1 %4044  ;;  %v4203_v21 = vmul.f32 %v8710_v36, %v10916_v35  ;;  %v8712_v3 = vpop.eup %8711 }
 0x538   : > { %8721 = vrcp.f32 %v4045_v58  ;;  %v4078_v30 = vpop.xlane.xlu0 %4077  ;;  %v4206_v1 = vmul.f32 %v8712_v3, %v11640_v32  ;;  %v11650_v32 = vld [vmem:[#allocation44_spill] sm:$0xff] }
 0x539   : > { %7851 = vmatmul.mubr.msk.f32.gmra.mrb[174].mxu0 %vm3523_vm4, %v4203_v21  ;;  %8723 = vrcp.f32 %v4078_v30 }
 0x53a   : > { %v8714_v0 = vpop.eup %8713  ;;  %7897 = vmatprep.mubr.msk.f32.mxu0 %vm3523_vm4, %v4212_v19 }
 0x53b   : > { %v4205_v44 = vmul.f32 %v8714_v0, %v10926_v25  ;;  %v4051_v59 = vpop.xlane.xlu1 %4050  ;;  %v8716_v42 = vpop.eup %8715  ;;  %v11642_v25 = vld [vmem:[#allocation32_spill] sm:$0xff] }
 0x53c   : > { %8725 = vrcp.f32 %v4051_v59  ;;  %v4208_v15 = vmul.f32 %v8716_v42, %v11642_v25  ;;  %v4084_v31 = vpop.xlane.xlu0 %4083 }
 0x53d   : > { %7870 = vmatmul.mubr.msk.f32.vlgmr.msra.gmra.mrb[184].mxu1 %vm3523_vm4, %v4205_v44  ;;  %8727 = vrcp.f32 %v4060_v22  ;;  %v11649_v44 = vld [vmem:[#allocation45_spill] sm:$0xff] }
 0x53e   : > { %v8718_v35 = vpop.eup %8717  ;;  %8443 = vmatpush3.bf16.msra.mxu1 %v11633_v16  ;;  %7872 = vmatprep.mubr.msk.f32.mxu1 %vm3523_vm4, %v4206_v1  ;;  %v11645_v16 = vld [vmem:[#allocation49_spill] sm:$0xff] }
 0x53f   : > { %8445 = vmatprep.subr.bf16.mxu1 %v11641_v50  ;;  %v4057_v57 = vpop.xlane.xlu1 %4056  ;;  %v4207_v38 = vmul.f32 %v8718_v35, %v10936_v45  ;;  %v8720_v11 = vpop.eup %8719 }
 0x540   : > { %8729 = vrcp.f32 %v4057_v57  ;;  %v4210_v45 = vmul.f32 %v8720_v11, %v11644_v6 }
 0x541   : > { %7873 = vmatmul.mubr.msk.f32.gmra.mrb[186].mxu1 %vm3523_vm4, %v4207_v38  ;;  %8731 = vrcp.f32 %v4066_v34 }
 0x542   : > { %v8722_v20 = vpop.eup %8721  ;;  %8447 = vmatpush3.bf16.msra.mxu1 %v11641_v50  ;;  %7875 = vmatprep.mubr.msk.f32.mxu1 %vm3523_vm4, %v4208_v15 }
 0x543   : > { %8449 = vmatprep.subr.bf16.mxu1 %v11643_v54  ;;  %v4063_v48 = vpop.xlane.xlu1 %4062  ;;  %v4209_v13 = vmul.f32 %v8722_v20, %v10945_v63  ;;  %v8724_v18 = vpop.eup %8723 }
 0x544   : > { %8733 = vrcp.f32 %v4063_v48  ;;  %v4220_v63 = vmul.f32 %v8724_v18, %v10951_v43  ;;  %v4090_v37 = vpop.xlane.xlu0 %4089 }
 0x545   : > { %7876 = vmatmul.mubr.msk.f32.gmra.mrb[188].mxu1 %vm3523_vm4, %v4209_v13  ;;  %8735 = vrcp.f32 %v4072_v23 }
 0x546   : > { %v8726_v49 = vpop.eup %8725  ;;  %8451 = vmatpush3.bf16.msra.mxu1 %v11643_v54  ;;  %7878 = vmatprep.mubr.msk.f32.mxu1 %vm3523_vm4, %v4210_v45 }
 0x547   : > { %8453 = vmatprep.subr.bf16.mxu1 %v11645_v16  ;;  %v4069_v41 = vpop.xlane.xlu1 %4068  ;;  %v4211_v27 = vmul.f32 %v8726_v49, %v10955_v52  ;;  %v8728_v53 = vpop.eup %8727 }
 0x548   : > { %8737 = vrcp.f32 %v4069_v41  ;;  %v4214_v5 = vmul.f32 %v8728_v53, %v11646_v24 }
 0x549   : > { %7879 = vmatmul.mubr.msk.f32.gmra.mrb[190].mxu1 %vm3523_vm4, %v4211_v27 }
 0x54a   : > { %v8730_v47 = vpop.eup %8729  ;;  %8455 = vmatpush3.bf16.msra.mxu1 %v11645_v16  ;;  %7925 = vmatprep.mubr.msk.f32.mxu1 %vm3523_vm4, %v4220_v63 }
 0x54b   : > { %v4213_v33 = vmul.f32 %v8730_v47, %v10964_v4  ;;  %v4075_v9 = vpop.xlane.xlu1 %4074  ;;  %v8732_v51 = vpop.eup %8731 }
 0x54c   : > { %8739 = vrcp.f32 %v4075_v9  ;;  %v4216_v22 = vmul.f32 %v8732_v51, %v11647_v29  ;;  %v4096_v34 = vpop.xlane.xlu0 %4095 }
 0x54d   : > { %7898 = vmatmul.mubr.msk.f32.vlgmr.msra.gmra.mrb[176].mxu0 %vm3523_vm4, %v4213_v33  ;;  %8741 = vrcp.f32 %v4084_v31 }
 0x54e   : > { %v8734_v52 = vpop.eup %8733  ;;  %7900 = vmatprep.mubr.msk.f32.mxu0 %vm3523_vm4, %v4214_v5 }
 0x54f   : > { %v4081_v43 = vpop.xlane.xlu1 %4080  ;;  %v4215_v2 = vmul.f32 %v8734_v52, %v10972_v60  ;;  %v8736_v4 = vpop.eup %8735 }
 0x550   : > { %8743 = vrcp.f32 %v4081_v43  ;;  %v4218_v7 = vmul.f32 %v8736_v4, %v11648_v8 }
 0x551   : > { %7901 = vmatmul.mubr.msk.f32.gmra.mrb[178].mxu0 %vm3523_vm4, %v4215_v2  ;;  %8745 = vrcp.f32 %v4090_v37 }
 0x552   : > { %v8738_v26 = vpop.eup %8737  ;;  %7903 = vmatprep.mubr.msk.f32.mxu0 %vm3523_vm4, %v4216_v22 }
 0x553   : > { %v4087_v10 = vpop.xlane.xlu1 %4086  ;;  %v4217_v62 = vmul.f32 %v8738_v26, %v10980_v14 }
 0x554   : > { %8747 = vrcp.f32 %v4087_v10 }
 0x555   : > { %7904 = vmatmul.mubr.msk.f32.gmra.mrb[180].mxu0 %vm3523_vm4, %v4217_v62  ;;  %8749 = vrcp.f32 %v4096_v34 }
 0x556   : > { %v8740_v60 = vpop.eup %8739  ;;  %7906 = vmatprep.mubr.msk.f32.mxu0 %vm3523_vm4, %v4218_v7 }
 0x557   : > { %v4093_v28 = vpop.xlane.xlu1 %4092  ;;  %v4219_v23 = vmul.f32 %v8740_v60, %v10987_v17  ;;  %v8742_v12 = vpop.eup %8741 }
 0x558   : > { %8751 = vrcp.f32 %v4093_v28  ;;  %v4222_v21 = vmul.f32 %v8742_v12, %v10960_v46 }
 0x559   : > { %7907 = vmatmul.mubr.msk.f32.gmra.mrb[182].mxu0 %vm3523_vm4, %v4219_v23 }
 0x55a   : > { %v8744_v36 = vpop.eup %8743 }
 0x55b   : > { %v4221_v14 = vmul.f32 %v8744_v36, %v10993_v39  ;;  %v4099_v58 = vpop.xlane.xlu1 %4098  ;;  %v8746_v30 = vpop.eup %8745 }
 0x55c   : > { %8753 = vrcp.f32 %v4099_v58  ;;  %v4224_v17 = vmul.f32 %v8746_v30, %v10976_v61  ;;  %v6508_v61 = vld [vmem:[%s11425_s6 + $0x4] sm:$0xf] }
 0x55d   : > { %7926 = vmatmul.mubr.msk.f32.vlgmr.msra.gmra.mrb[192].mxu1 %vm3523_vm4, %v4221_v14  ;;  %7937 = vmatprep.subr.msk.mxu0 %vm5359_vm5, %v6508_v61 }
 0x55e   : > { %v8748_v55 = vpop.eup %8747  ;;  %7928 = vmatprep.mubr.msk.f32.mxu1 %vm3523_vm4, %v4222_v21  ;;  %8456 = vmatprep.subr.msk.mxu1 %vm5359_vm5, %v6508_v61 }
 0x55f   : > { %v4223_v19 = vmul.f32 %v8748_v55, %v10999_v56  ;;  %v8750_v3 = vpop.eup %8749  ;;  %7938 = vmatpush3.msk.msra.mxu0 %vm5359_vm5, %v6508_v61  ;;  %8457 = vmatpush3.msk.msra.mxu1 %vm5359_vm5, %v6508_v61  ;;  %v5260_v56 = vld [vmem:[%s11425_s6] sm:$0xf] }
 0x560   : > { %v4226_v46 = vmul.f32 %v8750_v3, %v11649_v44  ;;  %7987 = vmatprep.subr.msk.mxu0 %vm5359_vm5, %v5260_v56 }
 0x561   : > { %7929 = vmatmul.mubr.msk.f32.gmra.mrb[194].mxu1 %vm3523_vm4, %v4223_v19 }
 0x562   : > { %v8752_v0 = vpop.eup %8751  ;;  %7931 = vmatprep.mubr.msk.f32.mxu1 %vm3523_vm4, %v4224_v17 }
 0x563   : > { %v4225_v39 = vmul.f32 %v8752_v0, %v11003_v40 }
 0x565   : > { %7932 = vmatmul.mubr.msk.f32.gmra.mrb[196].mxu1 %vm3523_vm4, %v4225_v39 }
 0x566   : > { %v8754_v59 = vpop.eup %8753  ;;  %7934 = vmatprep.mubr.msk.f32.mxu1 %vm3523_vm4, %v4226_v46 }
 0x567   : > { %v4227_v1 = vmul.f32 %v8754_v59, %v11650_v32 }
 0x569   : > { %7935 = vmatmul.mubr.msk.f32.gmra.mrb[198].mxu1 %vm3523_vm4, %v4227_v1 }
 0x5ac   : > { %v7731_v40 = vpop.f32.mrb[160].mxu1 }
 0x5ad   : > { %v4318_v42 = vpop.f32.mrb[161].mxu1 }
 0x5b4   : > { %v7734_v35 = vpop.f32.mrb[162].mxu1 }
 0x5b5   : > { %v4328_v50 = vpop.f32.mrb[163].mxu1 }
 0x5b8   : > { %v7737_v57 = vpop.f32.mrb[164].mxu1 }
 0x5b9   : > { %v4338_v38 = vpop.f32.mrb[165].mxu1 }
 0x5bc   : > { %v7740_v25 = vpop.f32.mrb[166].mxu1 }
 0x5bd   : > { %v4348_v15 = vpop.f32.mrb[167].mxu1 }
 0x5c5   : > { %v7759_v11 = vpop.f32.mrb[168].mxu1 }
 0x5c6   : > { %v4447_v20 = vpop.f32.mrb[169].mxu1 }
 0x5cd   : > { %v11196_v54 = vpop.f32.mrb[160].mxu0 }
 0x5ce   : > { %v7762_v48 = vpop.f32.mrb[170].mxu1  ;;  %v11198_v13 = vpop.f32.mrb[161].mxu0 }
 0x5cf   : > { %v4457_v6 = vpop.f32.mrb[171].mxu1 }
 0x5d5   : > { %v11200_v45 = vpop.f32.mrb[162].mxu0 }
 0x5d6   : > { %v7765_v18 = vpop.f32.mrb[172].mxu1  ;;  %v11202_v49 = vpop.f32.mrb[163].mxu0 }
 0x5d7   : > { %v4467_v16 = vpop.f32.mrb[173].mxu1 }
 0x5da   : > { %v7768_v41 = vpop.f32.mrb[174].mxu1 }
 0x5db   : > { %v4477_v27 = vpop.f32.mrb[175].mxu1 }
 0x5dd   : > { %v11204_v63 = vpop.f32.mrb[164].mxu0 }
 0x5de   : > { %v11206_v53 = vpop.f32.mrb[165].mxu0 }
 0x5e5   : > { %v11208_v47 = vpop.f32.mrb[166].mxu0 }
 0x5e6   : > { %v11210_v33 = vpop.f32.mrb[167].mxu0 }
 0x5e8   : > { %v11212_v9 = vpop.f32.mrb[176].mxu1 }
 0x5e9   : > { %v11214_v31 = vpop.f32.mrb[177].mxu1 }
 0x5ec   : > { %v11216_v24 = vpop.f32.mrb[178].mxu1 }
 0x5ed   : > { %v11218_v5 = vpop.f32.mrb[179].mxu1 }
 0x5f0   : > { %v11220_v51 = vpop.f32.mrb[180].mxu1 }
 0x5f1   : > { %v11222_v52 = vpop.f32.mrb[181].mxu1  ;;  %v7843_v43 = vpop.f32.mrb[168].mxu0 }
 0x5f2   : > { %v4834_v2 = vpop.f32.mrb[169].mxu0 }
 0x5f3   : > { %7939 = vmatprep.mubr.msk.f32.mxu0 %vm2298_vm2, %v4834_v2 }
 0x5f4   : > { %7940 = vmatmul.mubr.msk.f32.vlgmr.msra.gmra.mrb[184].mxu0 %vm2298_vm2, %v7843_v43 }
 0x5f5   : > { %7989 = vmatprep.mubr.msk.f32.mxu0 %vm2298_vm2, %v4318_v42  ;;  %7988 = vmatpush3.msk.msra.mxu0 %vm5359_vm5, %v5260_v56 }
 0x5f6   : > { %v11228_v37 = vpop.f32.mrb[182].mxu1 }
 0x5f7   : > { %v11230_v29 = vpop.f32.mrb[183].mxu1 }
 0x5f9   : > { %v7846_v22 = vpop.f32.mrb[170].mxu0 }
 0x5fa   : > { %v4844_v4 = vpop.f32.mrb[171].mxu0 }
 0x5fb   : > { %7942 = vmatprep.mubr.msk.f32.mxu1 %vm2298_vm2, %v4844_v4 }
 0x5fc   : > { %7943 = vmatmul.mubr.msk.f32.vlgmr.msra.gmra.mrb[200].mxu1 %vm2298_vm2, %v7846_v22  ;;  %7990 = vmatmul.mubr.msk.f32.vlgmr.msra.gmra.mrb[184].mxu0 %vm2298_vm2, %v7731_v40  ;;  %v11313_v40 = vld [vmem:[%s11426_s7] ss:$0 sm:$0xff] }
 0x5fd   : > { %7992 = vmatprep.mubr.msk.f32.mxu0 %vm2298_vm2, %v4328_v50 }
 0x600   : > { %7993 = vmatmul.mubr.msk.f32.gmra.mrb[186].mxu0 %vm2298_vm2, %v7734_v35 }
 0x601   : > { %v7849_v26 = vpop.f32.mrb[172].mxu0  ;;  %7995 = vmatprep.mubr.msk.f32.mxu0 %vm2298_vm2, %v4338_v38 }
 0x602   : > { %v4854_v10 = vpop.f32.mrb[173].mxu0 }
 0x603   : > { %7945 = vmatprep.mubr.msk.f32.mxu1 %vm2298_vm2, %v4854_v10 }
 0x604   : > { %7946 = vmatmul.mubr.msk.f32.gmra.mrb[202].mxu1 %vm2298_vm2, %v7849_v26  ;;  %7996 = vmatmul.mubr.msk.f32.gmra.mrb[188].mxu0 %vm2298_vm2, %v7737_v57 }
 0x605   : > { %7998 = vmatprep.mubr.msk.f32.mxu0 %vm2298_vm2, %v4348_v15 }
 0x608   : > { %7999 = vmatmul.mubr.msk.f32.gmra.mrb[190].mxu0 %vm2298_vm2, %v7740_v25 }
 0x609   : > { %8001 = vmatprep.mubr.msk.f32.mxu0 %vm2298_vm2, %v4447_v20 }
 0x60c   : > { %v7852_v62 = vpop.f32.mrb[174].mxu0  ;;  %8002 = vmatmul.mubr.msk.f32.gmra.mrb[192].mxu0 %vm2298_vm2, %v7759_v11 }
 0x60d   : > { %v4864_v34 = vpop.f32.mrb[175].mxu0  ;;  %8004 = vmatprep.mubr.msk.f32.mxu0 %vm2298_vm2, %v4457_v6 }
 0x60e   : > { %7948 = vmatprep.mubr.msk.f32.mxu1 %vm2298_vm2, %v4864_v34 }
 0x60f   : > { %7949 = vmatmul.mubr.msk.f32.gmra.mrb[204].mxu1 %vm2298_vm2, %v7852_v62 }
 0x610   : > { %v7871_v8 = vpop.f32.mrb[184].mxu1  ;;  %8005 = vmatmul.mubr.msk.f32.gmra.mrb[194].mxu0 %vm2298_vm2, %v7762_v48 }
 0x611   : > { %v4963_v7 = vpop.f32.mrb[185].mxu1  ;;  %8007 = vmatprep.mubr.msk.f32.mxu0 %vm2298_vm2, %v4467_v16 }
 0x612   : > { %7951 = vmatprep.mubr.msk.f32.mxu1 %vm2298_vm2, %v4963_v7 }
 0x613   : > { %7952 = vmatmul.mubr.msk.f32.gmra.mrb[206].mxu1 %vm2298_vm2, %v7871_v8 }
 0x614   : > { %v7874_v60 = vpop.f32.mrb[186].mxu1  ;;  %8008 = vmatmul.mubr.msk.f32.gmra.mrb[196].mxu0 %vm2298_vm2, %v7765_v18 }
 0x615   : > { %v4973_v28 = vpop.f32.mrb[187].mxu1  ;;  %8010 = vmatprep.mubr.msk.f32.mxu0 %vm2298_vm2, %v4477_v27 }
 0x616   : > { %7954 = vmatprep.mubr.msk.f32.mxu1 %vm2298_vm2, %v4973_v28 }
 0x617   : > { %7955 = vmatmul.mubr.msk.f32.gmra.mrb[208].mxu1 %vm2298_vm2, %v7874_v60 }
 0x618   : > { %v7877_v23 = vpop.f32.mrb[188].mxu1  ;;  %8011 = vmatmul.mubr.msk.f32.gmra.mrb[198].mxu0 %vm2298_vm2, %v7768_v41 }
 0x619   : > { %v4983_v12 = vpop.f32.mrb[189].mxu1  ;;  %8013 = vmatprep.mubr.msk.f32.mxu0 %vm2298_vm2, %v11198_v13 }
 0x61a   : > { %7957 = vmatprep.mubr.msk.f32.mxu1 %vm2298_vm2, %v4983_v12 }
 0x61b   : > { %7958 = vmatmul.mubr.msk.f32.gmra.mrb[210].mxu1 %vm2298_vm2, %v7877_v23 }
 0x61c   : > { %v7880_v36 = vpop.f32.mrb[190].mxu1  ;;  %8014 = vmatmul.mubr.msk.f32.gmra.mrb[200].mxu0 %vm2298_vm2, %v11196_v54 }
 0x61d   : > { %v4993_v14 = vpop.f32.mrb[191].mxu1  ;;  %8016 = vmatprep.mubr.msk.f32.mxu0 %vm2298_vm2, %v11202_v49 }
 0x61e   : > { %7960 = vmatprep.mubr.msk.f32.mxu1 %vm2298_vm2, %v4993_v14 }
 0x61f   : > { %7961 = vmatmul.mubr.msk.f32.gmra.mrb[212].mxu1 %vm2298_vm2, %v7880_v36 }
 0x620   : > { %v7899_v58 = vpop.f32.mrb[176].mxu0  ;;  %8017 = vmatmul.mubr.msk.f32.gmra.mrb[202].mxu0 %vm2298_vm2, %v11200_v45 }
 0x621   : > { %v5092_v21 = vpop.f32.mrb[177].mxu0  ;;  %8019 = vmatprep.mubr.msk.f32.mxu0 %vm2298_vm2, %v11206_v53 }
 0x622   : > { %7963 = vmatprep.mubr.msk.f32.mxu1 %vm2298_vm2, %v5092_v21 }
 0x623   : > { %7964 = vmatmul.mubr.msk.f32.gmra.mrb[214].mxu1 %vm2298_vm2, %v7899_v58 }
 0x624   : > { %v7902_v30 = vpop.f32.mrb[178].mxu0  ;;  %8020 = vmatmul.mubr.msk.f32.gmra.mrb[204].mxu0 %vm2298_vm2, %v11204_v63 }
 0x625   : > { %v5102_v55 = vpop.f32.mrb[179].mxu0  ;;  %8022 = vmatprep.mubr.msk.f32.mxu0 %vm2298_vm2, %v11210_v33 }
 0x626   : > { %7966 = vmatprep.mubr.msk.f32.mxu1 %vm2298_vm2, %v5102_v55 }
 0x627   : > { %7967 = vmatmul.mubr.msk.f32.gmra.mrb[216].mxu1 %vm2298_vm2, %v7902_v30 }
 0x628   : > { %v7905_v19 = vpop.f32.mrb[180].mxu0  ;;  %8023 = vmatmul.mubr.msk.f32.gmra.mrb[206].mxu0 %vm2298_vm2, %v11208_v47 }
 0x629   : > { %v5112_v17 = vpop.f32.mrb[181].mxu0  ;;  %8025 = vmatprep.mubr.msk.f32.mxu0 %vm2298_vm2, %v11214_v31 }
 0x62a   : > { %7969 = vmatprep.mubr.msk.f32.mxu1 %vm2298_vm2, %v5112_v17 }
 0x62b   : > { %7970 = vmatmul.mubr.msk.f32.gmra.mrb[218].mxu1 %vm2298_vm2, %v7905_v19 }
 0x62c   : > { %v7908_v3 = vpop.f32.mrb[182].mxu0  ;;  %8026 = vmatmul.mubr.msk.f32.gmra.mrb[208].mxu0 %vm2298_vm2, %v11212_v9 }
 0x62d   : > { %v5122_v0 = vpop.f32.mrb[183].mxu0  ;;  %8028 = vmatprep.mubr.msk.f32.mxu0 %vm2298_vm2, %v11218_v5 }
 0x62e   : > { %7972 = vmatprep.mubr.msk.f32.mxu1 %vm2298_vm2, %v5122_v0 }
 0x62f   : > { %7973 = vmatmul.mubr.msk.f32.gmra.mrb[220].mxu1 %vm2298_vm2, %v7908_v3 }
 0x630   : > { %v7927_v39 = vpop.f32.mrb[192].mxu1  ;;  %8029 = vmatmul.mubr.msk.f32.gmra.mrb[210].mxu0 %vm2298_vm2, %v11216_v24 }
 0x631   : > { %v5221_v44 = vpop.f32.mrb[193].mxu1  ;;  %8031 = vmatprep.mubr.msk.f32.mxu0 %vm2298_vm2, %v11222_v52 }
 0x632   : > { %7975 = vmatprep.mubr.msk.f32.mxu1 %vm2298_vm2, %v5221_v44 }
 0x633   : > { %7976 = vmatmul.mubr.msk.f32.gmra.mrb[222].mxu1 %vm2298_vm2, %v7927_v39 }
 0x634   : > { %v7930_v46 = vpop.f32.mrb[194].mxu1  ;;  %8032 = vmatmul.mubr.msk.f32.gmra.mrb[212].mxu0 %vm2298_vm2, %v11220_v51 }
 0x635   : > { %v5231_v59 = vpop.f32.mrb[195].mxu1  ;;  %8034 = vmatprep.mubr.msk.f32.mxu0 %vm2298_vm2, %v11230_v29 }
 0x636   : > { %7978 = vmatprep.mubr.msk.f32.mxu1 %vm2298_vm2, %v5231_v59 }
 0x637   : > { %7979 = vmatmul.mubr.msk.f32.gmra.mrb[224].mxu1 %vm2298_vm2, %v7930_v46 }
 0x638   : > { %v7933_v32 = vpop.f32.mrb[196].mxu1  ;;  %8035 = vmatmul.mubr.msk.f32.gmra.mrb[214].mxu0 %vm2298_vm2, %v11228_v37 }
 0x639   : > { %v5241_v1 = vpop.f32.mrb[197].mxu1 }
 0x63a   : > { %7981 = vmatprep.mubr.msk.f32.mxu1 %vm2298_vm2, %v5241_v1 }
 0x63b   : > { %7982 = vmatmul.mubr.msk.f32.gmra.mrb[226].mxu1 %vm2298_vm2, %v7933_v32 }
 0x63c   : > { %v7936_v61 = vpop.f32.mrb[198].mxu1 }
 0x63d   : > { %v5251_v56 = vpop.f32.mrb[199].mxu1 }
 0x63e   : > { %7984 = vmatprep.mubr.msk.f32.mxu1 %vm2298_vm2, %v5251_v56 }
 0x63f   : > { %7985 = vmatmul.mubr.msk.f32.gmra.mrb[228].mxu1 %vm2298_vm2, %v7936_v61 }
 0x6cf   : > { %v7944_v42 = vpop.f32.mrb[200].mxu1  ;;  %v7991_v35 = vpop.f32.mrb[184].mxu0 }
 0x6d0   : > { %v5920_v50 = vadd.f32 %v7991_v35, %v11313_v40  ;;  %v5439_v57 = vpop.f32.mrb[201].mxu1  ;;  %v5753_v38 = vpop.f32.mrb[185].mxu0 }
 0x6d1   : > { %v5919_v25 = vadd.f32 %v11313_v40, %v5753_v38 }
 0x6d2   : > { %5953 = vst.msk [vmem:[%s11318_s21 + $0x8] sm:$0xff] %vm5951_vm6, %v5920_v50 }
 0x6d3   : > { %5952 = vst.msk [vmem:[%s11318_s21] sm:$0xff] %vm5951_vm6, %v5919_v25  ;;  %v7994_v15 = vpop.f32.mrb[186].mxu0 }
 0x6d4   : > { %v5769_v11 = vadd.f32 %v7994_v15, %v7944_v42  ;;  %v5763_v20 = vpop.f32.mrb[187].mxu0 }
 0x6d5   : > { %v5764_v54 = vadd.f32 %v5763_v20, %v5439_v57 }
 0x6d6   : > { %v5922_v48 = vadd.f32 %v11313_v40, %v5769_v11 }
 0x6d7   : > { %v5921_v13 = vadd.f32 %v11313_v40, %v5764_v54  ;;  %v7947_v6 = vpop.f32.mrb[202].mxu1  ;;  %v7997_v45 = vpop.f32.mrb[188].mxu0 }
 0x6d8   : > { %5955 = vst.msk [vmem:[%s11318_s21 + $0x18] sm:$0xff] %vm5951_vm6, %v5922_v48  ;;  %v5779_v18 = vadd.f32 %v7997_v45, %v7947_v6  ;;  %v5449_v49 = vpop.f32.mrb[203].mxu1  ;;  %v5773_v16 = vpop.f32.mrb[189].mxu0 }
 0x6d9   : > { %5954 = vst.msk [vmem:[%s11318_s21 + $0x10] sm:$0xff] %vm5951_vm6, %v5921_v13  ;;  %v5774_v41 = vadd.f32 %v5773_v16, %v5449_v49 }
 0x6da   : > { %v5924_v27 = vadd.f32 %v11313_v40, %v5779_v18 }
 0x6db   : > { %v5923_v63 = vadd.f32 %v11313_v40, %v5774_v41  ;;  %v8000_v53 = vpop.f32.mrb[190].mxu0 }
 0x6dc   : > { %5957 = vst.msk [vmem:[%s11318_s21 + $0x28] sm:$0xff] %vm5951_vm6, %v5924_v27  ;;  %v5783_v47 = vpop.f32.mrb[191].mxu0 }
 0x6dd   : > { %5956 = vst.msk [vmem:[%s11318_s21 + $0x20] sm:$0xff] %vm5951_vm6, %v5923_v63 }
 0x6df   : > { %v8003_v33 = vpop.f32.mrb[192].mxu0 }
 0x6e0   : > { %v5793_v9 = vpop.f32.mrb[193].mxu0 }
 0x6e2   : > { %v7950_v31 = vpop.f32.mrb[204].mxu1 }
 0x6e3   : > { %v5789_v24 = vadd.f32 %v8000_v53, %v7950_v31  ;;  %v5459_v5 = vpop.f32.mrb[205].mxu1  ;;  %v8006_v51 = vpop.f32.mrb[194].mxu0 }
 0x6e4   : > { %v5784_v52 = vadd.f32 %v5783_v47, %v5459_v5  ;;  %v5803_v43 = vpop.f32.mrb[195].mxu0 }
 0x6e5   : > { %v5926_v2 = vadd.f32 %v11313_v40, %v5789_v24 }
 0x6e6   : > { %v5925_v37 = vadd.f32 %v11313_v40, %v5784_v52  ;;  %v7953_v29 = vpop.f32.mrb[206].mxu1 }
 0x6e7   : > { %5959 = vst.msk [vmem:[%s11318_s21 + $0x38] sm:$0xff] %vm5951_vm6, %v5926_v2  ;;  %v5799_v22 = vadd.f32 %v8003_v33, %v7953_v29  ;;  %v5469_v4 = vpop.f32.mrb[207].mxu1  ;;  %v8009_v26 = vpop.f32.mrb[196].mxu0 }
 0x6e8   : > { %5958 = vst.msk [vmem:[%s11318_s21 + $0x30] sm:$0xff] %vm5951_vm6, %v5925_v37  ;;  %v5794_v10 = vadd.f32 %v5793_v9, %v5469_v4  ;;  %v5813_v62 = vpop.f32.mrb[197].mxu0 }
 0x6e9   : > { %v5928_v34 = vadd.f32 %v11313_v40, %v5799_v22 }
 0x6ea   : > { %v5927_v8 = vadd.f32 %v11313_v40, %v5794_v10  ;;  %v7956_v7 = vpop.f32.mrb[208].mxu1 }
 0x6eb   : > { %5961 = vst.msk [vmem:[%s11318_s21 + $0x48] sm:$0xff] %vm5951_vm6, %v5928_v34  ;;  %v5809_v60 = vadd.f32 %v8006_v51, %v7956_v7  ;;  %v5479_v28 = vpop.f32.mrb[209].mxu1  ;;  %v8012_v23 = vpop.f32.mrb[198].mxu0 }
 0x6ec   : > { %5960 = vst.msk [vmem:[%s11318_s21 + $0x40] sm:$0xff] %vm5951_vm6, %v5927_v8  ;;  %v5804_v12 = vadd.f32 %v5803_v43, %v5479_v28  ;;  %v5823_v36 = vpop.f32.mrb[199].mxu0 }
 0x6ed   : > { %v5930_v14 = vadd.f32 %v11313_v40, %v5809_v60 }
 0x6ee   : > { %v5929_v58 = vadd.f32 %v11313_v40, %v5804_v12  ;;  %v7959_v21 = vpop.f32.mrb[210].mxu1 }
 0x6ef   : > { %5963 = vst.msk [vmem:[%s11318_s21 + $0x58] sm:$0xff] %vm5951_vm6, %v5930_v14  ;;  %v5819_v30 = vadd.f32 %v8009_v26, %v7959_v21  ;;  %v5489_v55 = vpop.f32.mrb[211].mxu1  ;;  %v8015_v19 = vpop.f32.mrb[200].mxu0 }
 0x6f0   : > { %5962 = vst.msk [vmem:[%s11318_s21 + $0x50] sm:$0xff] %vm5951_vm6, %v5929_v58  ;;  %v5814_v17 = vadd.f32 %v5813_v62, %v5489_v55  ;;  %v5833_v3 = vpop.f32.mrb[201].mxu0 }
 0x6f1   : > { %v5932_v0 = vadd.f32 %v11313_v40, %v5819_v30 }
 0x6f2   : > { %v5931_v39 = vadd.f32 %v11313_v40, %v5814_v17  ;;  %v7962_v44 = vpop.f32.mrb[212].mxu1 }
 0x6f3   : > { %5965 = vst.msk [vmem:[%s11318_s21 + $0x68] sm:$0xff] %vm5951_vm6, %v5932_v0  ;;  %v5829_v46 = vadd.f32 %v8012_v23, %v7962_v44  ;;  %v5499_v59 = vpop.f32.mrb[213].mxu1  ;;  %v8018_v32 = vpop.f32.mrb[202].mxu0 }
 0x6f4   : > { %5964 = vst.msk [vmem:[%s11318_s21 + $0x60] sm:$0xff] %vm5951_vm6, %v5931_v39  ;;  %v5824_v1 = vadd.f32 %v5823_v36, %v5499_v59  ;;  %v5843_v61 = vpop.f32.mrb[203].mxu0 }
 0x6f5   : > { %v5934_v56 = vadd.f32 %v11313_v40, %v5829_v46 }
 0x6f6   : > { %v5933_v42 = vadd.f32 %v11313_v40, %v5824_v1  ;;  %v7965_v35 = vpop.f32.mrb[214].mxu1 }
 0x6f7   : > { %5967 = vst.msk [vmem:[%s11318_s21 + $0x78] sm:$0xff] %vm5951_vm6, %v5934_v56  ;;  %v5839_v50 = vadd.f32 %v8015_v19, %v7965_v35  ;;  %v5509_v57 = vpop.f32.mrb[215].mxu1  ;;  %v8021_v38 = vpop.f32.mrb[204].mxu0 }
 0x6f8   : > { %5966 = vst.msk [vmem:[%s11318_s21 + $0x70] sm:$0xff] %vm5951_vm6, %v5933_v42  ;;  %v5834_v25 = vadd.f32 %v5833_v3, %v5509_v57  ;;  %v5853_v15 = vpop.f32.mrb[205].mxu0 }
 0x6f9   : > { %v5936_v11 = vadd.f32 %v11313_v40, %v5839_v50 }
 0x6fa   : > { %v5935_v20 = vadd.f32 %v11313_v40, %v5834_v25  ;;  %v7968_v54 = vpop.f32.mrb[216].mxu1 }
 0x6fb   : > { %5969 = vst.msk [vmem:[%s11318_s21 + $0x88] sm:$0xff] %vm5951_vm6, %v5936_v11  ;;  %v5849_v48 = vadd.f32 %v8018_v32, %v7968_v54  ;;  %v5519_v13 = vpop.f32.mrb[217].mxu1  ;;  %v8024_v6 = vpop.f32.mrb[206].mxu0 }
 0x6fc   : > { %5968 = vst.msk [vmem:[%s11318_s21 + $0x80] sm:$0xff] %vm5951_vm6, %v5935_v20  ;;  %v5844_v45 = vadd.f32 %v5843_v61, %v5519_v13  ;;  %v5863_v18 = vpop.f32.mrb[207].mxu0 }
 0x6fd   : > { %v5938_v49 = vadd.f32 %v11313_v40, %v5849_v48 }
 0x6fe   : > { %v5937_v16 = vadd.f32 %v11313_v40, %v5844_v45  ;;  %v7971_v41 = vpop.f32.mrb[218].mxu1 }
 0x6ff   : > { %5971 = vst.msk [vmem:[%s11318_s21 + $0x98] sm:$0xff] %vm5951_vm6, %v5938_v49  ;;  %v5859_v27 = vadd.f32 %v8021_v38, %v7971_v41  ;;  %v5529_v63 = vpop.f32.mrb[219].mxu1  ;;  %v8027_v53 = vpop.f32.mrb[208].mxu0 }
 0x700   : > { %5970 = vst.msk [vmem:[%s11318_s21 + $0x90] sm:$0xff] %vm5951_vm6, %v5937_v16  ;;  %v5854_v47 = vadd.f32 %v5853_v15, %v5529_v63  ;;  %v5873_v33 = vpop.f32.mrb[209].mxu0 }
 0x701   : > { %v5940_v9 = vadd.f32 %v11313_v40, %v5859_v27 }
 0x702   : > { %v5939_v31 = vadd.f32 %v11313_v40, %v5854_v47  ;;  %v7974_v24 = vpop.f32.mrb[220].mxu1 }
 0x703   : > { %5973 = vst.msk [vmem:[%s11318_s21 + $0xa8] sm:$0xff] %vm5951_vm6, %v5940_v9  ;;  %v5869_v5 = vadd.f32 %v8024_v6, %v7974_v24  ;;  %v5539_v51 = vpop.f32.mrb[221].mxu1  ;;  %v8030_v52 = vpop.f32.mrb[210].mxu0 }
 0x704   : > { %5972 = vst.msk [vmem:[%s11318_s21 + $0xa0] sm:$0xff] %vm5951_vm6, %v5939_v31  ;;  %v5864_v43 = vadd.f32 %v5863_v18, %v5539_v51  ;;  %v5883_v2 = vpop.f32.mrb[211].mxu0 }
 0x705   : > { %v5942_v37 = vadd.f32 %v11313_v40, %v5869_v5 }
 0x706   : > { %v5941_v29 = vadd.f32 %v11313_v40, %v5864_v43  ;;  %v7977_v22 = vpop.f32.mrb[222].mxu1 }
 0x707   : > { %5975 = vst.msk [vmem:[%s11318_s21 + $0xb8] sm:$0xff] %vm5951_vm6, %v5942_v37  ;;  %v5879_v4 = vadd.f32 %v8027_v53, %v7977_v22  ;;  %v5549_v26 = vpop.f32.mrb[223].mxu1  ;;  %v8033_v10 = vpop.f32.mrb[212].mxu0 }
 0x708   : > { %5974 = vst.msk [vmem:[%s11318_s21 + $0xb0] sm:$0xff] %vm5951_vm6, %v5941_v29  ;;  %v5874_v62 = vadd.f32 %v5873_v33, %v5549_v26  ;;  %v5893_v34 = vpop.f32.mrb[213].mxu0 }
 0x709   : > { %v5944_v8 = vadd.f32 %v11313_v40, %v5879_v4 }
 0x70a   : > { %v5943_v7 = vadd.f32 %v11313_v40, %v5874_v62  ;;  %v7980_v60 = vpop.f32.mrb[224].mxu1 }
 0x70b   : > { %5977 = vst.msk [vmem:[%s11318_s21 + $0xc8] sm:$0xff] %vm5951_vm6, %v5944_v8  ;;  %v5889_v28 = vadd.f32 %v8030_v52, %v7980_v60  ;;  %v5559_v23 = vpop.f32.mrb[225].mxu1  ;;  %v8036_v12 = vpop.f32.mrb[214].mxu0 }
 0x70c   : > { %5976 = vst.msk [vmem:[%s11318_s21 + $0xc0] sm:$0xff] %vm5951_vm6, %v5943_v7  ;;  %v5884_v36 = vadd.f32 %v5883_v2, %v5559_v23  ;;  %v5903_v14 = vpop.f32.mrb[215].mxu0 }
 0x70d   : > { %v5946_v58 = vadd.f32 %v11313_v40, %v5889_v28 }
 0x70e   : > { %v5945_v21 = vadd.f32 %v11313_v40, %v5884_v36  ;;  %v7983_v30 = vpop.f32.mrb[226].mxu1 }
 0x70f   : > { %5979 = vst.msk [vmem:[%s11318_s21 + $0xd8] sm:$0xff] %vm5951_vm6, %v5946_v58  ;;  %v5899_v55 = vadd.f32 %v8033_v10, %v7983_v30  ;;  %v5569_v19 = vpop.f32.mrb[227].mxu1 }
 0x710   : > { %5978 = vst.msk [vmem:[%s11318_s21 + $0xd0] sm:$0xff] %vm5951_vm6, %v5945_v21  ;;  %v5894_v17 = vadd.f32 %v5893_v34, %v5569_v19 }
 0x711   : > { %v5948_v3 = vadd.f32 %v11313_v40, %v5899_v55 }
 0x712   : > { %v5947_v0 = vadd.f32 %v11313_v40, %v5894_v17  ;;  %v7986_v39 = vpop.f32.mrb[228].mxu1 }
 0x713   : > { %5981 = vst.msk [vmem:[%s11318_s21 + $0xe8] sm:$0xff] %vm5951_vm6, %v5948_v3  ;;  %v5909_v44 = vadd.f32 %v8036_v12, %v7986_v39  ;;  %v5579_v46 = vpop.f32.mrb[229].mxu1 }
 0x714   : > { %5980 = vst.msk [vmem:[%s11318_s21 + $0xe0] sm:$0xff] %vm5951_vm6, %v5947_v0  ;;  %v5904_v59 = vadd.f32 %v5903_v14, %v5579_v46 }
 0x715   : > { %v5950_v32 = vadd.f32 %v11313_v40, %v5909_v44 }
 0x716   : > { %v5949_v1 = vadd.f32 %v11313_v40, %v5904_v59 }
 0x717   : > { %5983 = vst.msk [vmem:[%s11318_s21 + $0xf8] sm:$0xff] %vm5951_vm6, %v5950_v32 }
 0x718   : > { %5982 = vst.msk [vmem:[%s11318_s21 + $0xf0] sm:$0xff] %vm5951_vm6, %v5949_v1 }
 0x719 PF: > { %s18_s27 = sadd.s32 1, %s8761_s27  }
 0x71a   : > { %p15_p4 = scmp.ge.s32.totalorder %s18_s27, 4  }
 0x71c   :  { %17 = sbr.rel (!%p15_p4) target bundleno = 1 (0x1), region = 93 }

</bundles_post_ra>
